<compile_context>
chip_gen: v7x
topology: tpu7x:2x2x1
jax: 0.10.0
libtpu: 0.0.40
codegen_flags: <defaults>
</compile_context>

<pallas_src>
import jax
import jax.numpy as jnp
from jax.experimental import pallas as pl
from jax.experimental.pallas import tpu as pltpu

N_NODES = 16
IN_F, H1_F, H2_F = 10, 8, 4      # GraphConv(10,8) -> GraphConv(8,4) -> Linear(4,1)


def gconvnet_kernel(adj_ref, x_ref, w1_ref, b1_ref, w2_ref, b2_ref,
                    w3_ref, b3_ref, out_ref):
    # adj_ref: (N, N, TB) int8 , adj_ref[j, i, b] = A[b, i, j]   (edge j -> i)
    # x_ref  : (IN_F, N, TB) f32, x_ref[k, j, b] = features[b, j, k]
    # w*/b*  : small SMEM arrays (read as scalars).   out_ref: (1, 1, TB) f32.
    adj = adj_ref[...].astype(jnp.float32)                 # (N_j, N_i, TB)

    # ---- fused GraphConv norm='both' (raw 0/1 adjacency in, rsqrt on the EUP) ----
    # TODO(synk): degrees are clamped to >=1; DGL instead raises on zero in-degree nodes
    # (unless allow_zero_in_degree=True).  Differs only for graphs with isolated nodes.
    d_in = jnp.sum(adj, axis=0)                             # (N_i, TB)    in-degree(i)
    din_inv = jax.lax.rsqrt(jnp.maximum(d_in, 1.0))
    d_out = jnp.sum(adj, axis=1, keepdims=True)             # (N_j, 1, TB) out-degree(j)
    dout_inv = jax.lax.rsqrt(jnp.maximum(d_out, 1.0))
    adj_s = adj * dout_inv                                  # D_out^-1/2 folded into A once

    x = x_ref[...]                                          # (IN_F, N_j, TB) f32

    # ---- GraphConv 1: h1[f] = relu(D_in^-1/2 * sum_j A_s[j,:,:] * (X W1)[f,j,:] + b1[f]) ----
    h1 = []
    for f in range(H1_F):
        xw = x[0] * w1_ref[0, f]
        for k in range(1, IN_F):
            xw = xw + x[k] * w1_ref[k, f]                   # (N_j, TB) scalar-FMA slabs (VPU)
        agg = jnp.sum(adj_s * xw[:, None, :], axis=0)       # (N_i, TB)
        h1.append(jnp.maximum(agg * din_inv + b1_ref[f], 0.0))

    # ---- GraphConv 2 ----
    h2 = []
    for f in range(H2_F):
        hw = h1[0] * w2_ref[0, f]
        for k in range(1, H1_F):
            hw = hw + h1[k] * w2_ref[k, f]
        agg = jnp.sum(adj_s * hw[:, None, :], axis=0)
        h2.append(jnp.maximum(agg * din_inv + b2_ref[f], 0.0))

    # ---- dgl.mean_nodes + Linear(4,1) + sigmoid ----
    # Fold W3 into the feature slabs first so a single cross-sublane node reduce remains;
    # the per-step output is one lane-dense (1, TB) row.
    acc = h2[0] * w3_ref[0]
    for f in range(1, H2_F):
        acc = acc + h2[f] * w3_ref[f]
    logit = jnp.sum(acc, axis=0, keepdims=True) * (1.0 / N_NODES) + b3_ref[0]   # (1, TB)
    out_ref[0] = jax.nn.sigmoid(logit)


def _pick_tile_b(batch, max_tile=256, min_tile=128):
    # Keep >=4 grid steps when the batch allows it (v7x: 2 TensorCores, 'parallel' grid axis),
    # but never below 128 lanes so every block stays lane-dense.  256 (not 512) caps the f32
    # vreg working set of the batch-in-lanes formulation while still amortizing the ~0.35us
    # per-step pipeline overhead to ~1.4 ns/graph.
    t = -(-batch // 4)                       # cdiv(batch, 4)
    t = ((t + 127) // 128) * 128             # round up to a lane multiple
    return max(min_tile, min(t, max_tile))


def gconvnet_forward(adj, x, params, tile_b=None):
    """adj: (B, N, N) binary adjacency (A[b,i,j]=1 iff edge j->i); x: (B, N, IN_F) f32.
    Returns (B,) probabilities (mirrors .view(-1) in the PyTorch module)."""
    B, N, _ = adj.shape
    w1, b1, w2, b2, w3, b3 = params
    if tile_b is None:
        tile_b = _pick_tile_b(B)
    assert tile_b % 128 == 0
    num_tiles = pl.cdiv(B, tile_b)
    b_pad = num_tiles * tile_b

    # Batch-in-lanes layouts: last dim is the (lane-dense) batch.
    adj_t = jnp.transpose(adj, (2, 1, 0)).astype(jnp.int8)     # (N_j, N_i, B), exact 0/1
    x_t = jnp.transpose(x, (2, 1, 0)).astype(jnp.float32)      # (IN_F, N_j, B)
    if b_pad != B:
        pad = b_pad - B
        adj_t = jnp.pad(adj_t, ((0, 0), (0, 0), (0, pad)))
        x_t = jnp.pad(x_t, ((0, 0), (0, 0), (0, pad)))

    # Tiny weights/biases go to SMEM and are consumed as scalars inside the kernel.
    w1f = w1.astype(jnp.float32)
    w2f = w2.astype(jnp.float32)
    b1f = b1.reshape(-1).astype(jnp.float32)
    b2f = b2.reshape(-1).astype(jnp.float32)
    w3f = w3.reshape(-1).astype(jnp.float32)
    b3f = b3.reshape(-1).astype(jnp.float32)
    smem_spec = pl.BlockSpec(memory_space=pltpu.MemorySpace.SMEM)

    out = pl.pallas_call(
        gconvnet_kernel,
        out_shape=jax.ShapeDtypeStruct((num_tiles, 1, tile_b), jnp.float32),
        grid=(num_tiles,),
        in_specs=[
            pl.BlockSpec((N, N, tile_b), lambda t: (0, 0, t)),
            pl.BlockSpec((IN_F, N, tile_b), lambda t: (0, 0, t)),
            smem_spec, smem_spec, smem_spec, smem_spec, smem_spec, smem_spec,
        ],
        out_specs=pl.BlockSpec((1, 1, tile_b), lambda t: (t, 0, 0)),
        compiler_params=pltpu.CompilerParams(
            dimension_semantics=("parallel",)),
    )(adj_t, x_t, w1f, b1f, w2f, b2f, w3f, b3f)

    return out.reshape(-1)[:B]


# ----------------------------- pure-JAX reference ---------------------------------
def normalize_adj(adj):
    # DGL GraphConv norm='both': A_norm[i,j] = A[i,j] / sqrt(d_in(i) * d_out(j)), degrees >= 1.
    d_in = adj.sum(axis=-1)
    d_out = adj.sum(axis=-2)
    din_inv = 1.0 / jnp.sqrt(jnp.maximum(d_in, 1.0))
    dout_inv = 1.0 / jnp.sqrt(jnp.maximum(d_out, 1.0))
    return adj * din_inv[:, :, None] * dout_inv[:, None, :]


def reference_forward(adj, x, params):
    w1, b1, w2, b2, w3, b3 = params
    adj_n = normalize_adj(adj.astype(jnp.float32))
    h = jnp.maximum(jnp.einsum('bij,bjf->bif', adj_n, x @ w1) + b1, 0.0)
    h = jnp.maximum(jnp.einsum('bij,bjf->bif', adj_n, h @ w2) + b2, 0.0)
    pooled = h.mean(axis=1)                                   # dgl.mean_nodes
    return jax.nn.sigmoid(pooled @ w3 + b3).reshape(-1)


def build_ring_adj(n):
    # Undirected ring graph (in/out degree 2 everywhere, no zero-degree nodes).
    idx = jnp.arange(n)
    adj = jnp.zeros((n, n), jnp.float32)
    adj = adj.at[idx, (idx + 1) % n].set(1.0)
    adj = adj.at[idx, (idx - 1) % n].set(1.0)
    return adj


if __name__ == "__main__":
    key = jax.random.PRNGKey(0)
    kx, k1, k2, k3, kb1, kb2, kb3 = jax.random.split(key, 7)

    # Deterministic synthetic parameters (shapes from the module __init__).
    w1 = 0.3 * jax.random.normal(k1, (IN_F, H1_F), jnp.float32)
    b1 = 0.1 * jax.random.normal(kb1, (1, H1_F), jnp.float32)
    w2 = 0.3 * jax.random.normal(k2, (H1_F, H2_F), jnp.float32)
    b2 = 0.1 * jax.random.normal(kb2, (1, H2_F), jnp.float32)
    w3 = 0.3 * jax.random.normal(k3, (H2_F, 1), jnp.float32)
    b3 = 0.1 * jax.random.normal(kb3, (1, 1), jnp.float32)
    params = (w1, b1, w2, b2, w3, b3)

    # --- small test: batch=2 ring graphs (pads up to one lane-dense tile) ---
    B = 2
    x = jax.random.normal(kx, (B, N_NODES, IN_F), jnp.float32)
    adj = jnp.stack([build_ring_adj(N_NODES)] * B)

    out = gconvnet_forward(adj, x, params)
    out = jax.block_until_ready(out)
    ref = reference_forward(adj, x, params)
    assert out.shape == (B,)
    assert jnp.allclose(out, ref, rtol=2e-3, atol=2e-3), (out, ref)

    # --- larger test: random graphs, multiple grid tiles + batch-padding path ---
    B2 = 300
    ka2, kx2 = jax.random.split(jax.random.PRNGKey(1))
    x2 = jax.random.normal(kx2, (B2, N_NODES, IN_F), jnp.float32)
    rnd = jax.random.uniform(ka2, (B2, N_NODES, N_NODES))
    adj2 = (rnd < 0.25).astype(jnp.float32)
    adj2 = jnp.maximum(adj2, jnp.transpose(adj2, (0, 2, 1)))          # symmetrize
    adj2 = jnp.maximum(adj2, build_ring_adj(N_NODES)[None])           # degree >= 2 everywhere
    adj2 = adj2 * (1.0 - jnp.eye(N_NODES, dtype=jnp.float32))         # no self-loops

    out2 = gconvnet_forward(adj2, x2, params)
    out2 = jax.block_until_ready(out2)
    ref2 = reference_forward(adj2, x2, params)
    assert out2.shape == (B2,)
    assert jnp.allclose(out2, ref2, rtol=2e-3, atol=2e-3), (out2, ref2)

    print("KERNEL_OK")
</pallas_src>

<mosaic_0001>
module attributes {stable_mosaic.version = 11 : i64} {
  func.func @gconvnet_kernel(%arg0: i32, %arg1: memref<16x16x128xi8, #tpu.memory_space<vmem>>, %arg2: memref<10x16x128xf32, #tpu.memory_space<vmem>>, %arg3: memref<10x8xf32, #tpu.memory_space<smem>>, %arg4: memref<8xf32, #tpu.memory_space<smem>>, %arg5: memref<8x4xf32, #tpu.memory_space<smem>>, %arg6: memref<4xf32, #tpu.memory_space<smem>>, %arg7: memref<4xf32, #tpu.memory_space<smem>>, %arg8: memref<1xf32, #tpu.memory_space<smem>>, %arg9: memref<1x1x128xf32, #tpu.memory_space<vmem>>) attributes {dimension_semantics = [#tpu.dimension_semantics<parallel>], iteration_bounds = array<i64: 1>, scalar_prefetch = 0 : i64, scratch_operands = 0 : i64, tpu.core_type = #tpu.core_type<tc>, window_params = [{transform_indices = @transform_0, window_bounds = array<i64: 16, 16, 128>}, {transform_indices = @transform_1, window_bounds = array<i64: 10, 16, 128>}, {transform_indices = @transform_2, window_bounds = array<i64: 10, 8>}, {transform_indices = @transform_3, window_bounds = array<i64: 8>}, {transform_indices = @transform_4, window_bounds = array<i64: 8, 4>}, {transform_indices = @transform_5, window_bounds = array<i64: 4>}, {transform_indices = @transform_6, window_bounds = array<i64: 4>}, {transform_indices = @transform_7, window_bounds = array<i64: 1>}, {transform_indices = @transform_8, window_bounds = array<i64: 1, 1, 128>}]} {
    %c0 = arith.constant 0 : index
    %c0_0 = arith.constant 0 : index
    %c0_1 = arith.constant 0 : index
    %0 = vector.load %arg1[%c0, %c0_0, %c0_1] : memref<16x16x128xi8, #tpu.memory_space<vmem>>, vector<16x16x128xi8>
    %1 = arith.sitofp %0 : vector<16x16x128xi8> to vector<16x16x128xf32>
    %cst = arith.constant dense<0.000000e+00> : vector<16x128xf32>
    %2 = vector.multi_reduction <add>, %1, %cst [0] : vector<16x16x128xf32> to vector<16x128xf32>
    %cst_2 = arith.constant 1.000000e+00 : f32
    %3 = vector.broadcast %cst_2 : f32 to vector<16x128xf32>
    %4 = arith.maximumf %2, %3 : vector<16x128xf32>
    %5 = math.rsqrt %4 : vector<16x128xf32>
    %cst_3 = arith.constant dense<0.000000e+00> : vector<16x128xf32>
    %6 = vector.multi_reduction <add>, %1, %cst_3 [1] : vector<16x16x128xf32> to vector<16x128xf32>
    %7 = vector.shape_cast %6 : vector<16x128xf32> to vector<16x1x128xf32>
    %cst_4 = arith.constant 1.000000e+00 : f32
    %8 = vector.broadcast %cst_4 : f32 to vector<16x1x128xf32>
    %9 = arith.maximumf %7, %8 : vector<16x1x128xf32>
    %10 = math.rsqrt %9 : vector<16x1x128xf32>
    %11 = vector.broadcast %10 : vector<16x1x128xf32> to vector<16x16x128xf32>
    %12 = arith.mulf %1, %11 : vector<16x16x128xf32>
    %c0_5 = arith.constant 0 : index
    %c0_6 = arith.constant 0 : index
    %c0_7 = arith.constant 0 : index
    %13 = vector.load %arg2[%c0_5, %c0_6, %c0_7] : memref<10x16x128xf32, #tpu.memory_space<vmem>>, vector<10x16x128xf32>
    %14 = vector.extract_strided_slice %13 {offsets = [0, 0, 0], sizes = [1, 16, 128], strides = [1, 1, 1]} : vector<10x16x128xf32> to vector<1x16x128xf32>
    %15 = vector.shape_cast %14 : vector<1x16x128xf32> to vector<16x128xf32>
    %c0_8 = arith.constant 0 : index
    %c0_9 = arith.constant 0 : index
    %16 = memref.load %arg3[%c0_8, %c0_9] : memref<10x8xf32, #tpu.memory_space<smem>>
    %17 = vector.broadcast %16 : f32 to vector<16x128xf32>
    %18 = arith.mulf %15, %17 : vector<16x128xf32>
    %19 = vector.extract_strided_slice %13 {offsets = [1, 0, 0], sizes = [1, 16, 128], strides = [1, 1, 1]} : vector<10x16x128xf32> to vector<1x16x128xf32>
    %20 = vector.shape_cast %19 : vector<1x16x128xf32> to vector<16x128xf32>
    %c1 = arith.constant 1 : index
    %c0_10 = arith.constant 0 : index
    %21 = memref.load %arg3[%c1, %c0_10] : memref<10x8xf32, #tpu.memory_space<smem>>
    %22 = vector.broadcast %21 : f32 to vector<16x128xf32>
    %23 = arith.mulf %20, %22 : vector<16x128xf32>
    %24 = arith.addf %18, %23 : vector<16x128xf32>
    %25 = vector.extract_strided_slice %13 {offsets = [2, 0, 0], sizes = [1, 16, 128], strides = [1, 1, 1]} : vector<10x16x128xf32> to vector<1x16x128xf32>
    %26 = vector.shape_cast %25 : vector<1x16x128xf32> to vector<16x128xf32>
    %c2 = arith.constant 2 : index
    %c0_11 = arith.constant 0 : index
    %27 = memref.load %arg3[%c2, %c0_11] : memref<10x8xf32, #tpu.memory_space<smem>>
    %28 = vector.broadcast %27 : f32 to vector<16x128xf32>
    %29 = arith.mulf %26, %28 : vector<16x128xf32>
    %30 = arith.addf %24, %29 : vector<16x128xf32>
    %31 = vector.extract_strided_slice %13 {offsets = [3, 0, 0], sizes = [1, 16, 128], strides = [1, 1, 1]} : vector<10x16x128xf32> to vector<1x16x128xf32>
    %32 = vector.shape_cast %31 : vector<1x16x128xf32> to vector<16x128xf32>
    %c3 = arith.constant 3 : index
    %c0_12 = arith.constant 0 : index
    %33 = memref.load %arg3[%c3, %c0_12] : memref<10x8xf32, #tpu.memory_space<smem>>
    %34 = vector.broadcast %33 : f32 to vector<16x128xf32>
    %35 = arith.mulf %32, %34 : vector<16x128xf32>
    %36 = arith.addf %30, %35 : vector<16x128xf32>
    %37 = vector.extract_strided_slice %13 {offsets = [4, 0, 0], sizes = [1, 16, 128], strides = [1, 1, 1]} : vector<10x16x128xf32> to vector<1x16x128xf32>
    %38 = vector.shape_cast %37 : vector<1x16x128xf32> to vector<16x128xf32>
    %c4 = arith.constant 4 : index
    %c0_13 = arith.constant 0 : index
    %39 = memref.load %arg3[%c4, %c0_13] : memref<10x8xf32, #tpu.memory_space<smem>>
    %40 = vector.broadcast %39 : f32 to vector<16x128xf32>
    %41 = arith.mulf %38, %40 : vector<16x128xf32>
    %42 = arith.addf %36, %41 : vector<16x128xf32>
    %43 = vector.extract_strided_slice %13 {offsets = [5, 0, 0], sizes = [1, 16, 128], strides = [1, 1, 1]} : vector<10x16x128xf32> to vector<1x16x128xf32>
    %44 = vector.shape_cast %43 : vector<1x16x128xf32> to vector<16x128xf32>
    %c5 = arith.constant 5 : index
    %c0_14 = arith.constant 0 : index
    %45 = memref.load %arg3[%c5, %c0_14] : memref<10x8xf32, #tpu.memory_space<smem>>
    %46 = vector.broadcast %45 : f32 to vector<16x128xf32>
    %47 = arith.mulf %44, %46 : vector<16x128xf32>
    %48 = arith.addf %42, %47 : vector<16x128xf32>
    %49 = vector.extract_strided_slice %13 {offsets = [6, 0, 0], sizes = [1, 16, 128], strides = [1, 1, 1]} : vector<10x16x128xf32> to vector<1x16x128xf32>
    %50 = vector.shape_cast %49 : vector<1x16x128xf32> to vector<16x128xf32>
    %c6 = arith.constant 6 : index
    %c0_15 = arith.constant 0 : index
    %51 = memref.load %arg3[%c6, %c0_15] : memref<10x8xf32, #tpu.memory_space<smem>>
    %52 = vector.broadcast %51 : f32 to vector<16x128xf32>
    %53 = arith.mulf %50, %52 : vector<16x128xf32>
    %54 = arith.addf %48, %53 : vector<16x128xf32>
    %55 = vector.extract_strided_slice %13 {offsets = [7, 0, 0], sizes = [1, 16, 128], strides = [1, 1, 1]} : vector<10x16x128xf32> to vector<1x16x128xf32>
    %56 = vector.shape_cast %55 : vector<1x16x128xf32> to vector<16x128xf32>
    %c7 = arith.constant 7 : index
    %c0_16 = arith.constant 0 : index
    %57 = memref.load %arg3[%c7, %c0_16] : memref<10x8xf32, #tpu.memory_space<smem>>
    %58 = vector.broadcast %57 : f32 to vector<16x128xf32>
    %59 = arith.mulf %56, %58 : vector<16x128xf32>
    %60 = arith.addf %54, %59 : vector<16x128xf32>
    %61 = vector.extract_strided_slice %13 {offsets = [8, 0, 0], sizes = [1, 16, 128], strides = [1, 1, 1]} : vector<10x16x128xf32> to vector<1x16x128xf32>
    %62 = vector.shape_cast %61 : vector<1x16x128xf32> to vector<16x128xf32>
    %c8 = arith.constant 8 : index
    %c0_17 = arith.constant 0 : index
    %63 = memref.load %arg3[%c8, %c0_17] : memref<10x8xf32, #tpu.memory_space<smem>>
    %64 = vector.broadcast %63 : f32 to vector<16x128xf32>
    %65 = arith.mulf %62, %64 : vector<16x128xf32>
    %66 = arith.addf %60, %65 : vector<16x128xf32>
    %67 = vector.extract_strided_slice %13 {offsets = [9, 0, 0], sizes = [1, 16, 128], strides = [1, 1, 1]} : vector<10x16x128xf32> to vector<1x16x128xf32>
    %68 = vector.shape_cast %67 : vector<1x16x128xf32> to vector<16x128xf32>
    %c9 = arith.constant 9 : index
    %c0_18 = arith.constant 0 : index
    %69 = memref.load %arg3[%c9, %c0_18] : memref<10x8xf32, #tpu.memory_space<smem>>
    %70 = vector.broadcast %69 : f32 to vector<16x128xf32>
    %71 = arith.mulf %68, %70 : vector<16x128xf32>
    %72 = arith.addf %66, %71 : vector<16x128xf32>
    %73 = vector.shape_cast %72 : vector<16x128xf32> to vector<16x1x128xf32>
    %74 = vector.broadcast %73 : vector<16x1x128xf32> to vector<16x16x128xf32>
    %75 = arith.mulf %12, %74 : vector<16x16x128xf32>
    %cst_19 = arith.constant dense<0.000000e+00> : vector<16x128xf32>
    %76 = vector.multi_reduction <add>, %75, %cst_19 [0] : vector<16x16x128xf32> to vector<16x128xf32>
    %77 = arith.mulf %76, %5 : vector<16x128xf32>
    %c0_20 = arith.constant 0 : index
    %78 = memref.load %arg4[%c0_20] : memref<8xf32, #tpu.memory_space<smem>>
    %79 = vector.broadcast %78 : f32 to vector<16x128xf32>
    %80 = arith.addf %77, %79 : vector<16x128xf32>
    %cst_21 = arith.constant 0.000000e+00 : f32
    %81 = vector.broadcast %cst_21 : f32 to vector<16x128xf32>
    %82 = arith.maximumf %80, %81 : vector<16x128xf32>
    %83 = vector.extract_strided_slice %13 {offsets = [0, 0, 0], sizes = [1, 16, 128], strides = [1, 1, 1]} : vector<10x16x128xf32> to vector<1x16x128xf32>
    %84 = vector.shape_cast %83 : vector<1x16x128xf32> to vector<16x128xf32>
    %c0_22 = arith.constant 0 : index
    %c1_23 = arith.constant 1 : index
    %85 = memref.load %arg3[%c0_22, %c1_23] : memref<10x8xf32, #tpu.memory_space<smem>>
    %86 = vector.broadcast %85 : f32 to vector<16x128xf32>
    %87 = arith.mulf %84, %86 : vector<16x128xf32>
    %88 = vector.extract_strided_slice %13 {offsets = [1, 0, 0], sizes = [1, 16, 128], strides = [1, 1, 1]} : vector<10x16x128xf32> to vector<1x16x128xf32>
    %89 = vector.shape_cast %88 : vector<1x16x128xf32> to vector<16x128xf32>
    %c1_24 = arith.constant 1 : index
    %c1_25 = arith.constant 1 : index
    %90 = memref.load %arg3[%c1_24, %c1_25] : memref<10x8xf32, #tpu.memory_space<smem>>
    %91 = vector.broadcast %90 : f32 to vector<16x128xf32>
    %92 = arith.mulf %89, %91 : vector<16x128xf32>
    %93 = arith.addf %87, %92 : vector<16x128xf32>
    %94 = vector.extract_strided_slice %13 {offsets = [2, 0, 0], sizes = [1, 16, 128], strides = [1, 1, 1]} : vector<10x16x128xf32> to vector<1x16x128xf32>
    %95 = vector.shape_cast %94 : vector<1x16x128xf32> to vector<16x128xf32>
    %c2_26 = arith.constant 2 : index
    %c1_27 = arith.constant 1 : index
    %96 = memref.load %arg3[%c2_26, %c1_27] : memref<10x8xf32, #tpu.memory_space<smem>>
    %97 = vector.broadcast %96 : f32 to vector<16x128xf32>
    %98 = arith.mulf %95, %97 : vector<16x128xf32>
    %99 = arith.addf %93, %98 : vector<16x128xf32>
    %100 = vector.extract_strided_slice %13 {offsets = [3, 0, 0], sizes = [1, 16, 128], strides = [1, 1, 1]} : vector<10x16x128xf32> to vector<1x16x128xf32>
    %101 = vector.shape_cast %100 : vector<1x16x128xf32> to vector<16x128xf32>
    %c3_28 = arith.constant 3 : index
    %c1_29 = arith.constant 1 : index
    %102 = memref.load %arg3[%c3_28, %c1_29] : memref<10x8xf32, #tpu.memory_space<smem>>
    %103 = vector.broadcast %102 : f32 to vector<16x128xf32>
    %104 = arith.mulf %101, %103 : vector<16x128xf32>
    %105 = arith.addf %99, %104 : vector<16x128xf32>
    %106 = vector.extract_strided_slice %13 {offsets = [4, 0, 0], sizes = [1, 16, 128], strides = [1, 1, 1]} : vector<10x16x128xf32> to vector<1x16x128xf32>
    %107 = vector.shape_cast %106 : vector<1x16x128xf32> to vector<16x128xf32>
    %c4_30 = arith.constant 4 : index
    %c1_31 = arith.constant 1 : index
    %108 = memref.load %arg3[%c4_30, %c1_31] : memref<10x8xf32, #tpu.memory_space<smem>>
    %109 = vector.broadcast %108 : f32 to vector<16x128xf32>
    %110 = arith.mulf %107, %109 : vector<16x128xf32>
    %111 = arith.addf %105, %110 : vector<16x128xf32>
    %112 = vector.extract_strided_slice %13 {offsets = [5, 0, 0], sizes = [1, 16, 128], strides = [1, 1, 1]} : vector<10x16x128xf32> to vector<1x16x128xf32>
    %113 = vector.shape_cast %112 : vector<1x16x128xf32> to vector<16x128xf32>
    %c5_32 = arith.constant 5 : index
    %c1_33 = arith.constant 1 : index
    %114 = memref.load %arg3[%c5_32, %c1_33] : memref<10x8xf32, #tpu.memory_space<smem>>
    %115 = vector.broadcast %114 : f32 to vector<16x128xf32>
    %116 = arith.mulf %113, %115 : vector<16x128xf32>
    %117 = arith.addf %111, %116 : vector<16x128xf32>
    %118 = vector.extract_strided_slice %13 {offsets = [6, 0, 0], sizes = [1, 16, 128], strides = [1, 1, 1]} : vector<10x16x128xf32> to vector<1x16x128xf32>
    %119 = vector.shape_cast %118 : vector<1x16x128xf32> to vector<16x128xf32>
    %c6_34 = arith.constant 6 : index
    %c1_35 = arith.constant 1 : index
    %120 = memref.load %arg3[%c6_34, %c1_35] : memref<10x8xf32, #tpu.memory_space<smem>>
    %121 = vector.broadcast %120 : f32 to vector<16x128xf32>
    %122 = arith.mulf %119, %121 : vector<16x128xf32>
    %123 = arith.addf %117, %122 : vector<16x128xf32>
    %124 = vector.extract_strided_slice %13 {offsets = [7, 0, 0], sizes = [1, 16, 128], strides = [1, 1, 1]} : vector<10x16x128xf32> to vector<1x16x128xf32>
    %125 = vector.shape_cast %124 : vector<1x16x128xf32> to vector<16x128xf32>
    %c7_36 = arith.constant 7 : index
    %c1_37 = arith.constant 1 : index
    %126 = memref.load %arg3[%c7_36, %c1_37] : memref<10x8xf32, #tpu.memory_space<smem>>
    %127 = vector.broadcast %126 : f32 to vector<16x128xf32>
    %128 = arith.mulf %125, %127 : vector<16x128xf32>
    %129 = arith.addf %123, %128 : vector<16x128xf32>
    %130 = vector.extract_strided_slice %13 {offsets = [8, 0, 0], sizes = [1, 16, 128], strides = [1, 1, 1]} : vector<10x16x128xf32> to vector<1x16x128xf32>
    %131 = vector.shape_cast %130 : vector<1x16x128xf32> to vector<16x128xf32>
    %c8_38 = arith.constant 8 : index
    %c1_39 = arith.constant 1 : index
    %132 = memref.load %arg3[%c8_38, %c1_39] : memref<10x8xf32, #tpu.memory_space<smem>>
    %133 = vector.broadcast %132 : f32 to vector<16x128xf32>
    %134 = arith.mulf %131, %133 : vector<16x128xf32>
    %135 = arith.addf %129, %134 : vector<16x128xf32>
    %136 = vector.extract_strided_slice %13 {offsets = [9, 0, 0], sizes = [1, 16, 128], strides = [1, 1, 1]} : vector<10x16x128xf32> to vector<1x16x128xf32>
    %137 = vector.shape_cast %136 : vector<1x16x128xf32> to vector<16x128xf32>
    %c9_40 = arith.constant 9 : index
    %c1_41 = arith.constant 1 : index
    %138 = memref.load %arg3[%c9_40, %c1_41] : memref<10x8xf32, #tpu.memory_space<smem>>
    %139 = vector.broadcast %138 : f32 to vector<16x128xf32>
    %140 = arith.mulf %137, %139 : vector<16x128xf32>
    %141 = arith.addf %135, %140 : vector<16x128xf32>
    %142 = vector.shape_cast %141 : vector<16x128xf32> to vector<16x1x128xf32>
    %143 = vector.broadcast %142 : vector<16x1x128xf32> to vector<16x16x128xf32>
    %144 = arith.mulf %12, %143 : vector<16x16x128xf32>
    %cst_42 = arith.constant dense<0.000000e+00> : vector<16x128xf32>
    %145 = vector.multi_reduction <add>, %144, %cst_42 [0] : vector<16x16x128xf32> to vector<16x128xf32>
    %146 = arith.mulf %145, %5 : vector<16x128xf32>
    %c1_43 = arith.constant 1 : index
    %147 = memref.load %arg4[%c1_43] : memref<8xf32, #tpu.memory_space<smem>>
    %148 = vector.broadcast %147 : f32 to vector<16x128xf32>
    %149 = arith.addf %146, %148 : vector<16x128xf32>
    %cst_44 = arith.constant 0.000000e+00 : f32
    %150 = vector.broadcast %cst_44 : f32 to vector<16x128xf32>
    %151 = arith.maximumf %149, %150 : vector<16x128xf32>
    %152 = vector.extract_strided_slice %13 {offsets = [0, 0, 0], sizes = [1, 16, 128], strides = [1, 1, 1]} : vector<10x16x128xf32> to vector<1x16x128xf32>
    %153 = vector.shape_cast %152 : vector<1x16x128xf32> to vector<16x128xf32>
    %c0_45 = arith.constant 0 : index
    %c2_46 = arith.constant 2 : index
    %154 = memref.load %arg3[%c0_45, %c2_46] : memref<10x8xf32, #tpu.memory_space<smem>>
    %155 = vector.broadcast %154 : f32 to vector<16x128xf32>
    %156 = arith.mulf %153, %155 : vector<16x128xf32>
    %157 = vector.extract_strided_slice %13 {offsets = [1, 0, 0], sizes = [1, 16, 128], strides = [1, 1, 1]} : vector<10x16x128xf32> to vector<1x16x128xf32>
    %158 = vector.shape_cast %157 : vector<1x16x128xf32> to vector<16x128xf32>
    %c1_47 = arith.constant 1 : index
    %c2_48 = arith.constant 2 : index
    %159 = memref.load %arg3[%c1_47, %c2_48] : memref<10x8xf32, #tpu.memory_space<smem>>
    %160 = vector.broadcast %159 : f32 to vector<16x128xf32>
    %161 = arith.mulf %158, %160 : vector<16x128xf32>
    %162 = arith.addf %156, %161 : vector<16x128xf32>
    %163 = vector.extract_strided_slice %13 {offsets = [2, 0, 0], sizes = [1, 16, 128], strides = [1, 1, 1]} : vector<10x16x128xf32> to vector<1x16x128xf32>
    %164 = vector.shape_cast %163 : vector<1x16x128xf32> to vector<16x128xf32>
    %c2_49 = arith.constant 2 : index
    %c2_50 = arith.constant 2 : index
    %165 = memref.load %arg3[%c2_49, %c2_50] : memref<10x8xf32, #tpu.memory_space<smem>>
    %166 = vector.broadcast %165 : f32 to vector<16x128xf32>
    %167 = arith.mulf %164, %166 : vector<16x128xf32>
    %168 = arith.addf %162, %167 : vector<16x128xf32>
    %169 = vector.extract_strided_slice %13 {offsets = [3, 0, 0], sizes = [1, 16, 128], strides = [1, 1, 1]} : vector<10x16x128xf32> to vector<1x16x128xf32>
    %170 = vector.shape_cast %169 : vector<1x16x128xf32> to vector<16x128xf32>
    %c3_51 = arith.constant 3 : index
    %c2_52 = arith.constant 2 : index
    %171 = memref.load %arg3[%c3_51, %c2_52] : memref<10x8xf32, #tpu.memory_space<smem>>
    %172 = vector.broadcast %171 : f32 to vector<16x128xf32>
    %173 = arith.mulf %170, %172 : vector<16x128xf32>
    %174 = arith.addf %168, %173 : vector<16x128xf32>
    %175 = vector.extract_strided_slice %13 {offsets = [4, 0, 0], sizes = [1, 16, 128], strides = [1, 1, 1]} : vector<10x16x128xf32> to vector<1x16x128xf32>
    %176 = vector.shape_cast %175 : vector<1x16x128xf32> to vector<16x128xf32>
    %c4_53 = arith.constant 4 : index
    %c2_54 = arith.constant 2 : index
    %177 = memref.load %arg3[%c4_53, %c2_54] : memref<10x8xf32, #tpu.memory_space<smem>>
    %178 = vector.broadcast %177 : f32 to vector<16x128xf32>
    %179 = arith.mulf %176, %178 : vector<16x128xf32>
    %180 = arith.addf %174, %179 : vector<16x128xf32>
    %181 = vector.extract_strided_slice %13 {offsets = [5, 0, 0], sizes = [1, 16, 128], strides = [1, 1, 1]} : vector<10x16x128xf32> to vector<1x16x128xf32>
    %182 = vector.shape_cast %181 : vector<1x16x128xf32> to vector<16x128xf32>
    %c5_55 = arith.constant 5 : index
    %c2_56 = arith.constant 2 : index
    %183 = memref.load %arg3[%c5_55, %c2_56] : memref<10x8xf32, #tpu.memory_space<smem>>
    %184 = vector.broadcast %183 : f32 to vector<16x128xf32>
    %185 = arith.mulf %182, %184 : vector<16x128xf32>
    %186 = arith.addf %180, %185 : vector<16x128xf32>
    %187 = vector.extract_strided_slice %13 {offsets = [6, 0, 0], sizes = [1, 16, 128], strides = [1, 1, 1]} : vector<10x16x128xf32> to vector<1x16x128xf32>
    %188 = vector.shape_cast %187 : vector<1x16x128xf32> to vector<16x128xf32>
    %c6_57 = arith.constant 6 : index
    %c2_58 = arith.constant 2 : index
    %189 = memref.load %arg3[%c6_57, %c2_58] : memref<10x8xf32, #tpu.memory_space<smem>>
    %190 = vector.broadcast %189 : f32 to vector<16x128xf32>
    %191 = arith.mulf %188, %190 : vector<16x128xf32>
    %192 = arith.addf %186, %191 : vector<16x128xf32>
    %193 = vector.extract_strided_slice %13 {offsets = [7, 0, 0], sizes = [1, 16, 128], strides = [1, 1, 1]} : vector<10x16x128xf32> to vector<1x16x128xf32>
    %194 = vector.shape_cast %193 : vector<1x16x128xf32> to vector<16x128xf32>
    %c7_59 = arith.constant 7 : index
    %c2_60 = arith.constant 2 : index
    %195 = memref.load %arg3[%c7_59, %c2_60] : memref<10x8xf32, #tpu.memory_space<smem>>
    %196 = vector.broadcast %195 : f32 to vector<16x128xf32>
    %197 = arith.mulf %194, %196 : vector<16x128xf32>
    %198 = arith.addf %192, %197 : vector<16x128xf32>
    %199 = vector.extract_strided_slice %13 {offsets = [8, 0, 0], sizes = [1, 16, 128], strides = [1, 1, 1]} : vector<10x16x128xf32> to vector<1x16x128xf32>
    %200 = vector.shape_cast %199 : vector<1x16x128xf32> to vector<16x128xf32>
    %c8_61 = arith.constant 8 : index
    %c2_62 = arith.constant 2 : index
    %201 = memref.load %arg3[%c8_61, %c2_62] : memref<10x8xf32, #tpu.memory_space<smem>>
    %202 = vector.broadcast %201 : f32 to vector<16x128xf32>
    %203 = arith.mulf %200, %202 : vector<16x128xf32>
    %204 = arith.addf %198, %203 : vector<16x128xf32>
    %205 = vector.extract_strided_slice %13 {offsets = [9, 0, 0], sizes = [1, 16, 128], strides = [1, 1, 1]} : vector<10x16x128xf32> to vector<1x16x128xf32>
    %206 = vector.shape_cast %205 : vector<1x16x128xf32> to vector<16x128xf32>
    %c9_63 = arith.constant 9 : index
    %c2_64 = arith.constant 2 : index
    %207 = memref.load %arg3[%c9_63, %c2_64] : memref<10x8xf32, #tpu.memory_space<smem>>
    %208 = vector.broadcast %207 : f32 to vector<16x128xf32>
    %209 = arith.mulf %206, %208 : vector<16x128xf32>
    %210 = arith.addf %204, %209 : vector<16x128xf32>
    %211 = vector.shape_cast %210 : vector<16x128xf32> to vector<16x1x128xf32>
    %212 = vector.broadcast %211 : vector<16x1x128xf32> to vector<16x16x128xf32>
    %213 = arith.mulf %12, %212 : vector<16x16x128xf32>
    %cst_65 = arith.constant dense<0.000000e+00> : vector<16x128xf32>
    %214 = vector.multi_reduction <add>, %213, %cst_65 [0] : vector<16x16x128xf32> to vector<16x128xf32>
    %215 = arith.mulf %214, %5 : vector<16x128xf32>
    %c2_66 = arith.constant 2 : index
    %216 = memref.load %arg4[%c2_66] : memref<8xf32, #tpu.memory_space<smem>>
    %217 = vector.broadcast %216 : f32 to vector<16x128xf32>
    %218 = arith.addf %215, %217 : vector<16x128xf32>
    %cst_67 = arith.constant 0.000000e+00 : f32
    %219 = vector.broadcast %cst_67 : f32 to vector<16x128xf32>
    %220 = arith.maximumf %218, %219 : vector<16x128xf32>
    %221 = vector.extract_strided_slice %13 {offsets = [0, 0, 0], sizes = [1, 16, 128], strides = [1, 1, 1]} : vector<10x16x128xf32> to vector<1x16x128xf32>
    %222 = vector.shape_cast %221 : vector<1x16x128xf32> to vector<16x128xf32>
    %c0_68 = arith.constant 0 : index
    %c3_69 = arith.constant 3 : index
    %223 = memref.load %arg3[%c0_68, %c3_69] : memref<10x8xf32, #tpu.memory_space<smem>>
    %224 = vector.broadcast %223 : f32 to vector<16x128xf32>
    %225 = arith.mulf %222, %224 : vector<16x128xf32>
    %226 = vector.extract_strided_slice %13 {offsets = [1, 0, 0], sizes = [1, 16, 128], strides = [1, 1, 1]} : vector<10x16x128xf32> to vector<1x16x128xf32>
    %227 = vector.shape_cast %226 : vector<1x16x128xf32> to vector<16x128xf32>
    %c1_70 = arith.constant 1 : index
    %c3_71 = arith.constant 3 : index
    %228 = memref.load %arg3[%c1_70, %c3_71] : memref<10x8xf32, #tpu.memory_space<smem>>
    %229 = vector.broadcast %228 : f32 to vector<16x128xf32>
    %230 = arith.mulf %227, %229 : vector<16x128xf32>
    %231 = arith.addf %225, %230 : vector<16x128xf32>
    %232 = vector.extract_strided_slice %13 {offsets = [2, 0, 0], sizes = [1, 16, 128], strides = [1, 1, 1]} : vector<10x16x128xf32> to vector<1x16x128xf32>
    %233 = vector.shape_cast %232 : vector<1x16x128xf32> to vector<16x128xf32>
    %c2_72 = arith.constant 2 : index
    %c3_73 = arith.constant 3 : index
    %234 = memref.load %arg3[%c2_72, %c3_73] : memref<10x8xf32, #tpu.memory_space<smem>>
    %235 = vector.broadcast %234 : f32 to vector<16x128xf32>
    %236 = arith.mulf %233, %235 : vector<16x128xf32>
    %237 = arith.addf %231, %236 : vector<16x128xf32>
    %238 = vector.extract_strided_slice %13 {offsets = [3, 0, 0], sizes = [1, 16, 128], strides = [1, 1, 1]} : vector<10x16x128xf32> to vector<1x16x128xf32>
    %239 = vector.shape_cast %238 : vector<1x16x128xf32> to vector<16x128xf32>
    %c3_74 = arith.constant 3 : index
    %c3_75 = arith.constant 3 : index
    %240 = memref.load %arg3[%c3_74, %c3_75] : memref<10x8xf32, #tpu.memory_space<smem>>
    %241 = vector.broadcast %240 : f32 to vector<16x128xf32>
    %242 = arith.mulf %239, %241 : vector<16x128xf32>
    %243 = arith.addf %237, %242 : vector<16x128xf32>
    %244 = vector.extract_strided_slice %13 {offsets = [4, 0, 0], sizes = [1, 16, 128], strides = [1, 1, 1]} : vector<10x16x128xf32> to vector<1x16x128xf32>
    %245 = vector.shape_cast %244 : vector<1x16x128xf32> to vector<16x128xf32>
    %c4_76 = arith.constant 4 : index
    %c3_77 = arith.constant 3 : index
    %246 = memref.load %arg3[%c4_76, %c3_77] : memref<10x8xf32, #tpu.memory_space<smem>>
    %247 = vector.broadcast %246 : f32 to vector<16x128xf32>
    %248 = arith.mulf %245, %247 : vector<16x128xf32>
    %249 = arith.addf %243, %248 : vector<16x128xf32>
    %250 = vector.extract_strided_slice %13 {offsets = [5, 0, 0], sizes = [1, 16, 128], strides = [1, 1, 1]} : vector<10x16x128xf32> to vector<1x16x128xf32>
    %251 = vector.shape_cast %250 : vector<1x16x128xf32> to vector<16x128xf32>
    %c5_78 = arith.constant 5 : index
    %c3_79 = arith.constant 3 : index
    %252 = memref.load %arg3[%c5_78, %c3_79] : memref<10x8xf32, #tpu.memory_space<smem>>
    %253 = vector.broadcast %252 : f32 to vector<16x128xf32>
    %254 = arith.mulf %251, %253 : vector<16x128xf32>
    %255 = arith.addf %249, %254 : vector<16x128xf32>
    %256 = vector.extract_strided_slice %13 {offsets = [6, 0, 0], sizes = [1, 16, 128], strides = [1, 1, 1]} : vector<10x16x128xf32> to vector<1x16x128xf32>
    %257 = vector.shape_cast %256 : vector<1x16x128xf32> to vector<16x128xf32>
    %c6_80 = arith.constant 6 : index
    %c3_81 = arith.constant 3 : index
    %258 = memref.load %arg3[%c6_80, %c3_81] : memref<10x8xf32, #tpu.memory_space<smem>>
    %259 = vector.broadcast %258 : f32 to vector<16x128xf32>
    %260 = arith.mulf %257, %259 : vector<16x128xf32>
    %261 = arith.addf %255, %260 : vector<16x128xf32>
    %262 = vector.extract_strided_slice %13 {offsets = [7, 0, 0], sizes = [1, 16, 128], strides = [1, 1, 1]} : vector<10x16x128xf32> to vector<1x16x128xf32>
    %263 = vector.shape_cast %262 : vector<1x16x128xf32> to vector<16x128xf32>
    %c7_82 = arith.constant 7 : index
    %c3_83 = arith.constant 3 : index
    %264 = memref.load %arg3[%c7_82, %c3_83] : memref<10x8xf32, #tpu.memory_space<smem>>
    %265 = vector.broadcast %264 : f32 to vector<16x128xf32>
    %266 = arith.mulf %263, %265 : vector<16x128xf32>
    %267 = arith.addf %261, %266 : vector<16x128xf32>
    %268 = vector.extract_strided_slice %13 {offsets = [8, 0, 0], sizes = [1, 16, 128], strides = [1, 1, 1]} : vector<10x16x128xf32> to vector<1x16x128xf32>
    %269 = vector.shape_cast %268 : vector<1x16x128xf32> to vector<16x128xf32>
    %c8_84 = arith.constant 8 : index
    %c3_85 = arith.constant 3 : index
    %270 = memref.load %arg3[%c8_84, %c3_85] : memref<10x8xf32, #tpu.memory_space<smem>>
    %271 = vector.broadcast %270 : f32 to vector<16x128xf32>
    %272 = arith.mulf %269, %271 : vector<16x128xf32>
    %273 = arith.addf %267, %272 : vector<16x128xf32>
    %274 = vector.extract_strided_slice %13 {offsets = [9, 0, 0], sizes = [1, 16, 128], strides = [1, 1, 1]} : vector<10x16x128xf32> to vector<1x16x128xf32>
    %275 = vector.shape_cast %274 : vector<1x16x128xf32> to vector<16x128xf32>
    %c9_86 = arith.constant 9 : index
    %c3_87 = arith.constant 3 : index
    %276 = memref.load %arg3[%c9_86, %c3_87] : memref<10x8xf32, #tpu.memory_space<smem>>
    %277 = vector.broadcast %276 : f32 to vector<16x128xf32>
    %278 = arith.mulf %275, %277 : vector<16x128xf32>
    %279 = arith.addf %273, %278 : vector<16x128xf32>
    %280 = vector.shape_cast %279 : vector<16x128xf32> to vector<16x1x128xf32>
    %281 = vector.broadcast %280 : vector<16x1x128xf32> to vector<16x16x128xf32>
    %282 = arith.mulf %12, %281 : vector<16x16x128xf32>
    %cst_88 = arith.constant dense<0.000000e+00> : vector<16x128xf32>
    %283 = vector.multi_reduction <add>, %282, %cst_88 [0] : vector<16x16x128xf32> to vector<16x128xf32>
    %284 = arith.mulf %283, %5 : vector<16x128xf32>
    %c3_89 = arith.constant 3 : index
    %285 = memref.load %arg4[%c3_89] : memref<8xf32, #tpu.memory_space<smem>>
    %286 = vector.broadcast %285 : f32 to vector<16x128xf32>
    %287 = arith.addf %284, %286 : vector<16x128xf32>
    %cst_90 = arith.constant 0.000000e+00 : f32
    %288 = vector.broadcast %cst_90 : f32 to vector<16x128xf32>
    %289 = arith.maximumf %287, %288 : vector<16x128xf32>
    %290 = vector.extract_strided_slice %13 {offsets = [0, 0, 0], sizes = [1, 16, 128], strides = [1, 1, 1]} : vector<10x16x128xf32> to vector<1x16x128xf32>
    %291 = vector.shape_cast %290 : vector<1x16x128xf32> to vector<16x128xf32>
    %c0_91 = arith.constant 0 : index
    %c4_92 = arith.constant 4 : index
    %292 = memref.load %arg3[%c0_91, %c4_92] : memref<10x8xf32, #tpu.memory_space<smem>>
    %293 = vector.broadcast %292 : f32 to vector<16x128xf32>
    %294 = arith.mulf %291, %293 : vector<16x128xf32>
    %295 = vector.extract_strided_slice %13 {offsets = [1, 0, 0], sizes = [1, 16, 128], strides = [1, 1, 1]} : vector<10x16x128xf32> to vector<1x16x128xf32>
    %296 = vector.shape_cast %295 : vector<1x16x128xf32> to vector<16x128xf32>
    %c1_93 = arith.constant 1 : index
    %c4_94 = arith.constant 4 : index
    %297 = memref.load %arg3[%c1_93, %c4_94] : memref<10x8xf32, #tpu.memory_space<smem>>
    %298 = vector.broadcast %297 : f32 to vector<16x128xf32>
    %299 = arith.mulf %296, %298 : vector<16x128xf32>
    %300 = arith.addf %294, %299 : vector<16x128xf32>
    %301 = vector.extract_strided_slice %13 {offsets = [2, 0, 0], sizes = [1, 16, 128], strides = [1, 1, 1]} : vector<10x16x128xf32> to vector<1x16x128xf32>
    %302 = vector.shape_cast %301 : vector<1x16x128xf32> to vector<16x128xf32>
    %c2_95 = arith.constant 2 : index
    %c4_96 = arith.constant 4 : index
    %303 = memref.load %arg3[%c2_95, %c4_96] : memref<10x8xf32, #tpu.memory_space<smem>>
    %304 = vector.broadcast %303 : f32 to vector<16x128xf32>
    %305 = arith.mulf %302, %304 : vector<16x128xf32>
    %306 = arith.addf %300, %305 : vector<16x128xf32>
    %307 = vector.extract_strided_slice %13 {offsets = [3, 0, 0], sizes = [1, 16, 128], strides = [1, 1, 1]} : vector<10x16x128xf32> to vector<1x16x128xf32>
    %308 = vector.shape_cast %307 : vector<1x16x128xf32> to vector<16x128xf32>
    %c3_97 = arith.constant 3 : index
    %c4_98 = arith.constant 4 : index
    %309 = memref.load %arg3[%c3_97, %c4_98] : memref<10x8xf32, #tpu.memory_space<smem>>
    %310 = vector.broadcast %309 : f32 to vector<16x128xf32>
    %311 = arith.mulf %308, %310 : vector<16x128xf32>
    %312 = arith.addf %306, %311 : vector<16x128xf32>
    %313 = vector.extract_strided_slice %13 {offsets = [4, 0, 0], sizes = [1, 16, 128], strides = [1, 1, 1]} : vector<10x16x128xf32> to vector<1x16x128xf32>
    %314 = vector.shape_cast %313 : vector<1x16x128xf32> to vector<16x128xf32>
    %c4_99 = arith.constant 4 : index
    %c4_100 = arith.constant 4 : index
    %315 = memref.load %arg3[%c4_99, %c4_100] : memref<10x8xf32, #tpu.memory_space<smem>>
    %316 = vector.broadcast %315 : f32 to vector<16x128xf32>
    %317 = arith.mulf %314, %316 : vector<16x128xf32>
    %318 = arith.addf %312, %317 : vector<16x128xf32>
    %319 = vector.extract_strided_slice %13 {offsets = [5, 0, 0], sizes = [1, 16, 128], strides = [1, 1, 1]} : vector<10x16x128xf32> to vector<1x16x128xf32>
    %320 = vector.shape_cast %319 : vector<1x16x128xf32> to vector<16x128xf32>
    %c5_101 = arith.constant 5 : index
    %c4_102 = arith.constant 4 : index
    %321 = memref.load %arg3[%c5_101, %c4_102] : memref<10x8xf32, #tpu.memory_space<smem>>
    %322 = vector.broadcast %321 : f32 to vector<16x128xf32>
    %323 = arith.mulf %320, %322 : vector<16x128xf32>
    %324 = arith.addf %318, %323 : vector<16x128xf32>
    %325 = vector.extract_strided_slice %13 {offsets = [6, 0, 0], sizes = [1, 16, 128], strides = [1, 1, 1]} : vector<10x16x128xf32> to vector<1x16x128xf32>
    %326 = vector.shape_cast %325 : vector<1x16x128xf32> to vector<16x128xf32>
    %c6_103 = arith.constant 6 : index
    %c4_104 = arith.constant 4 : index
    %327 = memref.load %arg3[%c6_103, %c4_104] : memref<10x8xf32, #tpu.memory_space<smem>>
    %328 = vector.broadcast %327 : f32 to vector<16x128xf32>
    %329 = arith.mulf %326, %328 : vector<16x128xf32>
    %330 = arith.addf %324, %329 : vector<16x128xf32>
    %331 = vector.extract_strided_slice %13 {offsets = [7, 0, 0], sizes = [1, 16, 128], strides = [1, 1, 1]} : vector<10x16x128xf32> to vector<1x16x128xf32>
    %332 = vector.shape_cast %331 : vector<1x16x128xf32> to vector<16x128xf32>
    %c7_105 = arith.constant 7 : index
    %c4_106 = arith.constant 4 : index
    %333 = memref.load %arg3[%c7_105, %c4_106] : memref<10x8xf32, #tpu.memory_space<smem>>
    %334 = vector.broadcast %333 : f32 to vector<16x128xf32>
    %335 = arith.mulf %332, %334 : vector<16x128xf32>
    %336 = arith.addf %330, %335 : vector<16x128xf32>
    %337 = vector.extract_strided_slice %13 {offsets = [8, 0, 0], sizes = [1, 16, 128], strides = [1, 1, 1]} : vector<10x16x128xf32> to vector<1x16x128xf32>
    %338 = vector.shape_cast %337 : vector<1x16x128xf32> to vector<16x128xf32>
    %c8_107 = arith.constant 8 : index
    %c4_108 = arith.constant 4 : index
    %339 = memref.load %arg3[%c8_107, %c4_108] : memref<10x8xf32, #tpu.memory_space<smem>>
    %340 = vector.broadcast %339 : f32 to vector<16x128xf32>
    %341 = arith.mulf %338, %340 : vector<16x128xf32>
    %342 = arith.addf %336, %341 : vector<16x128xf32>
    %343 = vector.extract_strided_slice %13 {offsets = [9, 0, 0], sizes = [1, 16, 128], strides = [1, 1, 1]} : vector<10x16x128xf32> to vector<1x16x128xf32>
    %344 = vector.shape_cast %343 : vector<1x16x128xf32> to vector<16x128xf32>
    %c9_109 = arith.constant 9 : index
    %c4_110 = arith.constant 4 : index
    %345 = memref.load %arg3[%c9_109, %c4_110] : memref<10x8xf32, #tpu.memory_space<smem>>
    %346 = vector.broadcast %345 : f32 to vector<16x128xf32>
    %347 = arith.mulf %344, %346 : vector<16x128xf32>
    %348 = arith.addf %342, %347 : vector<16x128xf32>
    %349 = vector.shape_cast %348 : vector<16x128xf32> to vector<16x1x128xf32>
    %350 = vector.broadcast %349 : vector<16x1x128xf32> to vector<16x16x128xf32>
    %351 = arith.mulf %12, %350 : vector<16x16x128xf32>
    %cst_111 = arith.constant dense<0.000000e+00> : vector<16x128xf32>
    %352 = vector.multi_reduction <add>, %351, %cst_111 [0] : vector<16x16x128xf32> to vector<16x128xf32>
    %353 = arith.mulf %352, %5 : vector<16x128xf32>
    %c4_112 = arith.constant 4 : index
    %354 = memref.load %arg4[%c4_112] : memref<8xf32, #tpu.memory_space<smem>>
    %355 = vector.broadcast %354 : f32 to vector<16x128xf32>
    %356 = arith.addf %353, %355 : vector<16x128xf32>
    %cst_113 = arith.constant 0.000000e+00 : f32
    %357 = vector.broadcast %cst_113 : f32 to vector<16x128xf32>
    %358 = arith.maximumf %356, %357 : vector<16x128xf32>
    %359 = vector.extract_strided_slice %13 {offsets = [0, 0, 0], sizes = [1, 16, 128], strides = [1, 1, 1]} : vector<10x16x128xf32> to vector<1x16x128xf32>
    %360 = vector.shape_cast %359 : vector<1x16x128xf32> to vector<16x128xf32>
    %c0_114 = arith.constant 0 : index
    %c5_115 = arith.constant 5 : index
    %361 = memref.load %arg3[%c0_114, %c5_115] : memref<10x8xf32, #tpu.memory_space<smem>>
    %362 = vector.broadcast %361 : f32 to vector<16x128xf32>
    %363 = arith.mulf %360, %362 : vector<16x128xf32>
    %364 = vector.extract_strided_slice %13 {offsets = [1, 0, 0], sizes = [1, 16, 128], strides = [1, 1, 1]} : vector<10x16x128xf32> to vector<1x16x128xf32>
    %365 = vector.shape_cast %364 : vector<1x16x128xf32> to vector<16x128xf32>
    %c1_116 = arith.constant 1 : index
    %c5_117 = arith.constant 5 : index
    %366 = memref.load %arg3[%c1_116, %c5_117] : memref<10x8xf32, #tpu.memory_space<smem>>
    %367 = vector.broadcast %366 : f32 to vector<16x128xf32>
    %368 = arith.mulf %365, %367 : vector<16x128xf32>
    %369 = arith.addf %363, %368 : vector<16x128xf32>
    %370 = vector.extract_strided_slice %13 {offsets = [2, 0, 0], sizes = [1, 16, 128], strides = [1, 1, 1]} : vector<10x16x128xf32> to vector<1x16x128xf32>
    %371 = vector.shape_cast %370 : vector<1x16x128xf32> to vector<16x128xf32>
    %c2_118 = arith.constant 2 : index
    %c5_119 = arith.constant 5 : index
    %372 = memref.load %arg3[%c2_118, %c5_119] : memref<10x8xf32, #tpu.memory_space<smem>>
    %373 = vector.broadcast %372 : f32 to vector<16x128xf32>
    %374 = arith.mulf %371, %373 : vector<16x128xf32>
    %375 = arith.addf %369, %374 : vector<16x128xf32>
    %376 = vector.extract_strided_slice %13 {offsets = [3, 0, 0], sizes = [1, 16, 128], strides = [1, 1, 1]} : vector<10x16x128xf32> to vector<1x16x128xf32>
    %377 = vector.shape_cast %376 : vector<1x16x128xf32> to vector<16x128xf32>
    %c3_120 = arith.constant 3 : index
    %c5_121 = arith.constant 5 : index
    %378 = memref.load %arg3[%c3_120, %c5_121] : memref<10x8xf32, #tpu.memory_space<smem>>
    %379 = vector.broadcast %378 : f32 to vector<16x128xf32>
    %380 = arith.mulf %377, %379 : vector<16x128xf32>
    %381 = arith.addf %375, %380 : vector<16x128xf32>
    %382 = vector.extract_strided_slice %13 {offsets = [4, 0, 0], sizes = [1, 16, 128], strides = [1, 1, 1]} : vector<10x16x128xf32> to vector<1x16x128xf32>
    %383 = vector.shape_cast %382 : vector<1x16x128xf32> to vector<16x128xf32>
    %c4_122 = arith.constant 4 : index
    %c5_123 = arith.constant 5 : index
    %384 = memref.load %arg3[%c4_122, %c5_123] : memref<10x8xf32, #tpu.memory_space<smem>>
    %385 = vector.broadcast %384 : f32 to vector<16x128xf32>
    %386 = arith.mulf %383, %385 : vector<16x128xf32>
    %387 = arith.addf %381, %386 : vector<16x128xf32>
    %388 = vector.extract_strided_slice %13 {offsets = [5, 0, 0], sizes = [1, 16, 128], strides = [1, 1, 1]} : vector<10x16x128xf32> to vector<1x16x128xf32>
    %389 = vector.shape_cast %388 : vector<1x16x128xf32> to vector<16x128xf32>
    %c5_124 = arith.constant 5 : index
    %c5_125 = arith.constant 5 : index
    %390 = memref.load %arg3[%c5_124, %c5_125] : memref<10x8xf32, #tpu.memory_space<smem>>
    %391 = vector.broadcast %390 : f32 to vector<16x128xf32>
    %392 = arith.mulf %389, %391 : vector<16x128xf32>
    %393 = arith.addf %387, %392 : vector<16x128xf32>
    %394 = vector.extract_strided_slice %13 {offsets = [6, 0, 0], sizes = [1, 16, 128], strides = [1, 1, 1]} : vector<10x16x128xf32> to vector<1x16x128xf32>
    %395 = vector.shape_cast %394 : vector<1x16x128xf32> to vector<16x128xf32>
    %c6_126 = arith.constant 6 : index
    %c5_127 = arith.constant 5 : index
    %396 = memref.load %arg3[%c6_126, %c5_127] : memref<10x8xf32, #tpu.memory_space<smem>>
    %397 = vector.broadcast %396 : f32 to vector<16x128xf32>
    %398 = arith.mulf %395, %397 : vector<16x128xf32>
    %399 = arith.addf %393, %398 : vector<16x128xf32>
    %400 = vector.extract_strided_slice %13 {offsets = [7, 0, 0], sizes = [1, 16, 128], strides = [1, 1, 1]} : vector<10x16x128xf32> to vector<1x16x128xf32>
    %401 = vector.shape_cast %400 : vector<1x16x128xf32> to vector<16x128xf32>
    %c7_128 = arith.constant 7 : index
    %c5_129 = arith.constant 5 : index
    %402 = memref.load %arg3[%c7_128, %c5_129] : memref<10x8xf32, #tpu.memory_space<smem>>
    %403 = vector.broadcast %402 : f32 to vector<16x128xf32>
    %404 = arith.mulf %401, %403 : vector<16x128xf32>
    %405 = arith.addf %399, %404 : vector<16x128xf32>
    %406 = vector.extract_strided_slice %13 {offsets = [8, 0, 0], sizes = [1, 16, 128], strides = [1, 1, 1]} : vector<10x16x128xf32> to vector<1x16x128xf32>
    %407 = vector.shape_cast %406 : vector<1x16x128xf32> to vector<16x128xf32>
    %c8_130 = arith.constant 8 : index
    %c5_131 = arith.constant 5 : index
    %408 = memref.load %arg3[%c8_130, %c5_131] : memref<10x8xf32, #tpu.memory_space<smem>>
    %409 = vector.broadcast %408 : f32 to vector<16x128xf32>
    %410 = arith.mulf %407, %409 : vector<16x128xf32>
    %411 = arith.addf %405, %410 : vector<16x128xf32>
    %412 = vector.extract_strided_slice %13 {offsets = [9, 0, 0], sizes = [1, 16, 128], strides = [1, 1, 1]} : vector<10x16x128xf32> to vector<1x16x128xf32>
    %413 = vector.shape_cast %412 : vector<1x16x128xf32> to vector<16x128xf32>
    %c9_132 = arith.constant 9 : index
    %c5_133 = arith.constant 5 : index
    %414 = memref.load %arg3[%c9_132, %c5_133] : memref<10x8xf32, #tpu.memory_space<smem>>
    %415 = vector.broadcast %414 : f32 to vector<16x128xf32>
    %416 = arith.mulf %413, %415 : vector<16x128xf32>
    %417 = arith.addf %411, %416 : vector<16x128xf32>
    %418 = vector.shape_cast %417 : vector<16x128xf32> to vector<16x1x128xf32>
    %419 = vector.broadcast %418 : vector<16x1x128xf32> to vector<16x16x128xf32>
    %420 = arith.mulf %12, %419 : vector<16x16x128xf32>
    %cst_134 = arith.constant dense<0.000000e+00> : vector<16x128xf32>
    %421 = vector.multi_reduction <add>, %420, %cst_134 [0] : vector<16x16x128xf32> to vector<16x128xf32>
    %422 = arith.mulf %421, %5 : vector<16x128xf32>
    %c5_135 = arith.constant 5 : index
    %423 = memref.load %arg4[%c5_135] : memref<8xf32, #tpu.memory_space<smem>>
    %424 = vector.broadcast %423 : f32 to vector<16x128xf32>
    %425 = arith.addf %422, %424 : vector<16x128xf32>
    %cst_136 = arith.constant 0.000000e+00 : f32
    %426 = vector.broadcast %cst_136 : f32 to vector<16x128xf32>
    %427 = arith.maximumf %425, %426 : vector<16x128xf32>
    %428 = vector.extract_strided_slice %13 {offsets = [0, 0, 0], sizes = [1, 16, 128], strides = [1, 1, 1]} : vector<10x16x128xf32> to vector<1x16x128xf32>
    %429 = vector.shape_cast %428 : vector<1x16x128xf32> to vector<16x128xf32>
    %c0_137 = arith.constant 0 : index
    %c6_138 = arith.constant 6 : index
    %430 = memref.load %arg3[%c0_137, %c6_138] : memref<10x8xf32, #tpu.memory_space<smem>>
    %431 = vector.broadcast %430 : f32 to vector<16x128xf32>
    %432 = arith.mulf %429, %431 : vector<16x128xf32>
    %433 = vector.extract_strided_slice %13 {offsets = [1, 0, 0], sizes = [1, 16, 128], strides = [1, 1, 1]} : vector<10x16x128xf32> to vector<1x16x128xf32>
    %434 = vector.shape_cast %433 : vector<1x16x128xf32> to vector<16x128xf32>
    %c1_139 = arith.constant 1 : index
    %c6_140 = arith.constant 6 : index
    %435 = memref.load %arg3[%c1_139, %c6_140] : memref<10x8xf32, #tpu.memory_space<smem>>
    %436 = vector.broadcast %435 : f32 to vector<16x128xf32>
    %437 = arith.mulf %434, %436 : vector<16x128xf32>
    %438 = arith.addf %432, %437 : vector<16x128xf32>
    %439 = vector.extract_strided_slice %13 {offsets = [2, 0, 0], sizes = [1, 16, 128], strides = [1, 1, 1]} : vector<10x16x128xf32> to vector<1x16x128xf32>
    %440 = vector.shape_cast %439 : vector<1x16x128xf32> to vector<16x128xf32>
    %c2_141 = arith.constant 2 : index
    %c6_142 = arith.constant 6 : index
    %441 = memref.load %arg3[%c2_141, %c6_142] : memref<10x8xf32, #tpu.memory_space<smem>>
    %442 = vector.broadcast %441 : f32 to vector<16x128xf32>
    %443 = arith.mulf %440, %442 : vector<16x128xf32>
    %444 = arith.addf %438, %443 : vector<16x128xf32>
    %445 = vector.extract_strided_slice %13 {offsets = [3, 0, 0], sizes = [1, 16, 128], strides = [1, 1, 1]} : vector<10x16x128xf32> to vector<1x16x128xf32>
    %446 = vector.shape_cast %445 : vector<1x16x128xf32> to vector<16x128xf32>
    %c3_143 = arith.constant 3 : index
    %c6_144 = arith.constant 6 : index
    %447 = memref.load %arg3[%c3_143, %c6_144] : memref<10x8xf32, #tpu.memory_space<smem>>
    %448 = vector.broadcast %447 : f32 to vector<16x128xf32>
    %449 = arith.mulf %446, %448 : vector<16x128xf32>
    %450 = arith.addf %444, %449 : vector<16x128xf32>
    %451 = vector.extract_strided_slice %13 {offsets = [4, 0, 0], sizes = [1, 16, 128], strides = [1, 1, 1]} : vector<10x16x128xf32> to vector<1x16x128xf32>
    %452 = vector.shape_cast %451 : vector<1x16x128xf32> to vector<16x128xf32>
    %c4_145 = arith.constant 4 : index
    %c6_146 = arith.constant 6 : index
    %453 = memref.load %arg3[%c4_145, %c6_146] : memref<10x8xf32, #tpu.memory_space<smem>>
    %454 = vector.broadcast %453 : f32 to vector<16x128xf32>
    %455 = arith.mulf %452, %454 : vector<16x128xf32>
    %456 = arith.addf %450, %455 : vector<16x128xf32>
    %457 = vector.extract_strided_slice %13 {offsets = [5, 0, 0], sizes = [1, 16, 128], strides = [1, 1, 1]} : vector<10x16x128xf32> to vector<1x16x128xf32>
    %458 = vector.shape_cast %457 : vector<1x16x128xf32> to vector<16x128xf32>
    %c5_147 = arith.constant 5 : index
    %c6_148 = arith.constant 6 : index
    %459 = memref.load %arg3[%c5_147, %c6_148] : memref<10x8xf32, #tpu.memory_space<smem>>
    %460 = vector.broadcast %459 : f32 to vector<16x128xf32>
    %461 = arith.mulf %458, %460 : vector<16x128xf32>
    %462 = arith.addf %456, %461 : vector<16x128xf32>
    %463 = vector.extract_strided_slice %13 {offsets = [6, 0, 0], sizes = [1, 16, 128], strides = [1, 1, 1]} : vector<10x16x128xf32> to vector<1x16x128xf32>
    %464 = vector.shape_cast %463 : vector<1x16x128xf32> to vector<16x128xf32>
    %c6_149 = arith.constant 6 : index
    %c6_150 = arith.constant 6 : index
    %465 = memref.load %arg3[%c6_149, %c6_150] : memref<10x8xf32, #tpu.memory_space<smem>>
    %466 = vector.broadcast %465 : f32 to vector<16x128xf32>
    %467 = arith.mulf %464, %466 : vector<16x128xf32>
    %468 = arith.addf %462, %467 : vector<16x128xf32>
    %469 = vector.extract_strided_slice %13 {offsets = [7, 0, 0], sizes = [1, 16, 128], strides = [1, 1, 1]} : vector<10x16x128xf32> to vector<1x16x128xf32>
    %470 = vector.shape_cast %469 : vector<1x16x128xf32> to vector<16x128xf32>
    %c7_151 = arith.constant 7 : index
    %c6_152 = arith.constant 6 : index
    %471 = memref.load %arg3[%c7_151, %c6_152] : memref<10x8xf32, #tpu.memory_space<smem>>
    %472 = vector.broadcast %471 : f32 to vector<16x128xf32>
    %473 = arith.mulf %470, %472 : vector<16x128xf32>
    %474 = arith.addf %468, %473 : vector<16x128xf32>
    %475 = vector.extract_strided_slice %13 {offsets = [8, 0, 0], sizes = [1, 16, 128], strides = [1, 1, 1]} : vector<10x16x128xf32> to vector<1x16x128xf32>
    %476 = vector.shape_cast %475 : vector<1x16x128xf32> to vector<16x128xf32>
    %c8_153 = arith.constant 8 : index
    %c6_154 = arith.constant 6 : index
    %477 = memref.load %arg3[%c8_153, %c6_154] : memref<10x8xf32, #tpu.memory_space<smem>>
    %478 = vector.broadcast %477 : f32 to vector<16x128xf32>
    %479 = arith.mulf %476, %478 : vector<16x128xf32>
    %480 = arith.addf %474, %479 : vector<16x128xf32>
    %481 = vector.extract_strided_slice %13 {offsets = [9, 0, 0], sizes = [1, 16, 128], strides = [1, 1, 1]} : vector<10x16x128xf32> to vector<1x16x128xf32>
    %482 = vector.shape_cast %481 : vector<1x16x128xf32> to vector<16x128xf32>
    %c9_155 = arith.constant 9 : index
    %c6_156 = arith.constant 6 : index
    %483 = memref.load %arg3[%c9_155, %c6_156] : memref<10x8xf32, #tpu.memory_space<smem>>
    %484 = vector.broadcast %483 : f32 to vector<16x128xf32>
    %485 = arith.mulf %482, %484 : vector<16x128xf32>
    %486 = arith.addf %480, %485 : vector<16x128xf32>
    %487 = vector.shape_cast %486 : vector<16x128xf32> to vector<16x1x128xf32>
    %488 = vector.broadcast %487 : vector<16x1x128xf32> to vector<16x16x128xf32>
    %489 = arith.mulf %12, %488 : vector<16x16x128xf32>
    %cst_157 = arith.constant dense<0.000000e+00> : vector<16x128xf32>
    %490 = vector.multi_reduction <add>, %489, %cst_157 [0] : vector<16x16x128xf32> to vector<16x128xf32>
    %491 = arith.mulf %490, %5 : vector<16x128xf32>
    %c6_158 = arith.constant 6 : index
    %492 = memref.load %arg4[%c6_158] : memref<8xf32, #tpu.memory_space<smem>>
    %493 = vector.broadcast %492 : f32 to vector<16x128xf32>
    %494 = arith.addf %491, %493 : vector<16x128xf32>
    %cst_159 = arith.constant 0.000000e+00 : f32
    %495 = vector.broadcast %cst_159 : f32 to vector<16x128xf32>
    %496 = arith.maximumf %494, %495 : vector<16x128xf32>
    %497 = vector.extract_strided_slice %13 {offsets = [0, 0, 0], sizes = [1, 16, 128], strides = [1, 1, 1]} : vector<10x16x128xf32> to vector<1x16x128xf32>
    %498 = vector.shape_cast %497 : vector<1x16x128xf32> to vector<16x128xf32>
    %c0_160 = arith.constant 0 : index
    %c7_161 = arith.constant 7 : index
    %499 = memref.load %arg3[%c0_160, %c7_161] : memref<10x8xf32, #tpu.memory_space<smem>>
    %500 = vector.broadcast %499 : f32 to vector<16x128xf32>
    %501 = arith.mulf %498, %500 : vector<16x128xf32>
    %502 = vector.extract_strided_slice %13 {offsets = [1, 0, 0], sizes = [1, 16, 128], strides = [1, 1, 1]} : vector<10x16x128xf32> to vector<1x16x128xf32>
    %503 = vector.shape_cast %502 : vector<1x16x128xf32> to vector<16x128xf32>
    %c1_162 = arith.constant 1 : index
    %c7_163 = arith.constant 7 : index
    %504 = memref.load %arg3[%c1_162, %c7_163] : memref<10x8xf32, #tpu.memory_space<smem>>
    %505 = vector.broadcast %504 : f32 to vector<16x128xf32>
    %506 = arith.mulf %503, %505 : vector<16x128xf32>
    %507 = arith.addf %501, %506 : vector<16x128xf32>
    %508 = vector.extract_strided_slice %13 {offsets = [2, 0, 0], sizes = [1, 16, 128], strides = [1, 1, 1]} : vector<10x16x128xf32> to vector<1x16x128xf32>
    %509 = vector.shape_cast %508 : vector<1x16x128xf32> to vector<16x128xf32>
    %c2_164 = arith.constant 2 : index
    %c7_165 = arith.constant 7 : index
    %510 = memref.load %arg3[%c2_164, %c7_165] : memref<10x8xf32, #tpu.memory_space<smem>>
    %511 = vector.broadcast %510 : f32 to vector<16x128xf32>
    %512 = arith.mulf %509, %511 : vector<16x128xf32>
    %513 = arith.addf %507, %512 : vector<16x128xf32>
    %514 = vector.extract_strided_slice %13 {offsets = [3, 0, 0], sizes = [1, 16, 128], strides = [1, 1, 1]} : vector<10x16x128xf32> to vector<1x16x128xf32>
    %515 = vector.shape_cast %514 : vector<1x16x128xf32> to vector<16x128xf32>
    %c3_166 = arith.constant 3 : index
    %c7_167 = arith.constant 7 : index
    %516 = memref.load %arg3[%c3_166, %c7_167] : memref<10x8xf32, #tpu.memory_space<smem>>
    %517 = vector.broadcast %516 : f32 to vector<16x128xf32>
    %518 = arith.mulf %515, %517 : vector<16x128xf32>
    %519 = arith.addf %513, %518 : vector<16x128xf32>
    %520 = vector.extract_strided_slice %13 {offsets = [4, 0, 0], sizes = [1, 16, 128], strides = [1, 1, 1]} : vector<10x16x128xf32> to vector<1x16x128xf32>
    %521 = vector.shape_cast %520 : vector<1x16x128xf32> to vector<16x128xf32>
    %c4_168 = arith.constant 4 : index
    %c7_169 = arith.constant 7 : index
    %522 = memref.load %arg3[%c4_168, %c7_169] : memref<10x8xf32, #tpu.memory_space<smem>>
    %523 = vector.broadcast %522 : f32 to vector<16x128xf32>
    %524 = arith.mulf %521, %523 : vector<16x128xf32>
    %525 = arith.addf %519, %524 : vector<16x128xf32>
    %526 = vector.extract_strided_slice %13 {offsets = [5, 0, 0], sizes = [1, 16, 128], strides = [1, 1, 1]} : vector<10x16x128xf32> to vector<1x16x128xf32>
    %527 = vector.shape_cast %526 : vector<1x16x128xf32> to vector<16x128xf32>
    %c5_170 = arith.constant 5 : index
    %c7_171 = arith.constant 7 : index
    %528 = memref.load %arg3[%c5_170, %c7_171] : memref<10x8xf32, #tpu.memory_space<smem>>
    %529 = vector.broadcast %528 : f32 to vector<16x128xf32>
    %530 = arith.mulf %527, %529 : vector<16x128xf32>
    %531 = arith.addf %525, %530 : vector<16x128xf32>
    %532 = vector.extract_strided_slice %13 {offsets = [6, 0, 0], sizes = [1, 16, 128], strides = [1, 1, 1]} : vector<10x16x128xf32> to vector<1x16x128xf32>
    %533 = vector.shape_cast %532 : vector<1x16x128xf32> to vector<16x128xf32>
    %c6_172 = arith.constant 6 : index
    %c7_173 = arith.constant 7 : index
    %534 = memref.load %arg3[%c6_172, %c7_173] : memref<10x8xf32, #tpu.memory_space<smem>>
    %535 = vector.broadcast %534 : f32 to vector<16x128xf32>
    %536 = arith.mulf %533, %535 : vector<16x128xf32>
    %537 = arith.addf %531, %536 : vector<16x128xf32>
    %538 = vector.extract_strided_slice %13 {offsets = [7, 0, 0], sizes = [1, 16, 128], strides = [1, 1, 1]} : vector<10x16x128xf32> to vector<1x16x128xf32>
    %539 = vector.shape_cast %538 : vector<1x16x128xf32> to vector<16x128xf32>
    %c7_174 = arith.constant 7 : index
    %c7_175 = arith.constant 7 : index
    %540 = memref.load %arg3[%c7_174, %c7_175] : memref<10x8xf32, #tpu.memory_space<smem>>
    %541 = vector.broadcast %540 : f32 to vector<16x128xf32>
    %542 = arith.mulf %539, %541 : vector<16x128xf32>
    %543 = arith.addf %537, %542 : vector<16x128xf32>
    %544 = vector.extract_strided_slice %13 {offsets = [8, 0, 0], sizes = [1, 16, 128], strides = [1, 1, 1]} : vector<10x16x128xf32> to vector<1x16x128xf32>
    %545 = vector.shape_cast %544 : vector<1x16x128xf32> to vector<16x128xf32>
    %c8_176 = arith.constant 8 : index
    %c7_177 = arith.constant 7 : index
    %546 = memref.load %arg3[%c8_176, %c7_177] : memref<10x8xf32, #tpu.memory_space<smem>>
    %547 = vector.broadcast %546 : f32 to vector<16x128xf32>
    %548 = arith.mulf %545, %547 : vector<16x128xf32>
    %549 = arith.addf %543, %548 : vector<16x128xf32>
    %550 = vector.extract_strided_slice %13 {offsets = [9, 0, 0], sizes = [1, 16, 128], strides = [1, 1, 1]} : vector<10x16x128xf32> to vector<1x16x128xf32>
    %551 = vector.shape_cast %550 : vector<1x16x128xf32> to vector<16x128xf32>
    %c9_178 = arith.constant 9 : index
    %c7_179 = arith.constant 7 : index
    %552 = memref.load %arg3[%c9_178, %c7_179] : memref<10x8xf32, #tpu.memory_space<smem>>
    %553 = vector.broadcast %552 : f32 to vector<16x128xf32>
    %554 = arith.mulf %551, %553 : vector<16x128xf32>
    %555 = arith.addf %549, %554 : vector<16x128xf32>
    %556 = vector.shape_cast %555 : vector<16x128xf32> to vector<16x1x128xf32>
    %557 = vector.broadcast %556 : vector<16x1x128xf32> to vector<16x16x128xf32>
    %558 = arith.mulf %12, %557 : vector<16x16x128xf32>
    %cst_180 = arith.constant dense<0.000000e+00> : vector<16x128xf32>
    %559 = vector.multi_reduction <add>, %558, %cst_180 [0] : vector<16x16x128xf32> to vector<16x128xf32>
    %560 = arith.mulf %559, %5 : vector<16x128xf32>
    %c7_181 = arith.constant 7 : index
    %561 = memref.load %arg4[%c7_181] : memref<8xf32, #tpu.memory_space<smem>>
    %562 = vector.broadcast %561 : f32 to vector<16x128xf32>
    %563 = arith.addf %560, %562 : vector<16x128xf32>
    %cst_182 = arith.constant 0.000000e+00 : f32
    %564 = vector.broadcast %cst_182 : f32 to vector<16x128xf32>
    %565 = arith.maximumf %563, %564 : vector<16x128xf32>
    %c0_183 = arith.constant 0 : index
    %c0_184 = arith.constant 0 : index
    %566 = memref.load %arg5[%c0_183, %c0_184] : memref<8x4xf32, #tpu.memory_space<smem>>
    %567 = vector.broadcast %566 : f32 to vector<16x128xf32>
    %568 = arith.mulf %82, %567 : vector<16x128xf32>
    %c1_185 = arith.constant 1 : index
    %c0_186 = arith.constant 0 : index
    %569 = memref.load %arg5[%c1_185, %c0_186] : memref<8x4xf32, #tpu.memory_space<smem>>
    %570 = vector.broadcast %569 : f32 to vector<16x128xf32>
    %571 = arith.mulf %151, %570 : vector<16x128xf32>
    %572 = arith.addf %568, %571 : vector<16x128xf32>
    %c2_187 = arith.constant 2 : index
    %c0_188 = arith.constant 0 : index
    %573 = memref.load %arg5[%c2_187, %c0_188] : memref<8x4xf32, #tpu.memory_space<smem>>
    %574 = vector.broadcast %573 : f32 to vector<16x128xf32>
    %575 = arith.mulf %220, %574 : vector<16x128xf32>
    %576 = arith.addf %572, %575 : vector<16x128xf32>
    %c3_189 = arith.constant 3 : index
    %c0_190 = arith.constant 0 : index
    %577 = memref.load %arg5[%c3_189, %c0_190] : memref<8x4xf32, #tpu.memory_space<smem>>
    %578 = vector.broadcast %577 : f32 to vector<16x128xf32>
    %579 = arith.mulf %289, %578 : vector<16x128xf32>
    %580 = arith.addf %576, %579 : vector<16x128xf32>
    %c4_191 = arith.constant 4 : index
    %c0_192 = arith.constant 0 : index
    %581 = memref.load %arg5[%c4_191, %c0_192] : memref<8x4xf32, #tpu.memory_space<smem>>
    %582 = vector.broadcast %581 : f32 to vector<16x128xf32>
    %583 = arith.mulf %358, %582 : vector<16x128xf32>
    %584 = arith.addf %580, %583 : vector<16x128xf32>
    %c5_193 = arith.constant 5 : index
    %c0_194 = arith.constant 0 : index
    %585 = memref.load %arg5[%c5_193, %c0_194] : memref<8x4xf32, #tpu.memory_space<smem>>
    %586 = vector.broadcast %585 : f32 to vector<16x128xf32>
    %587 = arith.mulf %427, %586 : vector<16x128xf32>
    %588 = arith.addf %584, %587 : vector<16x128xf32>
    %c6_195 = arith.constant 6 : index
    %c0_196 = arith.constant 0 : index
    %589 = memref.load %arg5[%c6_195, %c0_196] : memref<8x4xf32, #tpu.memory_space<smem>>
    %590 = vector.broadcast %589 : f32 to vector<16x128xf32>
    %591 = arith.mulf %496, %590 : vector<16x128xf32>
    %592 = arith.addf %588, %591 : vector<16x128xf32>
    %c7_197 = arith.constant 7 : index
    %c0_198 = arith.constant 0 : index
    %593 = memref.load %arg5[%c7_197, %c0_198] : memref<8x4xf32, #tpu.memory_space<smem>>
    %594 = vector.broadcast %593 : f32 to vector<16x128xf32>
    %595 = arith.mulf %565, %594 : vector<16x128xf32>
    %596 = arith.addf %592, %595 : vector<16x128xf32>
    %597 = vector.shape_cast %596 : vector<16x128xf32> to vector<16x1x128xf32>
    %598 = vector.broadcast %597 : vector<16x1x128xf32> to vector<16x16x128xf32>
    %599 = arith.mulf %12, %598 : vector<16x16x128xf32>
    %cst_199 = arith.constant dense<0.000000e+00> : vector<16x128xf32>
    %600 = vector.multi_reduction <add>, %599, %cst_199 [0] : vector<16x16x128xf32> to vector<16x128xf32>
    %601 = arith.mulf %600, %5 : vector<16x128xf32>
    %c0_200 = arith.constant 0 : index
    %602 = memref.load %arg6[%c0_200] : memref<4xf32, #tpu.memory_space<smem>>
    %603 = vector.broadcast %602 : f32 to vector<16x128xf32>
    %604 = arith.addf %601, %603 : vector<16x128xf32>
    %cst_201 = arith.constant 0.000000e+00 : f32
    %605 = vector.broadcast %cst_201 : f32 to vector<16x128xf32>
    %606 = arith.maximumf %604, %605 : vector<16x128xf32>
    %c0_202 = arith.constant 0 : index
    %c1_203 = arith.constant 1 : index
    %607 = memref.load %arg5[%c0_202, %c1_203] : memref<8x4xf32, #tpu.memory_space<smem>>
    %608 = vector.broadcast %607 : f32 to vector<16x128xf32>
    %609 = arith.mulf %82, %608 : vector<16x128xf32>
    %c1_204 = arith.constant 1 : index
    %c1_205 = arith.constant 1 : index
    %610 = memref.load %arg5[%c1_204, %c1_205] : memref<8x4xf32, #tpu.memory_space<smem>>
    %611 = vector.broadcast %610 : f32 to vector<16x128xf32>
    %612 = arith.mulf %151, %611 : vector<16x128xf32>
    %613 = arith.addf %609, %612 : vector<16x128xf32>
    %c2_206 = arith.constant 2 : index
    %c1_207 = arith.constant 1 : index
    %614 = memref.load %arg5[%c2_206, %c1_207] : memref<8x4xf32, #tpu.memory_space<smem>>
    %615 = vector.broadcast %614 : f32 to vector<16x128xf32>
    %616 = arith.mulf %220, %615 : vector<16x128xf32>
    %617 = arith.addf %613, %616 : vector<16x128xf32>
    %c3_208 = arith.constant 3 : index
    %c1_209 = arith.constant 1 : index
    %618 = memref.load %arg5[%c3_208, %c1_209] : memref<8x4xf32, #tpu.memory_space<smem>>
    %619 = vector.broadcast %618 : f32 to vector<16x128xf32>
    %620 = arith.mulf %289, %619 : vector<16x128xf32>
    %621 = arith.addf %617, %620 : vector<16x128xf32>
    %c4_210 = arith.constant 4 : index
    %c1_211 = arith.constant 1 : index
    %622 = memref.load %arg5[%c4_210, %c1_211] : memref<8x4xf32, #tpu.memory_space<smem>>
    %623 = vector.broadcast %622 : f32 to vector<16x128xf32>
    %624 = arith.mulf %358, %623 : vector<16x128xf32>
    %625 = arith.addf %621, %624 : vector<16x128xf32>
    %c5_212 = arith.constant 5 : index
    %c1_213 = arith.constant 1 : index
    %626 = memref.load %arg5[%c5_212, %c1_213] : memref<8x4xf32, #tpu.memory_space<smem>>
    %627 = vector.broadcast %626 : f32 to vector<16x128xf32>
    %628 = arith.mulf %427, %627 : vector<16x128xf32>
    %629 = arith.addf %625, %628 : vector<16x128xf32>
    %c6_214 = arith.constant 6 : index
    %c1_215 = arith.constant 1 : index
    %630 = memref.load %arg5[%c6_214, %c1_215] : memref<8x4xf32, #tpu.memory_space<smem>>
    %631 = vector.broadcast %630 : f32 to vector<16x128xf32>
    %632 = arith.mulf %496, %631 : vector<16x128xf32>
    %633 = arith.addf %629, %632 : vector<16x128xf32>
    %c7_216 = arith.constant 7 : index
    %c1_217 = arith.constant 1 : index
    %634 = memref.load %arg5[%c7_216, %c1_217] : memref<8x4xf32, #tpu.memory_space<smem>>
    %635 = vector.broadcast %634 : f32 to vector<16x128xf32>
    %636 = arith.mulf %565, %635 : vector<16x128xf32>
    %637 = arith.addf %633, %636 : vector<16x128xf32>
    %638 = vector.shape_cast %637 : vector<16x128xf32> to vector<16x1x128xf32>
    %639 = vector.broadcast %638 : vector<16x1x128xf32> to vector<16x16x128xf32>
    %640 = arith.mulf %12, %639 : vector<16x16x128xf32>
    %cst_218 = arith.constant dense<0.000000e+00> : vector<16x128xf32>
    %641 = vector.multi_reduction <add>, %640, %cst_218 [0] : vector<16x16x128xf32> to vector<16x128xf32>
    %642 = arith.mulf %641, %5 : vector<16x128xf32>
    %c1_219 = arith.constant 1 : index
    %643 = memref.load %arg6[%c1_219] : memref<4xf32, #tpu.memory_space<smem>>
    %644 = vector.broadcast %643 : f32 to vector<16x128xf32>
    %645 = arith.addf %642, %644 : vector<16x128xf32>
    %cst_220 = arith.constant 0.000000e+00 : f32
    %646 = vector.broadcast %cst_220 : f32 to vector<16x128xf32>
    %647 = arith.maximumf %645, %646 : vector<16x128xf32>
    %c0_221 = arith.constant 0 : index
    %c2_222 = arith.constant 2 : index
    %648 = memref.load %arg5[%c0_221, %c2_222] : memref<8x4xf32, #tpu.memory_space<smem>>
    %649 = vector.broadcast %648 : f32 to vector<16x128xf32>
    %650 = arith.mulf %82, %649 : vector<16x128xf32>
    %c1_223 = arith.constant 1 : index
    %c2_224 = arith.constant 2 : index
    %651 = memref.load %arg5[%c1_223, %c2_224] : memref<8x4xf32, #tpu.memory_space<smem>>
    %652 = vector.broadcast %651 : f32 to vector<16x128xf32>
    %653 = arith.mulf %151, %652 : vector<16x128xf32>
    %654 = arith.addf %650, %653 : vector<16x128xf32>
    %c2_225 = arith.constant 2 : index
    %c2_226 = arith.constant 2 : index
    %655 = memref.load %arg5[%c2_225, %c2_226] : memref<8x4xf32, #tpu.memory_space<smem>>
    %656 = vector.broadcast %655 : f32 to vector<16x128xf32>
    %657 = arith.mulf %220, %656 : vector<16x128xf32>
    %658 = arith.addf %654, %657 : vector<16x128xf32>
    %c3_227 = arith.constant 3 : index
    %c2_228 = arith.constant 2 : index
    %659 = memref.load %arg5[%c3_227, %c2_228] : memref<8x4xf32, #tpu.memory_space<smem>>
    %660 = vector.broadcast %659 : f32 to vector<16x128xf32>
    %661 = arith.mulf %289, %660 : vector<16x128xf32>
    %662 = arith.addf %658, %661 : vector<16x128xf32>
    %c4_229 = arith.constant 4 : index
    %c2_230 = arith.constant 2 : index
    %663 = memref.load %arg5[%c4_229, %c2_230] : memref<8x4xf32, #tpu.memory_space<smem>>
    %664 = vector.broadcast %663 : f32 to vector<16x128xf32>
    %665 = arith.mulf %358, %664 : vector<16x128xf32>
    %666 = arith.addf %662, %665 : vector<16x128xf32>
    %c5_231 = arith.constant 5 : index
    %c2_232 = arith.constant 2 : index
    %667 = memref.load %arg5[%c5_231, %c2_232] : memref<8x4xf32, #tpu.memory_space<smem>>
    %668 = vector.broadcast %667 : f32 to vector<16x128xf32>
    %669 = arith.mulf %427, %668 : vector<16x128xf32>
    %670 = arith.addf %666, %669 : vector<16x128xf32>
    %c6_233 = arith.constant 6 : index
    %c2_234 = arith.constant 2 : index
    %671 = memref.load %arg5[%c6_233, %c2_234] : memref<8x4xf32, #tpu.memory_space<smem>>
    %672 = vector.broadcast %671 : f32 to vector<16x128xf32>
    %673 = arith.mulf %496, %672 : vector<16x128xf32>
    %674 = arith.addf %670, %673 : vector<16x128xf32>
    %c7_235 = arith.constant 7 : index
    %c2_236 = arith.constant 2 : index
    %675 = memref.load %arg5[%c7_235, %c2_236] : memref<8x4xf32, #tpu.memory_space<smem>>
    %676 = vector.broadcast %675 : f32 to vector<16x128xf32>
    %677 = arith.mulf %565, %676 : vector<16x128xf32>
    %678 = arith.addf %674, %677 : vector<16x128xf32>
    %679 = vector.shape_cast %678 : vector<16x128xf32> to vector<16x1x128xf32>
    %680 = vector.broadcast %679 : vector<16x1x128xf32> to vector<16x16x128xf32>
    %681 = arith.mulf %12, %680 : vector<16x16x128xf32>
    %cst_237 = arith.constant dense<0.000000e+00> : vector<16x128xf32>
    %682 = vector.multi_reduction <add>, %681, %cst_237 [0] : vector<16x16x128xf32> to vector<16x128xf32>
    %683 = arith.mulf %682, %5 : vector<16x128xf32>
    %c2_238 = arith.constant 2 : index
    %684 = memref.load %arg6[%c2_238] : memref<4xf32, #tpu.memory_space<smem>>
    %685 = vector.broadcast %684 : f32 to vector<16x128xf32>
    %686 = arith.addf %683, %685 : vector<16x128xf32>
    %cst_239 = arith.constant 0.000000e+00 : f32
    %687 = vector.broadcast %cst_239 : f32 to vector<16x128xf32>
    %688 = arith.maximumf %686, %687 : vector<16x128xf32>
    %c0_240 = arith.constant 0 : index
    %c3_241 = arith.constant 3 : index
    %689 = memref.load %arg5[%c0_240, %c3_241] : memref<8x4xf32, #tpu.memory_space<smem>>
    %690 = vector.broadcast %689 : f32 to vector<16x128xf32>
    %691 = arith.mulf %82, %690 : vector<16x128xf32>
    %c1_242 = arith.constant 1 : index
    %c3_243 = arith.constant 3 : index
    %692 = memref.load %arg5[%c1_242, %c3_243] : memref<8x4xf32, #tpu.memory_space<smem>>
    %693 = vector.broadcast %692 : f32 to vector<16x128xf32>
    %694 = arith.mulf %151, %693 : vector<16x128xf32>
    %695 = arith.addf %691, %694 : vector<16x128xf32>
    %c2_244 = arith.constant 2 : index
    %c3_245 = arith.constant 3 : index
    %696 = memref.load %arg5[%c2_244, %c3_245] : memref<8x4xf32, #tpu.memory_space<smem>>
    %697 = vector.broadcast %696 : f32 to vector<16x128xf32>
    %698 = arith.mulf %220, %697 : vector<16x128xf32>
    %699 = arith.addf %695, %698 : vector<16x128xf32>
    %c3_246 = arith.constant 3 : index
    %c3_247 = arith.constant 3 : index
    %700 = memref.load %arg5[%c3_246, %c3_247] : memref<8x4xf32, #tpu.memory_space<smem>>
    %701 = vector.broadcast %700 : f32 to vector<16x128xf32>
    %702 = arith.mulf %289, %701 : vector<16x128xf32>
    %703 = arith.addf %699, %702 : vector<16x128xf32>
    %c4_248 = arith.constant 4 : index
    %c3_249 = arith.constant 3 : index
    %704 = memref.load %arg5[%c4_248, %c3_249] : memref<8x4xf32, #tpu.memory_space<smem>>
    %705 = vector.broadcast %704 : f32 to vector<16x128xf32>
    %706 = arith.mulf %358, %705 : vector<16x128xf32>
    %707 = arith.addf %703, %706 : vector<16x128xf32>
    %c5_250 = arith.constant 5 : index
    %c3_251 = arith.constant 3 : index
    %708 = memref.load %arg5[%c5_250, %c3_251] : memref<8x4xf32, #tpu.memory_space<smem>>
    %709 = vector.broadcast %708 : f32 to vector<16x128xf32>
    %710 = arith.mulf %427, %709 : vector<16x128xf32>
    %711 = arith.addf %707, %710 : vector<16x128xf32>
    %c6_252 = arith.constant 6 : index
    %c3_253 = arith.constant 3 : index
    %712 = memref.load %arg5[%c6_252, %c3_253] : memref<8x4xf32, #tpu.memory_space<smem>>
    %713 = vector.broadcast %712 : f32 to vector<16x128xf32>
    %714 = arith.mulf %496, %713 : vector<16x128xf32>
    %715 = arith.addf %711, %714 : vector<16x128xf32>
    %c7_254 = arith.constant 7 : index
    %c3_255 = arith.constant 3 : index
    %716 = memref.load %arg5[%c7_254, %c3_255] : memref<8x4xf32, #tpu.memory_space<smem>>
    %717 = vector.broadcast %716 : f32 to vector<16x128xf32>
    %718 = arith.mulf %565, %717 : vector<16x128xf32>
    %719 = arith.addf %715, %718 : vector<16x128xf32>
    %720 = vector.shape_cast %719 : vector<16x128xf32> to vector<16x1x128xf32>
    %721 = vector.broadcast %720 : vector<16x1x128xf32> to vector<16x16x128xf32>
    %722 = arith.mulf %12, %721 : vector<16x16x128xf32>
    %cst_256 = arith.constant dense<0.000000e+00> : vector<16x128xf32>
    %723 = vector.multi_reduction <add>, %722, %cst_256 [0] : vector<16x16x128xf32> to vector<16x128xf32>
    %724 = arith.mulf %723, %5 : vector<16x128xf32>
    %c3_257 = arith.constant 3 : index
    %725 = memref.load %arg6[%c3_257] : memref<4xf32, #tpu.memory_space<smem>>
    %726 = vector.broadcast %725 : f32 to vector<16x128xf32>
    %727 = arith.addf %724, %726 : vector<16x128xf32>
    %cst_258 = arith.constant 0.000000e+00 : f32
    %728 = vector.broadcast %cst_258 : f32 to vector<16x128xf32>
    %729 = arith.maximumf %727, %728 : vector<16x128xf32>
    %c0_259 = arith.constant 0 : index
    %730 = memref.load %arg7[%c0_259] : memref<4xf32, #tpu.memory_space<smem>>
    %731 = vector.broadcast %730 : f32 to vector<16x128xf32>
    %732 = arith.mulf %606, %731 : vector<16x128xf32>
    %c1_260 = arith.constant 1 : index
    %733 = memref.load %arg7[%c1_260] : memref<4xf32, #tpu.memory_space<smem>>
    %734 = vector.broadcast %733 : f32 to vector<16x128xf32>
    %735 = arith.mulf %647, %734 : vector<16x128xf32>
    %736 = arith.addf %732, %735 : vector<16x128xf32>
    %c2_261 = arith.constant 2 : index
    %737 = memref.load %arg7[%c2_261] : memref<4xf32, #tpu.memory_space<smem>>
    %738 = vector.broadcast %737 : f32 to vector<16x128xf32>
    %739 = arith.mulf %688, %738 : vector<16x128xf32>
    %740 = arith.addf %736, %739 : vector<16x128xf32>
    %c3_262 = arith.constant 3 : index
    %741 = memref.load %arg7[%c3_262] : memref<4xf32, #tpu.memory_space<smem>>
    %742 = vector.broadcast %741 : f32 to vector<16x128xf32>
    %743 = arith.mulf %729, %742 : vector<16x128xf32>
    %744 = arith.addf %740, %743 : vector<16x128xf32>
    %cst_263 = arith.constant dense<0.000000e+00> : vector<128xf32>
    %745 = vector.multi_reduction <add>, %744, %cst_263 [0] : vector<16x128xf32> to vector<128xf32>
    %746 = vector.shape_cast %745 : vector<128xf32> to vector<1x128xf32>
    %cst_264 = arith.constant 6.250000e-02 : f32
    %747 = vector.broadcast %cst_264 : f32 to vector<1x128xf32>
    %748 = arith.mulf %746, %747 : vector<1x128xf32>
    %c0_265 = arith.constant 0 : index
    %749 = memref.load %arg8[%c0_265] : memref<1xf32, #tpu.memory_space<smem>>
    %750 = vector.broadcast %749 : f32 to vector<1x128xf32>
    %751 = arith.addf %748, %750 : vector<1x128xf32>
    %752 = arith.negf %751 : vector<1x128xf32>
    %753 = math.exp %752 : vector<1x128xf32>
    %cst_266 = arith.constant 1.000000e+00 : f32
    %754 = vector.broadcast %cst_266 : f32 to vector<1x128xf32>
    %755 = arith.addf %754, %753 : vector<1x128xf32>
    %756 = arith.divf %754, %755 : vector<1x128xf32>
    %c0_267 = arith.constant 0 : index
    %c0_268 = arith.constant 0 : index
    %c0_269 = arith.constant 0 : index
    %757 = vector.load %arg9[%c0_267, %c0_268, %c0_269] : memref<1x1x128xf32, #tpu.memory_space<vmem>>, vector<1x1x128xf32>
    %758 = vector.shape_cast %757 : vector<1x1x128xf32> to vector<1x128xf32>
    %759 = vector.shape_cast %756 : vector<1x128xf32> to vector<1x1x128xf32>
    tpu.vector_store %arg9[%c0_267, %c0_268, %c0_269], %759 {strides = array<i32>} : memref<1x1x128xf32, #tpu.memory_space<vmem>>, vector<1x1x128xf32>,
    return
  }
  func.func @transform_0(%arg0: i32) -> (i32, i32, i32) {
    %c0_i32 = arith.constant 0 : i32
    %c0_i32_0 = arith.constant 0 : i32
    %c0_i32_1 = arith.constant 0 : i32
    return %c0_i32, %c0_i32_0, %arg0 : i32, i32, i32
  }
  func.func @transform_1(%arg0: i32) -> (i32, i32, i32) {
    %c0_i32 = arith.constant 0 : i32
    %c0_i32_0 = arith.constant 0 : i32
    %c0_i32_1 = arith.constant 0 : i32
    return %c0_i32, %c0_i32_0, %arg0 : i32, i32, i32
  }
  func.func @transform_2(%arg0: i32) -> (i32, i32) {
    %c0_i32 = arith.constant 0 : i32
    %c0_i32_0 = arith.constant 0 : i32
    %c0_i32_1 = arith.constant 0 : i32
    return %c0_i32, %c0_i32_0 : i32, i32
  }
  func.func @transform_3(%arg0: i32) -> i32 {
    %c0_i32 = arith.constant 0 : i32
    %c0_i32_0 = arith.constant 0 : i32
    return %c0_i32 : i32
  }
  func.func @transform_4(%arg0: i32) -> (i32, i32) {
    %c0_i32 = arith.constant 0 : i32
    %c0_i32_0 = arith.constant 0 : i32
    %c0_i32_1 = arith.constant 0 : i32
    return %c0_i32, %c0_i32_0 : i32, i32
  }
  func.func @transform_5(%arg0: i32) -> i32 {
    %c0_i32 = arith.constant 0 : i32
    %c0_i32_0 = arith.constant 0 : i32
    return %c0_i32 : i32
  }
  func.func @transform_6(%arg0: i32) -> i32 {
    %c0_i32 = arith.constant 0 : i32
    %c0_i32_0 = arith.constant 0 : i32
    return %c0_i32 : i32
  }
  func.func @transform_7(%arg0: i32) -> i32 {
    %c0_i32 = arith.constant 0 : i32
    %c0_i32_0 = arith.constant 0 : i32
    return %c0_i32 : i32
  }
  func.func @transform_8(%arg0: i32) -> (i32, i32, i32) {
    %c0_i32 = arith.constant 0 : i32
    %c0_i32_0 = arith.constant 0 : i32
    %c0_i32_1 = arith.constant 0 : i32
    return %arg0, %c0_i32, %c0_i32_0 : i32, i32, i32
  }
}

</mosaic_0001>

<bundles_post_ra>
// kernel: tpu_custom_call.1
= control target key start
LH: loop header
LB: loop body
LE: loop exit
PB: predicated region body
PF: predicated region fallthrough
CT: control target
= control target key end

     0   :  { %14 = vsyncpa [#allocation4], 0  ;;  %s7071_s0 = inlined_call_operand.hbm [shape: s8[16,16,128], index: 0, kind: input, shape index: {}]   ;;  %s7072_s1 = inlined_call_operand.hbm [shape: f32[10,16,128], index: 1, kind: input, shape index: {}]   ;;  %s7073_s2 = inlined_call_operand.vmem [shape: f32[10,8], index: 2, kind: input, shape index: {}]   ;;  %s7074_s3 = inlined_call_operand.vmem [shape: f32[8], index: 3, kind: input, shape index: {}]   ;;  %s7075_s4 = inlined_call_operand.vmem [shape: f32[8,4], index: 4, kind: input, shape index: {}]   ;;  %s7076_s5 = inlined_call_operand.vmem [shape: f32[4], index: 5, kind: input, shape index: {}]   ;;  %s7077_s6 = inlined_call_operand.vmem [shape: f32[4], index: 6, kind: input, shape index: {}]   ;;  %s7078_s7 = inlined_call_operand.<no memory space> [shape: f32[1], index: 7, kind: input, shape index: {}]   ;;  %s7079_s8 = inlined_call_operand.hbm [shape: f32[1,1,128], index: 8, kind: output, shape index: {}]  }
   0x1   :  { %15 = vsyncpa [#allocation8], 0 }
   0x2   :  { %16 = vsyncpa [#allocation6], 0 }
   0x3   :  { %17 = vsyncpa [#allocation11], 0 }
   0x4   :  { %18 = vsyncpa [#allocation14], 0  ;;  %s62_s29 = sshll.u32 %s7074_s3, 4  ;;  %s63_s29 = int_to_ptr.vmem [resolvable:$true] %s62_s29 }
   0x5   :  { %19 = vsyncpa [#allocation5], 0  ;;  %s82_s10 = sshll.u32 %s7076_s5, 4  ;;  %s4447_s11 = scalar_lea.vmem %s63_s29, 16  ;;  %s83_s10 = int_to_ptr.vmem [resolvable:$true] %s82_s10 }
   0x6   :  { %p4448_p0 = scmp.ne.s32.totalorder %s63_s29, %s4447_s11  ;;  %p4452_p1 = scmp.lt.s32.totalorder %s63_s29, %s63_s29 }
   0x7   :  { %p4453_p2 = scmp.lt.s32.totalorder %s4447_s11, %s4447_s11 }
   0x9   :  { %p4454_p3 = por %p4453_p2, %p4452_p1 }
   0xb   :  { %p4455_p4 = pnand %p4454_p3, %p4448_p0 }
   0xd   :  { %4458 = shalt.err (!%p4455_p4)
}
   0xe   :  { %s4585_s12 = smov [#allocation10]   ;;  %s4459_s13 = scalar_lea.vmem %s83_s10, 16 }
   0xf   :  { %65 = dma.vmem_to_smem %s63_s29, 16, %s4585_s12, [#allocation11]  }
  0x10   :  { %p4460_p5 = scmp.ne.s32.totalorder %s83_s10, %s4459_s13  ;;  %p4464_p6 = scmp.lt.s32.totalorder %s83_s10, %s83_s10 }
  0x11   :  { %p4465_p7 = scmp.lt.s32.totalorder %s4459_s13, %s4459_s13 }
  0x13   :  { %p4466_p8 = por %p4465_p7, %p4464_p6 }
  0x15   :  { %p4467_p9 = pnand %p4466_p8, %p4460_p5 }
  0x17   :  { %4470 = shalt.err (!%p4467_p9)
}
  0x18   :  { %s4586_s3 = smov [#allocation13]   ;;  %s4587_s5 = smov [#allocation3]  }
  0x19   :  { %85 = dma.vmem_to_smem %s83_s10, 16, %s4586_s3, [#allocation14]  }
  0x1a   :  { %s25_s14 = sshll.u32 %s4587_s5, 4  ;;  %s4471_s17 = scalar_lea.hbm %s7071_s0, 1024  ;;  %s26_s14 = int_to_ptr.vmem [resolvable:$true] %s25_s14 }
  0x1b   :  { %p4472_p10 = scmp.ne.s32.totalorder %s7071_s0, %s4471_s17  ;;  %p4475_p11 = scmp.lt.u32.totalorder %s4471_s17, %s7071_s0 }
  0x1d   :  { %p4477_p12 = pnand %p4475_p11, %p4472_p10 }
  0x1f   :  { %4480 = shalt.err (!%p4477_p12)
}
  0x20   :  { %s4481_s22 = scalar_lea.vmem %s26_s14, 1024  ;;  %p4486_p0 = scmp.lt.s32.totalorder %s26_s14, %s26_s14 }
  0x21   :  { %p4482_p13 = scmp.ne.s32.totalorder %s26_s14, %s4481_s22  ;;  %p4487_p1 = scmp.lt.s32.totalorder %s4481_s22, %s4481_s22 }
  0x23   :  { %p4488_p2 = por %p4487_p1, %p4486_p0 }
  0x25   :  { %p4489_p3 = pnand %p4488_p2, %p4482_p13 }
  0x27   :  { %4492 = shalt.err (!%p4489_p3)
}
  0x28   :  { %s4588_s23 = smov 32   ;;  %s4589_s24 = smov 2  }
  0x29   :  { %31 = dma.hbm_to_vmem [thread:$0]  %s7071_s0, 1024, %s26_s14, [#allocation4], %s4588_s23, %s4588_s23, %s4589_s24  }
  0x2a   :  { %s4590_s27 = smov [#allocation7]   ;;  %s4493_s9 = scalar_lea.hbm %s7072_s1, 2560 }
  0x2b   :  { %s37_s28 = sshll.u32 %s4590_s27, 4  ;;  %p4494_p4 = scmp.ne.s32.totalorder %s7072_s1, %s4493_s9  ;;  %s38_s28 = int_to_ptr.vmem [resolvable:$true] %s37_s28 }
  0x2c   :  { %p4497_p5 = scmp.lt.u32.totalorder %s4493_s9, %s7072_s1 }
  0x2e   :  { %p4499_p6 = pnand %p4497_p5, %p4494_p4 }
  0x30   :  { %4502 = shalt.err (!%p4499_p6)
}
  0x31   :  { %s4503_s3 = scalar_lea.vmem %s38_s28, 2560  ;;  %p4508_p8 = scmp.lt.s32.totalorder %s38_s28, %s38_s28 }
  0x32   :  { %p4504_p7 = scmp.ne.s32.totalorder %s38_s28, %s4503_s3  ;;  %p4509_p9 = scmp.lt.s32.totalorder %s4503_s3, %s4503_s3 }
  0x34   :  { %p4510_p10 = por %p4509_p9, %p4508_p8 }
  0x36   :  { %p4511_p11 = pnand %p4510_p10, %p4504_p7 }
  0x38   :  { %4514 = shalt.err (!%p4511_p11)
}
  0x39   :  { %s4591_s0 = smov 128   ;;  %s4592_s5 = smov 8  }
  0x3a   :  { %43 = dma.hbm_to_vmem [thread:$0]  %s7072_s1, 2560, %s38_s28, [#allocation8], %s4591_s0, %s4591_s0, %s4592_s5  }
  0x3b   :  { %s49_s18 = sshll.u32 %s7073_s2, 4  ;;  %s72_s21 = sshll.u32 %s7075_s4, 4  ;;  %s50_s18 = int_to_ptr.vmem [resolvable:$true] %s49_s18  ;;  %s73_s21 = int_to_ptr.vmem [resolvable:$true] %s72_s21 }
  0x3c   :  { %s4515_s22 = scalar_lea.vmem %s50_s18, 256  ;;  %p4520_p13 = scmp.lt.s32.totalorder %s50_s18, %s50_s18 }
  0x3d   :  { %p4516_p12 = scmp.ne.s32.totalorder %s50_s18, %s4515_s22  ;;  %p4521_p0 = scmp.lt.s32.totalorder %s4515_s22, %s4515_s22 }
  0x3f   :  { %p4522_p1 = por %p4521_p0, %p4520_p13 }
  0x41   :  { %p4523_p2 = pnand %p4522_p1, %p4516_p12 }
  0x43   :  { %4526 = shalt.err (!%p4523_p2)
}
  0x44   :  { %s4593_s23 = smov [#allocation9]   ;;  %s4527_s1 = scalar_lea.vmem %s73_s21, 128 }
  0x45   :  { %55 = dma.vmem_to_smem %s50_s18, 256, %s4593_s23, [#allocation6], %s4591_s0, %s4591_s0, %s4592_s5  }
  0x46   :  { %p4528_p3 = scmp.ne.s32.totalorder %s73_s21, %s4527_s1  ;;  %p4532_p4 = scmp.lt.s32.totalorder %s73_s21, %s73_s21 }
  0x47   :  { %p4533_p5 = scmp.lt.s32.totalorder %s4527_s1, %s4527_s1 }
  0x49   :  { %p4534_p6 = por %p4533_p5, %p4532_p4 }
  0x4b   :  { %p4535_p7 = pnand %p4534_p6, %p4528_p3 }
  0x4d   :  { %4538 = shalt.err (!%p4535_p7)
}
  0x4e   :  { %s4594_s2 = smov [#allocation12]   ;;  %s92_s25 = sshll.u32 %s7077_s6, 4  ;;  %s93_s25 = int_to_ptr.vmem [resolvable:$true] %s92_s25 }
  0x4f   :  { %75 = dma.vmem_to_smem %s73_s21, 128, %s4594_s2, [#allocation11]  }
  0x50   :  { %s4539_s26 = scalar_lea.vmem %s93_s25, 16  ;;  %p4544_p9 = scmp.lt.s32.totalorder %s93_s25, %s93_s25 }
  0x51   :  { %p4540_p8 = scmp.ne.s32.totalorder %s93_s25, %s4539_s26  ;;  %p4545_p10 = scmp.lt.s32.totalorder %s4539_s26, %s4539_s26 }
  0x53   :  { %p4546_p11 = por %p4545_p10, %p4544_p9 }
  0x55   :  { %p4547_p12 = pnand %p4546_p11, %p4540_p8 }
  0x57   :  { %4550 = shalt.err (!%p4547_p12)
}
  0x58   :  { %s4595_s27 = smov [#allocation15]  }
  0x59   :  { %95 = dma.vmem_to_smem %s93_s25, 16, %s4595_s27, [#allocation14]  }
  0x5a   :  { %4573 = dma.done.wait [#allocation4], 1024  }
  0x5b   :  { %4574 = vsyncadd [#allocation4], 4294966272 }
  0x5c   :  { %4575 = dma.done.wait [#allocation8], 2560  }
  0x5d   :  { %4576 = vsyncadd [#allocation8], 4294964736 }
  0x5e   :  { %4577 = dma.done.wait [#allocation6], 256  }
  0x5f   :  { %4578 = vsyncadd [#allocation6], 4294967040 }
  0x60   :  { %4579 = dma.done.wait [#allocation11], 144  }
  0x61   :  { %4580 = vsyncadd [#allocation11], 4294967152 }
  0x62   :  { %4581 = dma.done.wait [#allocation14], 32  }
  0x63   :  { %4582 = vsyncadd [#allocation14], 4294967264 }
  0x64   :  { %119 = sfence }
  0x65   :  { %v4278_v0 = vld [vmem:[#allocation3] sm:$0xff]   ;;  %v4342_v1 = vld [vmem:[#allocation3 + $0x8] sm:$0xff]   ;;  %v4344_v8 = vld [vmem:[#allocation3 + $0x10] sm:$0xff]   ;;  %s4797_s6 = sld [smem:[#allocation9]]  ;;  %s4960_s0 = sld [smem:[#allocation9 + $0x1]] }
  0x66   :  { %v4279_v2 = vunpack.c.0.s8 %v4278_v0  ;;  %v4280_v3 = vunpack.c.1.s8 %v4278_v0  ;;  %v4283_v4 = vunpack.c.2.s8 %v4278_v0  ;;  %v4284_v5 = vunpack.c.3.s8 %v4278_v0  ;;  %v4346_v27 = vld [vmem:[#allocation3 + $0x18] sm:$0xff]   ;;  %v4348_v37 = vld [vmem:[#allocation3 + $0x20] sm:$0xff]   ;;  %v4350_v39 = vld [vmem:[#allocation3 + $0x28] sm:$0xff]   ;;  %s4802_s28 = sld [smem:[#allocation9 + $0x80]]  ;;  %s4962_s5 = sld [smem:[#allocation9 + $0x81]] }
  0x67   :  { %v4287_v6 = vunpack.c.0.s8 %v4342_v1  ;;  %v4288_v7 = vunpack.c.1.s8 %v4342_v1  ;;  %v4291_v9 = vunpack.c.2.s8 %v4342_v1  ;;  %v4292_v10 = vunpack.c.3.s8 %v4342_v1  ;;  %v4718_v48 = vld [vmem:[#allocation3 + $0x30] sm:$0xff]   ;;  %v4729_v60 = vld [vmem:[#allocation3 + $0x38] sm:$0xff]   ;;  %s4814_s29 = sld [smem:[#allocation9 + $0x100]]  ;;  %s4978_s14 = sld [smem:[#allocation9 + $0x101]] }
  0x68   :  { %v4682_v11 = vcvt.s32.f32 %v4279_v2  ;;  %v4684_v12 = vcvt.s32.f32 %v4280_v3  ;;  %v4686_v13 = vcvt.s32.f32 %v4283_v4  ;;  %v4688_v14 = vcvt.s32.f32 %v4284_v5  ;;  %s4816_s30 = sld [smem:[#allocation9 + $0x180]]  ;;  %s4994_s15 = sld [smem:[#allocation9 + $0x181]] }
  0x69   :  { %v4295_v15 = vunpack.c.0.s8 %v4344_v8  ;;  %v4296_v16 = vunpack.c.1.s8 %v4344_v8  ;;  %v4690_v17 = vcvt.s32.f32 %v4287_v6  ;;  %v4692_v18 = vcvt.s32.f32 %v4288_v7  ;;  %s4827_s9 = sld [smem:[#allocation9 + $0x200]]  ;;  %s5020_s16 = sld [smem:[#allocation9 + $0x201]] }
  0x6a   :  { %v216_v19 = vadd.f32 %v4686_v13, %v4682_v11  ;;  %v231_v20 = vadd.f32 %v4688_v14, %v4684_v12  ;;  %v4698_v21 = vcvt.s32.f32 %v4291_v9  ;;  %v4700_v22 = vcvt.s32.f32 %v4292_v10  ;;  %s4850_s10 = sld [smem:[#allocation9 + $0x280]]  ;;  %s5046_s17 = sld [smem:[#allocation9 + $0x281]] }
  0x6b   :  { %v4299_v25 = vunpack.c.2.s8 %v4344_v8  ;;  %v4300_v26 = vunpack.c.3.s8 %v4344_v8  ;;  %v4704_v28 = vcvt.s32.f32 %v4295_v15  ;;  %v4706_v29 = vcvt.s32.f32 %v4296_v16  ;;  %s4869_s11 = sld [smem:[#allocation9 + $0x300]]  ;;  %s5056_s18 = sld [smem:[#allocation9 + $0x301]] }
  0x6c   :  { %v217_v23 = vadd.f32 %v216_v19, %v4690_v17  ;;  %v232_v24 = vadd.f32 %v231_v20, %v4692_v18  ;;  %v4303_v34 = vunpack.c.0.s8 %v4346_v27  ;;  %v4304_v36 = vunpack.c.1.s8 %v4346_v27  ;;  %s4871_s12 = sld [smem:[#allocation9 + $0x380]]  ;;  %s5089_s19 = sld [smem:[#allocation9 + $0x381]] }
  0x6d   :  { %v4712_v35 = vcvt.s32.f32 %v4299_v25  ;;  %v4714_v38 = vcvt.s32.f32 %v4300_v26  ;;  %v4307_v41 = vunpack.c.2.s8 %v4346_v27  ;;  %v4308_v42 = vunpack.c.3.s8 %v4346_v27  ;;  %s4895_s13 = sld [smem:[#allocation9 + $0x400]]  ;;  %s5097_s20 = sld [smem:[#allocation9 + $0x401]] }
  0x6e   :  { %v218_v30 = vadd.f32 %v217_v23, %v4698_v21  ;;  %v233_v31 = vadd.f32 %v232_v24, %v4700_v22  ;;  %v4311_v45 = vunpack.c.0.s8 %v4348_v37  ;;  %v4312_v46 = vunpack.c.1.s8 %v4348_v37  ;;  %s4905_s3 = sld [smem:[#allocation9 + $0x480]]  ;;  %s5120_s21 = sld [smem:[#allocation9 + $0x481]] }
  0x6f   :  { %v4315_v47 = vunpack.c.2.s8 %v4348_v37  ;;  %v4720_v49 = vcvt.s32.f32 %v4303_v34  ;;  %v4316_v50 = vunpack.c.3.s8 %v4348_v37  ;;  %v4319_v51 = vunpack.c.0.s8 %v4350_v39  ;;  %s5218_s22 = sld [smem:[#allocation9 + $0x2]] }
  0x70   :  { %v219_v32 = vadd.f32 %v218_v30, %v4704_v28  ;;  %v234_v33 = vadd.f32 %v233_v31, %v4706_v29  ;;  %v4320_v52 = vunpack.c.1.s8 %v4350_v39  ;;  %v4722_v53 = vcvt.s32.f32 %v4304_v36  ;;  %s5220_s23 = sld [smem:[#allocation9 + $0x82]] }
  0x71   :  { %v4323_v54 = vunpack.c.2.s8 %v4350_v39  ;;  %v4324_v55 = vunpack.c.3.s8 %v4350_v39  ;;  %v250_v57 = vadd.f32 %v4684_v12, %v4682_v11  ;;  %v4327_v58 = vunpack.c.0.s8 %v4718_v48  ;;  %s5248_s1 = sld [smem:[#allocation9 + $0x102]] }
  0x72   :  { %v220_v40 = vadd.f32 %v219_v32, %v4712_v35  ;;  %v235_v43 = vadd.f32 %v234_v33, %v4714_v38  ;;  %7300 = vst [vmem:[#allocation23_spill] sm:$0xff] %v4722_v53  ;;  %v4328_v59 = vunpack.c.1.s8 %v4718_v48  ;;  %v257_v62 = vadd.f32 %v4688_v14, %v4686_v13  ;;  %s5268_s2 = sld [smem:[#allocation9 + $0x182]] }
  0x73   :  { %v4331_v63 = vunpack.c.2.s8 %v4718_v48  ;;  %v4332_v0 = vunpack.c.3.s8 %v4718_v48  ;;  %v4736_v1 = vcvt.s32.f32 %v4307_v41  ;;  %v264_v2 = vadd.f32 %v4692_v18, %v4690_v17  ;;  %s5296_s4 = sld [smem:[#allocation9 + $0x202]] }
  0x74   :  { %v221_v56 = vadd.f32 %v220_v40, %v4720_v49  ;;  %v236_v61 = vadd.f32 %v235_v43, %v4722_v53  ;;  %v4740_v3 = vcvt.s32.f32 %v4308_v42  ;;  %v271_v4 = vadd.f32 %v4700_v22, %v4698_v21  ;;  %s5298_s24 = sld [smem:[#allocation9 + $0x282]] }
  0x75   :  { %7301 = vst [vmem:[#allocation24_spill] sm:$0xff] %v4736_v1  ;;  %v278_v5 = vadd.f32 %v4706_v29, %v4704_v28  ;;  %v285_v6 = vadd.f32 %v4714_v38, %v4712_v35  ;;  %v4335_v7 = vunpack.c.0.s8 %v4729_v60  ;;  %v4336_v8 = vunpack.c.1.s8 %v4729_v60  ;;  %s5307_s25 = sld [smem:[#allocation9 + $0x302]] }
  0x76   :  { %7302 = vst [vmem:[#allocation25_spill] sm:$0xff] %v4740_v3  ;;  %v222_v9 = vadd.f32 %v221_v56, %v4736_v1  ;;  %v251_v10 = vrot.slane %v250_v57, 4  ;;  %v4339_v15 = vunpack.c.2.s8 %v4729_v60  ;;  %v237_v19 = vadd.f32 %v236_v61, %v4740_v3  ;;  %s5309_s26 = sld [smem:[#allocation9 + $0x382]] }
  0x77   :  { %v258_v20 = vrot.slane %v257_v62, 4  ;;  %v4754_v23 = vcvt.s32.f32 %v4311_v45  ;;  %v4756_v24 = vcvt.s32.f32 %v4312_v46  ;;  %v4758_v25 = vcvt.s32.f32 %v4315_v47  ;;  %s5322_s27 = sld [smem:[#allocation9 + $0x402]] }
  0x78   :  { %v265_v26 = vrot.slane %v264_v2, 4  ;;  %v4760_v27 = vcvt.s32.f32 %v4316_v50  ;;  %v272_v30 = vrot.slane %v271_v4, 4  ;;  %v279_v31 = vrot.slane %v278_v5, 4 }
  0x79   :  { %7303 = vst [vmem:[#allocation26_spill] sm:$0xff] %v4754_v23  ;;  %7304 = vst [vmem:[#allocation27_spill] sm:$0xff] %v4756_v24  ;;  %v286_v32 = vrot.slane %v285_v6, 4  ;;  %v4762_v33 = vcvt.s32.f32 %v4319_v51  ;;  %v4764_v34 = vcvt.s32.f32 %v4320_v52  ;;  %v223_v36 = vadd.f32 %v222_v9, %v4754_v23 }
  0x7a   :  { %7305 = vst [vmem:[#allocation28_spill] sm:$0xff] %v4758_v25  ;;  %7306 = vst [vmem:[#allocation29_spill] sm:$0xff] %v4760_v27  ;;  %v252_v37 = vadd.f32 %v251_v10, %v250_v57  ;;  %v4767_v39 = vcvt.s32.f32 %v4323_v54  ;;  %v4769_v40 = vcvt.s32.f32 %v4324_v55  ;;  %v238_v41 = vadd.f32 %v237_v19, %v4756_v24 }
  0x7b   :  { %7307 = vst [vmem:[#allocation30_spill] sm:$0xff] %v4762_v33  ;;  %7308 = vst [vmem:[#allocation31_spill] sm:$0xff] %v4764_v34  ;;  %v259_v42 = vadd.f32 %v258_v20, %v257_v62  ;;  %v4772_v43 = vcvt.s32.f32 %v4327_v58  ;;  %v4774_v45 = vcvt.s32.f32 %v4328_v59  ;;  %v266_v46 = vadd.f32 %v265_v26, %v264_v2 }
  0x7c   :  { %7309 = vst [vmem:[#allocation32_spill] sm:$0xff] %v4767_v39  ;;  %7310 = vst [vmem:[#allocation33_spill] sm:$0xff] %v4769_v40  ;;  %v292_v47 = vadd.f32 %v4722_v53, %v4720_v49  ;;  %v273_v48 = vadd.f32 %v272_v30, %v271_v4  ;;  %v280_v50 = vadd.f32 %v279_v31, %v278_v5  ;;  %v4780_v54 = vcvt.s32.f32 %v4331_v63 }
  0x7d   :  { %7311 = vst [vmem:[#allocation34_spill] sm:$0xff] %v4772_v43  ;;  %7312 = vst [vmem:[#allocation35_spill] sm:$0xff] %v4774_v45  ;;  %v287_v51 = vadd.f32 %v286_v32, %v285_v6  ;;  %v299_v52 = vadd.f32 %v4740_v3, %v4736_v1  ;;  %v224_v55 = vadd.f32 %v223_v36, %v4758_v25  ;;  %v253_v56 = vrot.slane %v252_v37, 2 }
  0x7e   :  { %7313 = vst [vmem:[#allocation36_spill] sm:$0xff] %v4780_v54  ;;  %v306_v57 = vadd.f32 %v4756_v24, %v4754_v23  ;;  %v239_v58 = vadd.f32 %v238_v41, %v4760_v27  ;;  %v260_v59 = vrot.slane %v259_v42, 2  ;;  %v313_v61 = vadd.f32 %v4760_v27, %v4758_v25 }
  0x7f   :  { %v320_v62 = vadd.f32 %v4764_v34, %v4762_v33  ;;  %v4790_v2 = vcvt.s32.f32 %v4332_v0  ;;  %v267_v4 = vrot.slane %v266_v46, 2  ;;  %v293_v63 = vrot.slane %v292_v47, 4 }
  0x80   :  { %v327_v5 = vadd.f32 %v4769_v40, %v4767_v39  ;;  %v274_v6 = vrot.slane %v273_v48, 2  ;;  %v281_v9 = vrot.slane %v280_v50, 2  ;;  %v288_v10 = vrot.slane %v287_v51, 2 }
  0x81   :  { %7314 = vst [vmem:[#allocation37_spill] sm:$0xff] %v4790_v2  ;;  %v300_v19 = vrot.slane %v299_v52, 4  ;;  %v4794_v20 = vcvt.s32.f32 %v4335_v7  ;;  %v225_v26 = vadd.f32 %v224_v55, %v4762_v33  ;;  %v254_v30 = vadd.f32 %v253_v56, %v252_v37 }
  0x82   :  { %v307_v31 = vrot.slane %v306_v57, 4  ;;  %v240_v0 = vadd.f32 %v239_v58, %v4764_v34  ;;  %v261_v32 = vadd.f32 %v260_v59, %v259_v42  ;;  %v314_v36 = vrot.slane %v313_v61, 4 }
  0x83   :  { %7315 = vst [vmem:[#allocation38_spill] sm:$0xff] %v4794_v20  ;;  %v321_v41 = vrot.slane %v320_v62, 4  ;;  %v4800_v44 = vcvt.s32.f32 %v4336_v8  ;;  %v268_v16 = vadd.f32 %v267_v4, %v266_v46  ;;  %v294_v27 = vadd.f32 %v293_v63, %v292_v47  ;;  %v4812_v4 = vld [vmem:[#allocation7] sm:$0xff] }
  0x84   :  { %v328_v25 = vrot.slane %v327_v5, 4  ;;  %v275_v24 = vadd.f32 %v274_v6, %v273_v48  ;;  %v282_v23 = vadd.f32 %v281_v9, %v280_v50  ;;  %v289_v7 = vadd.f32 %v288_v10, %v287_v51 }
  0x85   :  { %7316 = vst [vmem:[#allocation39_spill] sm:$0xff] %v4800_v44  ;;  %v301_v3 = vadd.f32 %v300_v19, %v299_v52  ;;  %v4804_v37 = vcvt.s32.f32 %v4339_v15  ;;  %v226_v55 = vadd.f32 %v225_v26, %v4767_v39  ;;  %v255_v56 = vrot.slane %v254_v30, 1  ;;  %v4825_v26 = vld [vmem:[#allocation7 + $0x10] sm:$0xff] }
  0x86   :  { %v308_v58 = vadd.f32 %v307_v31, %v306_v57  ;;  %v241_v42 = vadd.f32 %v240_v0, %v4769_v40  ;;  %v262_v59 = vrot.slane %v261_v32, 1  ;;  %v315_v8 = vadd.f32 %v314_v36, %v313_v61 }
  0x87   :  { %v322_v46 = vadd.f32 %v321_v41, %v320_v62  ;;  %v7317_v47 = vunpack.c.3.s8 %v4729_v60  ;;  %v269_v50 = vrot.slane %v268_v16, 1  ;;  %v295_v51 = vrot.slane %v294_v27, 2 }
  0x88   :  { %v329_v52 = vadd.f32 %v328_v25, %v327_v5  ;;  %v276_v15 = vrot.slane %v275_v24, 1  ;;  %v283_v63 = vrot.slane %v282_v23, 1  ;;  %v290_v57 = vrot.slane %v289_v7, 1 }
  0x89   :  { %v4810_v48 = vcvt.s32.f32 %v7317_v47  ;;  %v302_v6 = vrot.slane %v301_v3, 2  ;;  %v227_v61 = vadd.f32 %v226_v55, %v4772_v43  ;;  %v4819_v62 = vadd.f32 %v255_v56, %v254_v30 }
  0x8a   :  { %v309_v60 = vrot.slane %v308_v58, 2  ;;  %v7085_v9 = vstv %s4797_s6  ;;  %v242_v25 = vadd.f32 %v241_v42, %v4774_v45  ;;  %v4823_v5 = vadd.f32 %v262_v59, %v261_v32 }
  0x8b   :  { %v316_v10 = vrot.slane %v315_v8, 2  ;;  %v323_v19 = vrot.slane %v322_v46, 2  ;;  %v4829_v31 = vadd.f32 %v269_v50, %v268_v16  ;;  %v296_v0 = vadd.f32 %v295_v51, %v294_v27 }
  0x8c   :  { %v330_v36 = vrot.slane %v329_v52, 2  ;;  %v448_v30 = vmul.f32 %v7085_v9, %v4812_v4  ;;  %v4834_v41 = vadd.f32 %v276_v15, %v275_v24  ;;  %v4836_v55 = vadd.f32 %v283_v63, %v282_v23  ;;  %v4846_v23 = vld [vmem:[#allocation7 + $0x20] sm:$0xff] }
  0x8d   :  { %v303_v56 = vadd.f32 %v302_v6, %v301_v3  ;;  %v451_v32 = vstv %s4802_s28  ;;  %v228_v42 = vadd.f32 %v227_v61, %v4780_v54  ;;  %v4840_v59 = vadd.f32 %v290_v57, %v289_v7  ;;  %7318 = vst [vmem:[#allocation40_spill] sm:$0xff] %v4846_v23  ;;  %v4848_v3 = vld [vmem:[#allocation7 + $0x30] sm:$0xff]  ;;  %s5330_s28 = sld [smem:[#allocation10]] }
  0x8e   :  { %v310_v47 = vadd.f32 %v309_v60, %v308_v58  ;;  %v452_v16 = vmul.f32 %v451_v32, %v4825_v26  ;;  %v243_v27 = vadd.f32 %v242_v25, %v4790_v2  ;;  %v317_v50 = vadd.f32 %v316_v10, %v315_v8  ;;  %7319 = vst [vmem:[#allocation41_spill] sm:$0xff] %v4848_v3 }
  0x8f   :  { %v324_v51 = vadd.f32 %v323_v19, %v322_v46  ;;  %v334_v24 = vadd.f32 %v4774_v45, %v4772_v43  ;;  %v297_v7 = vrot.slane %v296_v0, 1  ;;  %v331_v58 = vadd.f32 %v330_v36, %v329_v52  ;;  %v4856_v46 = vld [vmem:[#allocation7 + $0x40] sm:$0xff]  ;;  %v4880_v43 = vld [vmem:[#allocation7 + $0x18] sm:$0xff] }
  0x90   :  { %v341_v15 = vadd.f32 %v4790_v2, %v4780_v54  ;;  %v454_v63 = vadd.f32 %v452_v16, %v448_v30  ;;  %v304_v57 = vrot.slane %v303_v56, 1  ;;  %v348_v8 = vadd.f32 %v4800_v44, %v4794_v20  ;;  %7320 = vst [vmem:[#allocation42_spill] sm:$0xff] %v4856_v46 }
  0x91   :  { %v457_v6 = vstv %s4814_s29  ;;  %v7089_v61 = vstv %s4816_s30  ;;  %v229_v60 = vadd.f32 %v228_v42, %v4794_v20  ;;  %v355_v25 = vadd.f32 %v4810_v48, %v4804_v37  ;;  %s5360_s29 = sld [smem:[#allocation10 + $0x1]] }
  0x92   :  { %v458_v52 = vmul.f32 %v457_v6, %v4846_v23  ;;  %v464_v10 = vmul.f32 %v7089_v61, %v4848_v3  ;;  %v244_v19 = vadd.f32 %v243_v27, %v4800_v44  ;;  %v311_v36 = vrot.slane %v310_v47, 1  ;;  %v4878_v44 = vld [vmem:[#allocation7 + $0x8] sm:$0xff] }
  0x93   :  { %v335_v30 = vrot.slane %v334_v24, 4  ;;  %v7097_v16 = vstv %s4827_s9  ;;  %v318_v9 = vrot.slane %v317_v50, 1  ;;  %v342_v2 = vrot.slane %v341_v15, 4  ;;  %7321 = vst [vmem:[#allocation43_spill] sm:$0xff] %v4878_v44 }
  0x94   :  { %v460_v42 = vadd.f32 %v458_v52, %v454_v63  ;;  %v470_v20 = vmul.f32 %v7097_v16, %v4856_v46  ;;  %v4876_v54 = vadd.f32 %v297_v7, %v296_v0  ;;  %v325_v61 = vrot.slane %v324_v51, 1  ;;  %v4888_v7 = vld [vmem:[#allocation7 + $0x50] sm:$0xff] }
  0x95   :  { %v332_v45 = vrot.slane %v331_v58, 1  ;;  %v349_v27 = vrot.slane %v348_v8, 4  ;;  %v230_v40 = vadd.f32 %v229_v60, %v4804_v37  ;;  %v4883_v39 = vadd.f32 %v304_v57, %v303_v56 }
  0x96   :  { %v356_v34 = vrot.slane %v355_v25, 4  ;;  %v466_v63 = vadd.f32 %v464_v10, %v460_v42  ;;  %v245_v52 = vadd.f32 %v244_v19, %v4810_v48  ;;  %v4886_v33 = vadd.f32 %v311_v36, %v310_v47  ;;  %v4903_v10 = vld [vmem:[#allocation7 + $0x28] sm:$0xff]  ;;  %v4920_v36 = vld [vmem:[#allocation7 + $0x38] sm:$0xff] }
  0x97   :  { %v336_v0 = vadd.f32 %v335_v30, %v334_v24  ;;  %v475_v16 = vstv %s4850_s10  ;;  %v343_v1 = vadd.f32 %v342_v2, %v341_v15  ;;  %v7322_v46 = vstv %s4797_s6  ;;  %s5328_s6 = sld [smem:[#allocation9 + $0x482]]  ;;  %s5409_s10 = sld [smem:[#allocation9 + $0x103]] }
  0x98   :  { %v449_v3 = vmul.f32 %v7322_v46, %v4878_v44  ;;  %v453_v53 = vmul.f32 %v451_v32, %v4880_v43  ;;  %v472_v60 = vadd.f32 %v470_v20, %v466_v63  ;;  %v4897_v56 = vadd.f32 %v318_v9, %v317_v50  ;;  %v4908_v20 = vld [vmem:[#allocation7 + $0x60] sm:$0xff] }
  0x99   :  { %v4899_v47 = vadd.f32 %v325_v61, %v324_v51  ;;  %v4901_v24 = vadd.f32 %v332_v45, %v331_v58  ;;  %v350_v57 = vadd.f32 %v349_v27, %v348_v8  ;;  %v246_v2 = vmax.f32 %v230_v40, 1.0  ;;  %v4913_v45 = vld [vmem:[#allocation7 + $0x70] sm:$0xff] }
  0x9a   :  { %v357_v15 = vadd.f32 %v356_v34, %v355_v25  ;;  %v362_v32 = vmax.f32 %v4819_v62, 1.0  ;;  %v476_v9 = vmul.f32 %v475_v16, %v4888_v7  ;;  %v247_v50 = vmax.f32 %v245_v52, 1.0 }
  0x9b   :  { %v337_v51 = vrot.slane %v336_v0, 2  ;;  %v7104_v58 = vstv %s4869_s11  ;;  %v7105_v8 = vstv %s4871_s12  ;;  %v344_v46 = vrot.slane %v343_v1, 2 }
  0x9c   :  { %v455_v61 = vadd.f32 %v453_v53, %v449_v3  ;;  %v459_v40 = vmul.f32 %v457_v6, %v4903_v10  ;;  %v478_v34 = vadd.f32 %v476_v9, %v472_v60  ;;  %v351_v25 = vrot.slane %v350_v57, 2  ;;  %v4930_v6 = vld [vmem:[#allocation7 + $0x80] sm:$0xff] }
  0x9d   :  { %v363_v62 = vmax.f32 %v4823_v5, 1.0  ;;  %v364_v19 = vmax.f32 %v4829_v31, 1.0  ;;  %v482_v30 = vmul.f32 %v7104_v58, %v4908_v20  ;;  %4369 = vrsqrt.f32 %v246_v2  ;;  %v4936_v58 = vld [vmem:[#allocation7 + $0x48] sm:$0xff] }
  0x9e   :  { %v358_v42 = vrot.slane %v357_v15, 2  ;;  %v365_v27 = vmax.f32 %v4834_v41, 1.0  ;;  %v488_v53 = vmul.f32 %v7105_v8, %v4913_v45  ;;  %4371 = vrsqrt.f32 %v247_v50  ;;  %v4938_v50 = vld [vmem:[#allocation7 + $0x90] sm:$0xff] }
  0x9f   :  { %v338_v3 = vadd.f32 %v337_v51, %v336_v0  ;;  %v366_v5 = vmax.f32 %v4836_v55, 1.0  ;;  %v484_v31 = vadd.f32 %v482_v30, %v478_v34  ;;  %v345_v63 = vadd.f32 %v344_v46, %v343_v1 }
  0xa0   :  { %v461_v52 = vadd.f32 %v459_v40, %v455_v61  ;;  %v7323_v60 = vstv %s4816_s30  ;;  %v493_v9 = vstv %s4895_s13  ;;  %v352_v41 = vadd.f32 %v351_v25, %v350_v57  ;;  %s5385_s30 = sld [smem:[#allocation9 + $0x3]] }
  0xa1   :  { %v465_v2 = vmul.f32 %v7323_v60, %v4920_v36  ;;  %4373 = vrsqrt.f32 %v362_v32  ;;  %v490_v0 = vadd.f32 %v488_v53, %v484_v31  ;;  %v499_v55 = vstv %s4905_s3  ;;  %s5480_s13 = sld [smem:[#allocation9 + $0x283]] }
  0xa2   :  { %v359_v51 = vadd.f32 %v358_v42, %v357_v15  ;;  %v367_v8 = vmax.f32 %v4840_v59, 1.0  ;;  %4375 = vrsqrt.f32 %v363_v62  ;;  %v494_v1 = vmul.f32 %v493_v9, %v4930_v6  ;;  %v4953_v62 = vld [vmem:[#allocation7 + $0x58] sm:$0xff]  ;;  %s5482_s3 = sld [smem:[#allocation9 + $0x303]] }
  0xa3   :  { %v339_v46 = vrot.slane %v338_v3, 1  ;;  %v368_v61 = vmax.f32 %v4876_v54, 1.0  ;;  %v369_v57 = vmax.f32 %v4883_v39, 1.0  ;;  %4377 = vrsqrt.f32 %v364_v19 }
  0xa4   :  { %v467_v32 = vadd.f32 %v465_v2, %v461_v52  ;;  %v7324_v40 = vstv %s4827_s9  ;;  %v496_v25 = vadd.f32 %v494_v1, %v490_v0  ;;  %v500_v15 = vmul.f32 %v499_v55, %v4938_v50  ;;  %s5391_s9 = sld [smem:[#allocation9 + $0x83]] }
  0xa5   :  { %v471_v34 = vmul.f32 %v7324_v40, %v4936_v58  ;;  %v346_v30 = vrot.slane %v345_v63, 1  ;;  %v353_v59 = vrot.slane %v352_v41, 1  ;;  %4379 = vrsqrt.f32 %v365_v27 }
  0xa6   :  { %v360_v42 = vrot.slane %v359_v51, 1  ;;  %4381 = vrsqrt.f32 %v366_v5  ;;  %v4596_v54 = vmov 1966171168   ;;  %v7325_v39 = vlaneseq }
  0xa7   :  { %v508_v53 = vunpack.c.l.s4 %v4596_v54  ;;  %v340_v31 = vadd.f32 %v339_v46, %v338_v3  ;;  %v370_v52 = vmax.f32 %v4886_v33, 1.0  ;;  %v371_v60 = vmax.f32 %v4897_v56, 1.0  ;;  %v4964_v27 = vpop.eup %4369 }
  0xa8   :  { %v4956_v19 = vshrl.u32 %v7325_v39, 7  ;;  %4383 = vrsqrt.f32 %v367_v8  ;;  %7326 = vst [vmem:[#allocation44_spill] sm:$0xff] %v4964_v27  ;;  %v473_v2 = vadd.f32 %v471_v34, %v467_v32  ;;  %v477_v5 = vmul.f32 %v475_v16, %v4953_v62  ;;  %v4969_v40 = vpop.eup %4371  ;;  %v4973_v8 = vld [vmem:[#allocation7 + $0x68] sm:$0xff] }
  0xa9   :  { %v502_v0 = vadd.f32 %v500_v15, %v496_v25  ;;  %v509_v1 = vunpack.c.0.s8 %v508_v53  ;;  %7327 = vst [vmem:[#allocation45_spill] sm:$0xff] %v4969_v40  ;;  %v347_v3 = vadd.f32 %v346_v30, %v345_v63  ;;  %v372_v33 = vmax.f32 %v4899_v47, 1.0  ;;  %7328 = vst [vmem:[#allocation46_spill] sm:$0xff] %v4973_v8  ;;  %v4984_v25 = vld [vmem:[#allocation7 + $0x78] sm:$0xff] }
  0xaa   :  { %v373_v56 = vmax.f32 %v4901_v24, 1.0  ;;  %4385 = vrsqrt.f32 %v368_v61  ;;  %v354_v46 = vadd.f32 %v353_v59, %v352_v41  ;;  %v361_v54 = vadd.f32 %v360_v42, %v359_v51  ;;  %7330 = vst [vmem:[#allocation47_spill] sm:$0xff] %v4984_v25 }
  0xab   :  { %4387 = vrsqrt.f32 %v369_v57  ;;  %v4976_v32 = vsub.s32 %v509_v1, %v4956_v19  ;;  %v4374_v16 = vpop.eup %4373  ;;  %v374_v34 = vmax.f32 %v340_v31, 1.0  ;;  %v479_v47 = vadd.f32 %v477_v5, %v473_v2 }
  0xac   :  { %4389 = vrsqrt.f32 %v370_v52  ;;  %v4376_v63 = vpop.eup %4375  ;;  %v7329_v24 = vstv %s4869_s11  ;;  %v375_v57 = vmax.f32 %v347_v3, 1.0  ;;  %v376_v15 = vmax.f32 %v354_v46, 1.0  ;;  %s5448_s11 = sld [smem:[#allocation9 + $0x183]] }
  0xad   :  { %4391 = vrsqrt.f32 %v371_v60  ;;  %v483_v61 = vmul.f32 %v7329_v24, %v4973_v8  ;;  %v513_v41 = vrot.slane %v502_v0, %v4976_v32  ;;  %v4378_v51 = vpop.eup %4377  ;;  %v377_v30 = vmax.f32 %v361_v54, 1.0 }
  0xae   :  { %4393 = vrsqrt.f32 %v372_v33  ;;  %v4987_v59 = vmul.f32 %v4374_v16, %v4682_v11  ;;  %v4990_v53 = vmul.f32 %v4374_v16, %v4684_v12  ;;  %v7108_v31 = vstv %s4960_s0 }
  0xaf   :  { %4395 = vrsqrt.f32 %v373_v56  ;;  %v4380_v42 = vpop.eup %4379  ;;  %v521_v39 = vcombine.high %v513_v41, %v513_v41  ;;  %v7107_v52 = vstv %s4962_s5  ;;  %v485_v2 = vadd.f32 %v483_v61, %v479_v47  ;;  %v5005_v56 = vld [vmem:[#allocation7 + $0x88] sm:$0xff] }
  0xb0   :  { %7331 = vst [vmem:[#allocation48_spill] sm:$0xff] %v4987_v59  ;;  %7332 = vst [vmem:[#allocation49_spill] sm:$0xff] %v4990_v53  ;;  %v4382_v60 = vpop.eup %4381  ;;  %4397 = vrsqrt.f32 %v374_v34  ;;  %v7333_v5 = vstv %s4871_s12  ;;  %v506_v3 = vcombine.high %v502_v0, %v502_v0  ;;  %v5000_v12 = vmul.f32 %v4376_v63, %v4686_v13  ;;  %s5450_s12 = sld [smem:[#allocation9 + $0x203]] }
  0xb1   :  { %v489_v1 = vmul.f32 %v7333_v5, %v4984_v25  ;;  %4399 = vrsqrt.f32 %v375_v57  ;;  %v5003_v33 = vmul.f32 %v4376_v63, %v4688_v14  ;;  %7336 = vst [vmem:[#allocation52_spill] sm:$0xff] %v5005_v56  ;;  %v529_v46 = vrot.slane %v513_v41, %v4976_v32 }
  0xb2   :  { %v4384_v11 = vpop.eup %4383  ;;  %7334 = vst [vmem:[#allocation50_spill] sm:$0xff] %v5000_v12  ;;  %v5009_v54 = vmul.f32 %v4378_v51, %v4690_v17  ;;  %v5012_v16 = vmul.f32 %v4378_v51, %v4692_v18  ;;  %v756_v0 = vmul.f32 %v7108_v31, %v4812_v4  ;;  %v760_v13 = vmul.f32 %v7107_v52, %v4825_v26 }
  0xb3   :  { %7335 = vst [vmem:[#allocation51_spill] sm:$0xff] %v5003_v33  ;;  %4401 = vrsqrt.f32 %v376_v15  ;;  %v543_v34 = vrot.slane %v521_v39, %v4976_v32  ;;  %v5024_v63 = vsub.s32 0, %v4956_v19  ;;  %v7106_v17 = vstv %s4978_s14  ;;  %v5044_v15 = vld [vmem:[#allocation7 + $0x98] sm:$0xff] }
  0xb4   :  { %7337 = vst [vmem:[#allocation53_spill] sm:$0xff] %v5009_v54  ;;  %7338 = vst [vmem:[#allocation54_spill] sm:$0xff] %v5012_v16  ;;  %v4386_v14 = vpop.eup %4385  ;;  %v5030_v18 = vmul.f32 %v4380_v42, %v4698_v21  ;;  %v491_v24 = vadd.f32 %v489_v1, %v485_v2  ;;  %v495_v61 = vmul.f32 %v493_v9, %v5005_v56  ;;  %4403 = vrsqrt.f32 %v377_v30 }
  0xb5   :  { %v5027_v47 = vpop.eup %4387  ;;  %v520_v41 = vrot.slane %v506_v3, %v4976_v32  ;;  %v5039_v19 = vmul.f32 %v4380_v42, %v4700_v22  ;;  %v5042_v57 = vmul.f32 %v4382_v60, %v4704_v28  ;;  %7342 = vst [vmem:[#allocation58_spill] sm:$0xff] %v5044_v15  ;;  %v551_v21 = vcombine.high %v529_v46, %v529_v46 }
  0xb6   :  { %7339 = vst [vmem:[#allocation55_spill] sm:$0xff] %v5030_v18  ;;  %v5036_v51 = vpop.eup %4389  ;;  %v5051_v9 = vmul.f32 %v4382_v60, %v4706_v29  ;;  %v553_v2 = vcombine.high %v543_v34, %v543_v34  ;;  %v762_v30 = vadd.f32 %v760_v13, %v756_v0  ;;  %v766_v22 = vmul.f32 %v7106_v17, %v4846_v23 }
  0xb7   :  { %7340 = vst [vmem:[#allocation56_spill] sm:$0xff] %v5039_v19  ;;  %7341 = vst [vmem:[#allocation57_spill] sm:$0xff] %v5042_v57  ;;  %v5048_v39 = vpop.eup %4391  ;;  %v5061_v42 = vmul.f32 %v4384_v11, %v4712_v35  ;;  %v607_v5 = vrot.slane %v529_v46, %v5024_v63  ;;  %v611_v1 = vrot.slane %v543_v34, %v5024_v63  ;;  %v7344_v46 = vld [vmem:[#allocation23_spill] sm:$0xff]  ;;  %v7347_v40 = vstv %s4994_s15 }
  0xb8   :  { %7343 = vst [vmem:[#allocation59_spill] sm:$0xff] %v5051_v9  ;;  %v5058_v28 = vpop.eup %4393  ;;  %v497_v3 = vadd.f32 %v495_v61, %v491_v24  ;;  %v501_v0 = vmul.f32 %v499_v55, %v5044_v15  ;;  %v522_v13 = vcombine.high %v520_v41, %v520_v41  ;;  %v536_v17 = vrot.slane %v520_v41, %v4976_v32  ;;  %v7346_v61 = vld [vmem:[#allocation41_spill] sm:$0xff] }
  0xb9   :  { %v5066_v60 = vpop.eup %4395  ;;  %v5073_v52 = vmul.f32 %v4384_v11, %v4714_v38  ;;  %v5076_v35 = vmul.f32 %v4386_v14, %v4720_v49  ;;  %v5079_v31 = vmul.f32 %v4386_v14, %v7344_v46  ;;  %v615_v34 = vrot.slane %v551_v21, %v5024_v63 }
  0xba   :  { %v5082_v29 = vpop.eup %4397  ;;  %v619_v24 = vrot.slane %v553_v2, %v5024_v63  ;;  %v768_v55 = vadd.f32 %v766_v22, %v762_v30  ;;  %v772_v41 = vmul.f32 %v7347_v40, %v7346_v61  ;;  %v684_v11 = vmul.f32 %v607_v5, %v4987_v59 }
  0xbb   :  { %7345 = vst [vmem:[#allocation23_spill] sm:$0xff] %v5079_v31  ;;  %v5091_v49 = vpop.eup %4399  ;;  %v685_v14 = vmul.f32 %v607_v5, %v4990_v53  ;;  %v686_v21 = vmul.f32 %v611_v1, %v5000_v12  ;;  %v687_v2 = vmul.f32 %v611_v1, %v5003_v33  ;;  %v503_v40 = vadd.f32 %v501_v0, %v497_v3  ;;  %v7349_v53 = vld [vmem:[#allocation42_spill] sm:$0xff] }
  0xbc   :  { %v550_v30 = vrot.slane %v522_v13, %v4976_v32  ;;  %v623_v22 = vrot.slane %v536_v17, %v5024_v63  ;;  %v7348_v46 = vstv %s4960_s0  ;;  %v688_v61 = vmul.f32 %v615_v34, %v5009_v54  ;;  %s5499_s0 = sld [smem:[#allocation9 + $0x383]] }
  0xbd   :  { %v757_v38 = vmul.f32 %v7348_v46, %v4878_v44  ;;  %v5104_v27 = vpop.eup %4401  ;;  %v689_v5 = vmul.f32 %v615_v34, %v5012_v16  ;;  %v7350_v12 = vstv %s5020_s16  ;;  %v552_v59 = vcombine.high %v536_v17, %v536_v17 }
  0xbe   :  { %v778_v1 = vmul.f32 %v7350_v12, %v7349_v53  ;;  %v690_v3 = vmul.f32 %v619_v24, %v5030_v18  ;;  %v7351_v0 = vstv %s4962_s5  ;;  %v5117_v46 = vpop.eup %4403  ;;  %v691_v54 = vmul.f32 %v619_v24, %v5039_v19  ;;  %s5501_s5 = sld [smem:[#allocation9 + $0x403]] }
  0xbf   :  { %v761_v13 = vmul.f32 %v7351_v0, %v4880_v43  ;;  %v716_v34 = vadd.f32 %v686_v21, %v684_v11  ;;  %v731_v16 = vadd.f32 %v687_v2, %v685_v14  ;;  %v774_v44 = vadd.f32 %v772_v41, %v768_v55 }
  0xc0   :  { %v627_v12 = vrot.slane %v550_v30, %v5024_v63  ;;  %v692_v17 = vmul.f32 %v623_v22, %v5042_v57  ;;  %v693_v33 = vmul.f32 %v623_v22, %v5051_v9  ;;  %v7352_v0 = vstv %s5046_s17 }
  0xc1   :  { %v784_v23 = vmul.f32 %v7352_v0, %v4888_v7  ;;  %v717_v18 = vadd.f32 %v716_v34, %v688_v61  ;;  %v732_v53 = vadd.f32 %v731_v16, %v689_v5  ;;  %v780_v24 = vadd.f32 %v778_v1, %v774_v44 }
  0xc2   :  { %v7353_v11 = vstv %s5056_s18  ;;  %v562_v55 = vrot.slane %v503_v40, %v4976_v32  ;;  %v763_v41 = vadd.f32 %v761_v13, %v757_v38  ;;  %v7354_v21 = vstv %s4978_s14  ;;  %s5519_s14 = sld [smem:[#allocation9 + $0x483]] }
  0xc3   :  { %v790_v14 = vmul.f32 %v7353_v11, %v4908_v20  ;;  %v767_v2 = vmul.f32 %v7354_v21, %v4903_v10  ;;  %v7136_v19 = vstv %s5089_s19  ;;  %v718_v57 = vadd.f32 %v717_v18, %v690_v3  ;;  %v7355_v11 = vld [vmem:[#allocation24_spill] sm:$0xff] }
  0xc4   :  { %v733_v22 = vadd.f32 %v732_v53, %v691_v54  ;;  %v786_v9 = vadd.f32 %v784_v23, %v780_v24  ;;  %v7135_v0 = vstv %s5097_s20  ;;  %v554_v61 = vcombine.high %v550_v30, %v550_v30  ;;  %v7357_v23 = vld [vmem:[#allocation25_spill] sm:$0xff] }
  0xc5   :  { %v631_v44 = vrot.slane %v552_v59, %v5024_v63  ;;  %v694_v16 = vmul.f32 %v627_v12, %v5061_v42  ;;  %v796_v5 = vmul.f32 %v7136_v19, %v4913_v45  ;;  %v695_v38 = vmul.f32 %v627_v12, %v5073_v52 }
  0xc6   :  { %v719_v1 = vadd.f32 %v718_v57, %v692_v17  ;;  %v734_v13 = vadd.f32 %v733_v22, %v693_v33  ;;  %v792_v34 = vadd.f32 %v790_v14, %v786_v9  ;;  %v5145_v53 = vmul.f32 %v5027_v47, %v7355_v11  ;;  %v7360_v9 = vld [vmem:[#allocation26_spill] sm:$0xff]  ;;  %v7362_v22 = vld [vmem:[#allocation27_spill] sm:$0xff] }
  0xc7   :  { %v5149_v54 = vmul.f32 %v5027_v47, %v7357_v23  ;;  %v555_v18 = vcombine.high %v503_v40, %v503_v40  ;;  %v802_v59 = vmul.f32 %v7135_v0, %v4930_v6  ;;  %v769_v30 = vadd.f32 %v767_v2, %v763_v41  ;;  %v7379_v0 = vld [vmem:[#allocation35_spill] sm:$0xff] }
  0xc8   :  { %7356 = vst [vmem:[#allocation24_spill] sm:$0xff] %v5145_v53  ;;  %v7359_v3 = vstv %s4994_s15  ;;  %v798_v57 = vadd.f32 %v796_v5, %v792_v34  ;;  %v7134_v33 = vstv %s5120_s21  ;;  %v5160_v17 = vmul.f32 %v5036_v51, %v7360_v9  ;;  %s5561_s15 = sld [smem:[#allocation10 + $0x2]] }
  0xc9   :  { %7358 = vst [vmem:[#allocation25_spill] sm:$0xff] %v5149_v54  ;;  %v773_v12 = vmul.f32 %v7359_v3, %v4920_v36  ;;  %v570_v24 = vcombine.high %v562_v55, %v562_v55  ;;  %v578_v47 = vrot.slane %v562_v55, %v4976_v32  ;;  %v635_v40 = vrot.slane %v554_v61, %v5024_v63  ;;  %v7364_v3 = vld [vmem:[#allocation28_spill] sm:$0xff]  ;;  %v7366_v61 = vld [vmem:[#allocation29_spill] sm:$0xff] }
  0xca   :  { %7361 = vst [vmem:[#allocation26_spill] sm:$0xff] %v5160_v17  ;;  %v696_v14 = vmul.f32 %v631_v44, %v5076_v35  ;;  %v697_v21 = vmul.f32 %v631_v44, %v5079_v31  ;;  %v720_v41 = vadd.f32 %v719_v1, %v694_v16  ;;  %v735_v2 = vadd.f32 %v734_v13, %v695_v38  ;;  %v7371_v13 = vld [vmem:[#allocation31_spill] sm:$0xff] }
  0xcb   :  { %v5168_v5 = vmul.f32 %v5036_v51, %v7362_v22  ;;  %v569_v34 = vrot.slane %v555_v18, %v4976_v32  ;;  %v804_v11 = vadd.f32 %v802_v59, %v798_v57  ;;  %v808_v23 = vmul.f32 %v7134_v33, %v4938_v50  ;;  %v7369_v51 = vld [vmem:[#allocation30_spill] sm:$0xff] }
  0xcc   :  { %v5176_v55 = vmul.f32 %v5048_v39, %v7364_v3  ;;  %v5180_v9 = vmul.f32 %v5048_v39, %v7366_v61  ;;  %v775_v44 = vadd.f32 %v773_v12, %v769_v30  ;;  %v7368_v16 = vstv %s5020_s16  ;;  %v7373_v3 = vld [vmem:[#allocation32_spill] sm:$0xff]  ;;  %s5585_s16 = sld [smem:[#allocation9 + $0x4]] }
  0xcd   :  { %7363 = vst [vmem:[#allocation27_spill] sm:$0xff] %v5168_v5  ;;  %v779_v38 = vmul.f32 %v7368_v16, %v4936_v58  ;;  %v5187_v1 = vmul.f32 %v5058_v28, %v7369_v51  ;;  %v5191_v18 = vmul.f32 %v5058_v28, %v7371_v13  ;;  %v592_v59 = vrot.slane %v570_v24, %v4976_v32  ;;  %v7375_v16 = vld [vmem:[#allocation33_spill] sm:$0xff]  ;;  %v7377_v24 = vld [vmem:[#allocation34_spill] sm:$0xff] }
  0xce   :  { %7365 = vst [vmem:[#allocation28_spill] sm:$0xff] %v5176_v55  ;;  %7367 = vst [vmem:[#allocation29_spill] sm:$0xff] %v5180_v9  ;;  %v639_v57 = vrot.slane %v578_v47, %v5024_v63  ;;  %v698_v39 = vmul.f32 %v635_v40, %v5145_v53  ;;  %v699_v30 = vmul.f32 %v635_v40, %v5149_v54  ;;  %v7386_v54 = vld [vmem:[#allocation38_spill] sm:$0xff]  ;;  %v1067_v53 = vstv %s5220_s23  ;;  %s5693_s23 = sld [smem:[#allocation9 + $0x384]] }
  0xcf   :  { %7370 = vst [vmem:[#allocation30_spill] sm:$0xff] %v5187_v1  ;;  %7372 = vst [vmem:[#allocation31_spill] sm:$0xff] %v5191_v18  ;;  %v721_v12 = vadd.f32 %v720_v41, %v696_v14  ;;  %v736_v22 = vadd.f32 %v735_v2, %v697_v21  ;;  %v5199_v61 = vmul.f32 %v5066_v60, %v7373_v3  ;;  %v7381_v21 = vstv %s5046_s17  ;;  %s5587_s17 = sld [smem:[#allocation9 + $0x84]] }
  0xd0   :  { %v5203_v51 = vmul.f32 %v5066_v60, %v7375_v16  ;;  %v571_v28 = vcombine.high %v569_v34, %v569_v34  ;;  %v5205_v13 = vadd.f32 %v808_v23, %v804_v11  ;;  %v5209_v33 = vmul.f32 %v5082_v29, %v7377_v24  ;;  %v7382_v60 = vld [vmem:[#allocation36_spill] sm:$0xff]  ;;  %v7384_v11 = vld [vmem:[#allocation37_spill] sm:$0xff] }
  0xd1   :  { %7374 = vst [vmem:[#allocation32_spill] sm:$0xff] %v5199_v61  ;;  %v5213_v40 = vmul.f32 %v5082_v29, %v7379_v0  ;;  %v781_v14 = vadd.f32 %v779_v38, %v775_v44  ;;  %v785_v41 = vmul.f32 %v7381_v21, %v4953_v62  ;;  %v5224_v2 = vmul.f32 %v5091_v49, %v7382_v60 }
  0xd2   :  { %7376 = vst [vmem:[#allocation33_spill] sm:$0xff] %v5203_v51  ;;  %7378 = vst [vmem:[#allocation34_spill] sm:$0xff] %v5209_v33  ;;  %v5228_v23 = vmul.f32 %v5091_v49, %v7384_v11  ;;  %v600_v3 = vcombine.high %v578_v47, %v578_v47  ;;  %v643_v29 = vrot.slane %v592_v59, %v5024_v63  ;;  %v7388_v47 = vld [vmem:[#allocation39_spill] sm:$0xff] }
  0xd3   :  { %7380 = vst [vmem:[#allocation35_spill] sm:$0xff] %v5213_v40  ;;  %7383 = vst [vmem:[#allocation36_spill] sm:$0xff] %v5224_v2  ;;  %v700_v0 = vmul.f32 %v639_v57, %v5160_v17  ;;  %v701_v44 = vmul.f32 %v639_v57, %v5168_v5  ;;  %v722_v38 = vadd.f32 %v721_v12, %v698_v39  ;;  %v7390_v57 = vstv %s5056_s18  ;;  %s5601_s18 = sld [smem:[#allocation9 + $0x104]] }
  0xd4   :  { %7385 = vst [vmem:[#allocation37_spill] sm:$0xff] %v5228_v23  ;;  %v737_v16 = vadd.f32 %v736_v22, %v699_v30  ;;  %v585_v24 = vrot.slane %v569_v34, %v4976_v32  ;;  %v599_v21 = vrot.slane %v571_v28, %v4976_v32  ;;  %v602_v19 = vcombine.high %v592_v59, %v592_v59 }
  0xd5   :  { %v821_v60 = vrot.slane %v5205_v13, %v4976_v32  ;;  %v5239_v49 = vmul.f32 %v5104_v27, %v7386_v54  ;;  %v5243_v11 = vmul.f32 %v5104_v27, %v7388_v47  ;;  %v787_v17 = vadd.f32 %v785_v41, %v781_v14 }
  0xd6   :  { %v791_v39 = vmul.f32 %v7390_v57, %v4973_v8  ;;  %v5252_v34 = vmul.f32 %v5117_v46, %v4804_v37  ;;  %v601_v59 = vcombine.high %v585_v24, %v585_v24  ;;  %v603_v54 = vcombine.high %v599_v21, %v599_v21 }
  0xd7   :  { %7387 = vst [vmem:[#allocation38_spill] sm:$0xff] %v5239_v49  ;;  %7389 = vst [vmem:[#allocation39_spill] sm:$0xff] %v5243_v11  ;;  %v647_v30 = vrot.slane %v600_v3, %v5024_v63  ;;  %v702_v27 = vmul.f32 %v643_v29, %v5176_v55  ;;  %v703_v12 = vmul.f32 %v643_v29, %v5180_v9  ;;  %v7393_v5 = vstv %s5089_s19  ;;  %s5621_s19 = sld [smem:[#allocation9 + $0x184]] }
  0xd8   :  { %7391 = vst [vmem:[#allocation60_spill] sm:$0xff] %v5252_v34  ;;  %v723_v22 = vadd.f32 %v722_v38, %v700_v0  ;;  %v738_v28 = vadd.f32 %v737_v16, %v701_v44  ;;  %v5259_v14 = vmul.f32 %v5117_v46, %v4810_v48  ;;  %v651_v41 = vrot.slane %v602_v19, %v5024_v63 }
  0xd9   :  { %v655_v47 = vrot.slane %v585_v24, %v5024_v63  ;;  %v829_v37 = vcombine.high %v821_v60, %v821_v60  ;;  %v793_v57 = vadd.f32 %v791_v39, %v787_v17  ;;  %v797_v8 = vmul.f32 %v7393_v5, %v4984_v25 }
  0xda   :  { %7392 = vst [vmem:[#allocation61_spill] sm:$0xff] %v5259_v14  ;;  %v1063_v3 = vstv %s5218_s22  ;;  %v659_v29 = vrot.slane %v599_v21, %v5024_v63  ;;  %v663_v48 = vrot.slane %v601_v59, %v5024_v63  ;;  %v667_v46 = vrot.slane %v603_v54, %v5024_v63  ;;  %s5685_s22 = sld [smem:[#allocation9 + $0x304]] }
  0xdb   :  { %v704_v19 = vmul.f32 %v647_v30, %v5187_v1  ;;  %v705_v0 = vmul.f32 %v647_v30, %v5191_v18  ;;  %v724_v17 = vadd.f32 %v723_v22, %v702_v27  ;;  %v739_v44 = vadd.f32 %v738_v28, %v703_v12 }
  0xdc   :  { %v837_v5 = vrot.slane %v821_v60, %v4976_v32  ;;  %v706_v38 = vmul.f32 %v651_v41, %v5199_v61  ;;  %v851_v16 = vrot.slane %v829_v37, %v4976_v32  ;;  %v1064_v24 = vmul.f32 %v1063_v3, %v4812_v4 }
  0xdd   :  { %v1068_v21 = vmul.f32 %v1067_v53, %v4825_v26  ;;  %v707_v39 = vmul.f32 %v651_v41, %v5203_v51  ;;  %v799_v59 = vadd.f32 %v797_v8, %v793_v57  ;;  %v7394_v54 = vstv %s5097_s20  ;;  %s5672_s20 = sld [smem:[#allocation9 + $0x204]] }
  0xde   :  { %v803_v25 = vmul.f32 %v7394_v54, %v5005_v56  ;;  %v1073_v30 = vstv %s5248_s1  ;;  %v708_v27 = vmul.f32 %v655_v47, %v5209_v33  ;;  %v709_v12 = vmul.f32 %v655_v47, %v5213_v40  ;;  %v7396_v56 = vld [vmem:[#allocation40_spill] sm:$0xff]  ;;  %s5714_s1 = sld [smem:[#allocation9 + $0x404]] }
  0xdf   :  { %v710_v60 = vmul.f32 %v659_v29, %v5224_v2  ;;  %v814_v22 = vcombine.high %v5205_v13, %v5205_v13  ;;  %v725_v4 = vadd.f32 %v724_v17, %v704_v19  ;;  %v740_v28 = vadd.f32 %v739_v44, %v705_v0  ;;  %v7397_v2 = vld [vmem:[#allocation43_spill] sm:$0xff]  ;;  %v7400_v0 = vld [vmem:[#allocation41_spill] sm:$0xff] }
  0xe0   :  { %v7395_v26 = vstv %s5120_s21  ;;  %v859_v8 = vcombine.high %v837_v5, %v837_v5  ;;  %v915_v37 = vrot.slane %v837_v5, %v5024_v63  ;;  %v919_v57 = vrot.slane %v851_v16, %v5024_v63  ;;  %s5683_s21 = sld [smem:[#allocation9 + $0x284]] }
  0xe1   :  { %v809_v41 = vmul.f32 %v7395_v26, %v5044_v15  ;;  %v1070_v54 = vadd.f32 %v1068_v21, %v1064_v24  ;;  %v1074_v33 = vmul.f32 %v1073_v30, %v7396_v56  ;;  %v805_v47 = vadd.f32 %v803_v25, %v799_v59  ;;  %v7398_v59 = vld [vmem:[#allocation48_spill] sm:$0xff] }
  0xe2   :  { %v1065_v13 = vmul.f32 %v1063_v3, %v7397_v2  ;;  %v1069_v19 = vmul.f32 %v1067_v53, %v4880_v43  ;;  %v711_v17 = vmul.f32 %v659_v29, %v5228_v23  ;;  %v712_v44 = vmul.f32 %v663_v48, %v5239_v49  ;;  %v7399_v53 = vld [vmem:[#allocation50_spill] sm:$0xff] }
  0xe3   :  { %v713_v5 = vmul.f32 %v663_v48, %v5243_v11  ;;  %v828_v24 = vrot.slane %v814_v22, %v4976_v32  ;;  %v726_v56 = vadd.f32 %v725_v4, %v706_v38  ;;  %v741_v25 = vadd.f32 %v740_v28, %v707_v39  ;;  %v7402_v4 = vld [vmem:[#allocation49_spill] sm:$0xff] }
  0xe4   :  { %v861_v21 = vcombine.high %v851_v16, %v851_v16  ;;  %v923_v3 = vrot.slane %v859_v8, %v5024_v63  ;;  %v992_v43 = vmul.f32 %v915_v37, %v7398_v59  ;;  %v994_v26 = vmul.f32 %v919_v57, %v7399_v53  ;;  %v7403_v8 = vld [vmem:[#allocation51_spill] sm:$0xff] }
  0xe5   :  { %v1076_v29 = vadd.f32 %v1074_v33, %v1070_v54  ;;  %v7401_v2 = vstv %s5268_s2  ;;  %v714_v48 = vmul.f32 %v667_v46, %v5252_v34  ;;  %v715_v22 = vmul.f32 %v667_v46, %v5259_v14 }
  0xe6   :  { %v1080_v15 = vmul.f32 %v7401_v2, %v7400_v0  ;;  %v811_v11 = vadd.f32 %v809_v41, %v805_v47  ;;  %v1071_v38 = vadd.f32 %v1069_v19, %v1065_v13  ;;  %v830_v39 = vcombine.high %v828_v24, %v828_v24  ;;  %v7404_v0 = vld [vmem:[#allocation53_spill] sm:$0xff] }
  0xe7   :  { %v844_v16 = vrot.slane %v828_v24, %v4976_v32  ;;  %v993_v28 = vmul.f32 %v915_v37, %v7402_v4  ;;  %v995_v59 = vmul.f32 %v919_v57, %v7403_v8  ;;  %v727_v33 = vadd.f32 %v726_v56, %v708_v27  ;;  %v7405_v57 = vld [vmem:[#allocation54_spill] sm:$0xff] }
  0xe8   :  { %v742_v2 = vadd.f32 %v741_v25, %v709_v12  ;;  %v927_v54 = vrot.slane %v861_v21, %v5024_v63  ;;  %v996_v46 = vmul.f32 %v923_v3, %v7404_v0  ;;  %v1024_v41 = vadd.f32 %v994_v26, %v992_v43  ;;  %v7406_v12 = vld [vmem:[#allocation42_spill] sm:$0xff] }
  0xe9   :  { %v1082_v47 = vadd.f32 %v1080_v15, %v1076_v29  ;;  %v1085_v13 = vstv %s5296_s4  ;;  %v7158_v19 = vstv %s5298_s24  ;;  %v863_v37 = vcombine.high %v811_v11, %v811_v11  ;;  %s5764_s4 = sld [smem:[#allocation10 + $0x3]] }
  0xea   :  { %v997_v24 = vmul.f32 %v923_v3, %v7405_v57  ;;  %v1075_v27 = vmul.f32 %v1073_v30, %v4903_v10  ;;  %v1086_v56 = vmul.f32 %v1085_v13, %v7406_v12  ;;  %v1039_v25 = vadd.f32 %v995_v59, %v993_v28  ;;  %v7407_v3 = vld [vmem:[#allocation55_spill] sm:$0xff] }
  0xeb   :  { %v1092_v21 = vmul.f32 %v7158_v19, %v4888_v7  ;;  %v7157_v15 = vstv %s5307_s25  ;;  %v7160_v43 = vstv %s5309_s26  ;;  %v728_v26 = vadd.f32 %v727_v33, %v710_v60  ;;  %v7408_v33 = vld [vmem:[#allocation56_spill] sm:$0xff] }
  0xec   :  { %v743_v29 = vadd.f32 %v742_v2, %v711_v17  ;;  %v858_v14 = vrot.slane %v830_v39, %v4976_v32  ;;  %v1088_v0 = vadd.f32 %v1086_v56, %v1082_v47  ;;  %v931_v8 = vrot.slane %v844_v16, %v5024_v63 }
  0xed   :  { %v998_v57 = vmul.f32 %v927_v54, %v7407_v3  ;;  %v1025_v30 = vadd.f32 %v1024_v41, %v996_v46  ;;  %v1098_v59 = vmul.f32 %v7157_v15, %v4908_v20  ;;  %v870_v7 = vrot.slane %v811_v11, %v4976_v32  ;;  %v7409_v15 = vld [vmem:[#allocation57_spill] sm:$0xff] }
  0xee   :  { %v877_v28 = vrot.slane %v863_v37, %v4976_v32  ;;  %v1094_v60 = vadd.f32 %v1092_v21, %v1088_v0  ;;  %v1104_v17 = vmul.f32 %v7160_v43, %v4913_v45  ;;  %v860_v39 = vcombine.high %v844_v16, %v844_v16 }
  0xef   :  { %v999_v2 = vmul.f32 %v927_v54, %v7408_v33  ;;  %v1040_v47 = vadd.f32 %v1039_v25, %v997_v24  ;;  %v7159_v12 = vstv %s5322_s27  ;;  %v729_v46 = vadd.f32 %v728_v26, %v712_v44  ;;  %v7410_v44 = vld [vmem:[#allocation59_spill] sm:$0xff] }
  0xf0   :  { %v744_v41 = vadd.f32 %v743_v29, %v713_v5  ;;  %v935_v20 = vrot.slane %v858_v14, %v5024_v63  ;;  %v1100_v56 = vadd.f32 %v1098_v59, %v1094_v60  ;;  %v1000_v11 = vmul.f32 %v931_v8, %v7409_v15 }
  0xf1   :  { %v1026_v19 = vadd.f32 %v1025_v30, %v998_v57  ;;  %v1110_v0 = vmul.f32 %v7159_v12, %v4930_v6  ;;  %v7161_v37 = vstv %s5328_s6  ;;  %v749_v45 = vstv %s5330_s28  ;;  %s5850_s28 = sld [smem:[#allocation9 + $0x285]] }
  0xf2   :  { %v878_v16 = vcombine.high %v870_v7, %v870_v7  ;;  %v879_v21 = vcombine.high %v877_v28, %v877_v28  ;;  %v1106_v54 = vadd.f32 %v1104_v17, %v1100_v56  ;;  %v1001_v24 = vmul.f32 %v931_v8, %v7410_v44 }
  0xf3   :  { %v1041_v5 = vadd.f32 %v1040_v47, %v999_v2  ;;  %v1077_v25 = vadd.f32 %v1075_v27, %v1071_v38  ;;  %v7411_v26 = vstv %s5268_s2  ;;  %v730_v59 = vadd.f32 %v729_v46, %v714_v48  ;;  %v7413_v2 = vld [vmem:[#allocation45_spill] sm:$0xff]  ;;  %s5728_s2 = sld [smem:[#allocation9 + $0x484]] }
  0xf4   :  { %v1081_v29 = vmul.f32 %v7411_v26, %v4920_v36  ;;  %v745_v60 = vadd.f32 %v744_v41, %v715_v22  ;;  %v1112_v57 = vadd.f32 %v1110_v0, %v1106_v54  ;;  %v1116_v6 = vmul.f32 %v7161_v37, %v4938_v50  ;;  %v5460_v37 = vld [vmem:[#allocation7 + $0x10] sm:$0xff] }
  0xf5   :  { %v862_v30 = vcombine.high %v858_v14, %v858_v14  ;;  %v939_v12 = vrot.slane %v860_v39, %v5024_v63  ;;  %v1002_v43 = vmul.f32 %v935_v20, %v5061_v42  ;;  %v1027_v15 = vadd.f32 %v1026_v19, %v1000_v11  ;;  %v7412_v14 = vld [vmem:[#allocation44_spill] sm:$0xff] }
  0xf6   :  { %v886_v17 = vrot.slane %v870_v7, %v4976_v32  ;;  %v893_v8 = vrot.slane %v877_v28, %v4976_v32  ;;  %v900_v38 = vrot.slane %v878_v16, %v4976_v32  ;;  %v907_v36 = vrot.slane %v879_v21, %v4976_v32 }
  0xf7   :  { %v1003_v48 = vmul.f32 %v935_v20, %v5073_v52  ;;  %v1042_v22 = vadd.f32 %v1041_v5, %v1001_v24  ;;  %v1083_v27 = vadd.f32 %v1081_v29, %v1077_v25  ;;  %v1087_v50 = vmul.f32 %v1085_v13, %v4936_v58 }
  0xf8   :  { %v746_v39 = vmul.f32 %v7412_v14, %v730_v59  ;;  %v747_v19 = vmul.f32 %v7413_v2, %v745_v60  ;;  %v908_v47 = vcombine.high %v886_v17, %v886_v17  ;;  %v5379_v7 = vadd.f32 %v1116_v6, %v1112_v57 }
  0xf9   :  { %v910_v28 = vcombine.high %v900_v38, %v900_v38  ;;  %v943_v46 = vrot.slane %v862_v30, %v5024_v63  ;;  %v1004_v41 = vmul.f32 %v939_v12, %v5076_v35  ;;  %v1028_v56 = vadd.f32 %v1027_v15, %v1002_v43  ;;  %v7416_v30 = vld [vmem:[#allocation25_spill] sm:$0xff] }
  0xfa   :  { %v909_v11 = vcombine.high %v893_v8, %v893_v8  ;;  %v911_v20 = vcombine.high %v907_v36, %v907_v36  ;;  %v947_v0 = vrot.slane %v886_v17, %v5024_v63  ;;  %v1005_v58 = vmul.f32 %v939_v12, %v5079_v31  ;;  %v7415_v12 = vld [vmem:[#allocation24_spill] sm:$0xff] }
  0xfb   :  { %v1043_v13 = vadd.f32 %v1042_v22, %v1003_v48  ;;  %v1089_v21 = vadd.f32 %v1087_v50, %v1083_v27  ;;  %v7414_v54 = vstv %s5298_s24  ;;  %v750_v5 = vadd.f32 %v749_v45, %v746_v39  ;;  %v7417_v22 = vld [vmem:[#allocation46_spill] sm:$0xff]  ;;  %s5774_s24 = sld [smem:[#allocation9 + $0x5]] }
  0xfc   :  { %v1093_v24 = vmul.f32 %v7414_v54, %v4953_v62  ;;  %v751_v25 = vadd.f32 %v749_v45, %v747_v19  ;;  %v951_v15 = vrot.slane %v900_v38, %v5024_v63  ;;  %v1129_v43 = vrot.slane %v5379_v7, %v4976_v32  ;;  %v7421_v39 = vld [vmem:[#allocation26_spill] sm:$0xff]  ;;  %7430 = vst [vmem:[#allocation46_spill] sm:$0xff] %v5460_v37 }
  0xfd   :  { %v955_v26 = vrot.slane %v908_v47, %v5024_v63  ;;  %v959_v29 = vrot.slane %v910_v28, %v5024_v63  ;;  %v1006_v59 = vmul.f32 %v943_v46, %v7415_v12  ;;  %v1029_v60 = vadd.f32 %v1028_v56, %v1004_v41  ;;  %v7422_v28 = vld [vmem:[#allocation27_spill] sm:$0xff] }
  0xfe   :  { %v963_v57 = vrot.slane %v893_v8, %v5024_v63  ;;  %v967_v62 = vrot.slane %v907_v36, %v5024_v63  ;;  %v971_v6 = vrot.slane %v909_v11, %v5024_v63  ;;  %v5403_v45 = vrot.slane %v911_v20, %v5024_v63 }
  0xff   :  { %v1007_v17 = vmul.f32 %v943_v46, %v7416_v30  ;;  %v1044_v38 = vadd.f32 %v1043_v13, %v1005_v58  ;;  %v1095_v48 = vadd.f32 %v1093_v24, %v1089_v21  ;;  %v7418_v27 = vstv %s5307_s25  ;;  %v7423_v13 = vld [vmem:[#allocation47_spill] sm:$0xff]  ;;  %s5776_s25 = sld [smem:[#allocation9 + $0x85]] }
 0x100   :  { %v1099_v50 = vmul.f32 %v7418_v27, %v7417_v22  ;;  %v5411_v8 = vmax.f32 %v750_v5, 0.0  ;;  %v5413_v36 = vmax.f32 %v751_v25, 0.0  ;;  %v1008_v19 = vmul.f32 %v947_v0, %v7421_v39 }
 0x101   :  { %v1137_v47 = vcombine.high %v1129_v43, %v1129_v43  ;;  %v1009_v41 = vmul.f32 %v947_v0, %v7422_v28  ;;  %v1010_v46 = vmul.f32 %v951_v15, %v5176_v55  ;;  %v1011_v56 = vmul.f32 %v951_v15, %v5180_v9 }
 0x102   :  { %7419 = vst [vmem:[#allocation40_spill] sm:$0xff] %v5411_v8  ;;  %7420 = vst [vmem:[#allocation41_spill] sm:$0xff] %v5413_v36  ;;  %v1030_v11 = vadd.f32 %v1029_v60, %v1006_v59  ;;  %v1012_v20 = vmul.f32 %v955_v26, %v5187_v1  ;;  %v5421_v58 = vmul.f32 %v955_v26, %v5191_v18  ;;  %v7424_v21 = vstv %s5309_s26  ;;  %v7425_v59 = vld [vmem:[#allocation34_spill] sm:$0xff]  ;;  %v7438_v18 = vld [vmem:[#allocation51_spill] sm:$0xff]  ;;  %s5793_s26 = sld [smem:[#allocation9 + $0x105]] }
 0x103   :  { %v1105_v54 = vmul.f32 %v7424_v21, %v7423_v13  ;;  %v1371_v24 = vstv %s5385_s30  ;;  %v1045_v5 = vadd.f32 %v1044_v38, %v1007_v17  ;;  %v1101_v25 = vadd.f32 %v1099_v50, %v1095_v48  ;;  %v7426_v17 = vld [vmem:[#allocation36_spill] sm:$0xff]  ;;  %s5861_s30 = sld [smem:[#allocation9 + $0x385]] }
 0x104   :  { %v1145_v22 = vrot.slane %v1129_v43, %v4976_v32  ;;  %v1375_v0 = vstv %s5391_s9  ;;  %v5430_v27 = vmul.f32 %v959_v29, %v5199_v61  ;;  %v5433_v15 = vmul.f32 %v959_v29, %v5203_v51  ;;  %v7427_v29 = vld [vmem:[#allocation52_spill] sm:$0xff]  ;;  %v7432_v51 = vld [vmem:[#allocation58_spill] sm:$0xff]  ;;  %s5863_s9 = sld [smem:[#allocation9 + $0x405]] }
 0x105   :  { %v5436_v60 = vmul.f32 %v963_v57, %v7425_v59  ;;  %v1159_v26 = vrot.slane %v1137_v47, %v4976_v32  ;;  %v5440_v13 = vmul.f32 %v963_v57, %v5213_v40  ;;  %v5443_v38 = vmul.f32 %v967_v62, %v7426_v17  ;;  %v5457_v57 = vld [vmem:[#allocation7] sm:$0xff] }
 0x106   :  { %v5446_v43 = vmul.f32 %v967_v62, %v5228_v23  ;;  %v1031_v48 = vadd.f32 %v1030_v11, %v1008_v19  ;;  %v7428_v50 = vstv %s5322_s27  ;;  %v1122_v47 = vcombine.high %v5379_v7, %v5379_v7  ;;  %7429 = vst [vmem:[#allocation42_spill] sm:$0xff] %v5457_v57  ;;  %s5814_s27 = sld [smem:[#allocation9 + $0x185]] }
 0x107   :  { %v1111_v21 = vmul.f32 %v7428_v50, %v7427_v29  ;;  %v1372_v16 = vmul.f32 %v5457_v57, %v1371_v24  ;;  %v1376_v62 = vmul.f32 %v5460_v37, %v1375_v0  ;;  %v1046_v19 = vadd.f32 %v1045_v5, %v1009_v41  ;;  %v7431_v29 = vld [vmem:[#allocation39_spill] sm:$0xff] }
 0x108   :  { %v1107_v11 = vadd.f32 %v1105_v54, %v1101_v25  ;;  %v1167_v36 = vcombine.high %v1145_v22, %v1145_v22  ;;  %v1381_v8 = vstv %s5409_s10  ;;  %v5465_v23 = vmul.f32 %v971_v6, %v5239_v49  ;;  %v7434_v5 = vld [vmem:[#allocation43_spill] sm:$0xff]  ;;  %s5880_s10 = sld [smem:[#allocation9 + $0x485]] }
 0x109   :  { %v5468_v50 = vmul.f32 %v971_v6, %v7431_v29  ;;  %v1223_v7 = vrot.slane %v1145_v22, %v5024_v63  ;;  %v1227_v17 = vrot.slane %v1159_v26, %v5024_v63  ;;  %v5474_v40 = vmul.f32 %v5403_v45, %v5252_v34  ;;  %v5485_v49 = vld [vmem:[#allocation7 + $0x20] sm:$0xff] }
 0x10a   :  { %v1032_v59 = vadd.f32 %v1031_v48, %v1010_v46  ;;  %v7433_v41 = vstv %s5328_s6  ;;  %v1373_v25 = vmul.f32 %v1371_v24, %v7434_v5  ;;  %v1136_v6 = vrot.slane %v1122_v47, %v4976_v32  ;;  %7435 = vst [vmem:[#allocation47_spill] sm:$0xff] %v5485_v49  ;;  %v7437_v5 = vld [vmem:[#allocation48_spill] sm:$0xff]  ;;  %s5834_s6 = sld [smem:[#allocation9 + $0x205]] }
 0x10b   :  { %v1117_v54 = vmul.f32 %v7433_v41, %v7432_v51  ;;  %v1169_v22 = vcombine.high %v1159_v26, %v1159_v26  ;;  %v1378_v29 = vadd.f32 %v1376_v62, %v1372_v16  ;;  %v1382_v34 = vmul.f32 %v5485_v49, %v1381_v8  ;;  %v5489_v41 = vld [vmem:[#allocation7 + $0x18] sm:$0xff] }
 0x10c   :  { %v1047_v46 = vadd.f32 %v1046_v19, %v1011_v56  ;;  %v1113_v48 = vadd.f32 %v1111_v21, %v1107_v11  ;;  %v1231_v51 = vrot.slane %v1167_v36, %v5024_v63  ;;  %7436 = vst [vmem:[#allocation52_spill] sm:$0xff] %v5489_v41  ;;  %v1377_v24 = vmul.f32 %v5489_v41, %v1375_v0 }
 0x10d   :  { %v1300_v61 = vmul.f32 %v1223_v7, %v7437_v5  ;;  %v1301_v47 = vmul.f32 %v1223_v7, %v7402_v4  ;;  %v1302_v26 = vmul.f32 %v1227_v17, %v7399_v53  ;;  %v1303_v16 = vmul.f32 %v1227_v17, %v7438_v18  ;;  %v7439_v17 = vld [vmem:[#allocation53_spill] sm:$0xff]  ;;  %v5512_v5 = vld [vmem:[#allocation7 + $0x40] sm:$0xff] }
 0x10e   :  { %v1033_v62 = vadd.f32 %v1032_v59, %v1012_v20  ;;  %v1383_v1 = vmul.f32 %v1381_v8, %v4903_v10  ;;  %v1387_v49 = vstv %s5448_s11  ;;  %v1138_v36 = vcombine.high %v1136_v6, %v1136_v6  ;;  %v7440_v59 = vld [vmem:[#allocation54_spill] sm:$0xff]  ;;  %v5508_v53 = vld [vmem:[#allocation7 + $0x30] sm:$0xff]  ;;  %s5909_s11 = sld [smem:[#allocation10 + $0x4]] }
 0x10f   :  { %v1152_v0 = vrot.slane %v1136_v6, %v4976_v32  ;;  %v1235_v21 = vrot.slane %v1169_v22, %v5024_v63  ;;  %v1384_v19 = vadd.f32 %v1382_v34, %v1378_v29  ;;  %v1119_v11 = vadd.f32 %v1117_v54, %v1113_v48  ;;  %7441 = vst [vmem:[#allocation58_spill] sm:$0xff] %v5508_v53 }
 0x110   :  { %v1304_v20 = vmul.f32 %v1231_v51, %v7439_v17  ;;  %v1305_v10 = vmul.f32 %v1231_v51, %v7440_v59  ;;  %v1379_v8 = vadd.f32 %v1377_v24, %v1373_v25  ;;  %v1048_v7 = vadd.f32 %v1047_v46, %v5421_v58  ;;  %v5525_v24 = vld [vmem:[#allocation7 + $0x50] sm:$0xff] }
 0x111   :  { %v1332_v56 = vadd.f32 %v1302_v26, %v1300_v61  ;;  %v1347_v18 = vadd.f32 %v1303_v16, %v1301_v47  ;;  %v1388_v4 = vmul.f32 %v5508_v53, %v1387_v49  ;;  %v1034_v6 = vadd.f32 %v1033_v62, %v5430_v27  ;;  %7443 = vst [vmem:[#allocation43_spill] sm:$0xff] %v5525_v24 }
 0x112   :  { %v7442_v34 = vstv %s5450_s12  ;;  %v7184_v54 = vstv %s5480_s13  ;;  %v7187_v22 = vstv %s5482_s3  ;;  %v1166_v61 = vrot.slane %v1138_v36, %v4976_v32  ;;  %v5531_v36 = vld [vmem:[#allocation7 + $0x60] sm:$0xff] }
 0x113   :  { %v1394_v29 = vmul.f32 %v5512_v5, %v7442_v34  ;;  %v1239_v58 = vrot.slane %v1152_v0, %v5024_v63  ;;  %v1306_v25 = vmul.f32 %v1235_v21, %v7407_v3  ;;  %v1390_v46 = vadd.f32 %v1388_v4, %v1384_v19  ;;  %7444 = vst [vmem:[#allocation62_spill] sm:$0xff] %v5531_v36 }
 0x114   :  { %v1307_v27 = vmul.f32 %v1235_v21, %v7408_v33  ;;  %v1333_v48 = vadd.f32 %v1332_v56, %v1304_v20  ;;  %v1348_v51 = vadd.f32 %v1347_v18, %v1305_v10  ;;  %v1400_v47 = vmul.f32 %v5525_v24, %v7184_v54  ;;  %v7445_v10 = vld [vmem:[#allocation57_spill] sm:$0xff] }
 0x115   :  { %v1049_v26 = vadd.f32 %v1048_v7, %v5433_v15  ;;  %v1171_v16 = vcombine.high %v1119_v11, %v1119_v11  ;;  %v1396_v62 = vadd.f32 %v1394_v29, %v1390_v46  ;;  %v1406_v34 = vmul.f32 %v5531_v36, %v7187_v22  ;;  %v5543_v24 = vld [vmem:[#allocation7 + $0x70] sm:$0xff]  ;;  %v5550_v22 = vld [vmem:[#allocation7 + $0x80] sm:$0xff] }
 0x116   :  { %v1035_v4 = vadd.f32 %v1034_v6, %v5436_v60  ;;  %v1178_v56 = vrot.slane %v1119_v11, %v4976_v32  ;;  %v7191_v18 = vstv %s5499_s0  ;;  %v7190_v21 = vstv %s5501_s5 }
 0x117   :  { %v1168_v19 = vcombine.high %v1152_v0, %v1152_v0  ;;  %v1243_v20 = vrot.slane %v1166_v61, %v5024_v63  ;;  %v1308_v15 = vmul.f32 %v1239_v58, %v7445_v10  ;;  %v1402_v7 = vadd.f32 %v1400_v47, %v1396_v62 }
 0x118   :  { %v1309_v29 = vmul.f32 %v1239_v58, %v7410_v44  ;;  %v1334_v46 = vadd.f32 %v1333_v48, %v1306_v25  ;;  %v1349_v54 = vadd.f32 %v1348_v51, %v1307_v27  ;;  %v1412_v60 = vmul.f32 %v5543_v24, %v7191_v18  ;;  %v5556_v25 = vld [vmem:[#allocation7 + $0x38] sm:$0xff]  ;;  %v5574_v18 = vld [vmem:[#allocation7 + $0x48] sm:$0xff] }
 0x119   :  { %v1050_v11 = vadd.f32 %v1049_v26, %v5440_v13  ;;  %v1185_v6 = vrot.slane %v1171_v16, %v4976_v32  ;;  %v1408_v0 = vadd.f32 %v1406_v34, %v1402_v7  ;;  %v1418_v36 = vmul.f32 %v5550_v22, %v7190_v21 }
 0x11a   :  { %v1036_v47 = vadd.f32 %v1035_v4, %v5443_v38  ;;  %v1385_v58 = vadd.f32 %v1383_v1, %v1379_v8  ;;  %v1389_v27 = vmul.f32 %v5556_v25, %v1387_v49  ;;  %v7192_v48 = vstv %s5519_s14  ;;  %v5566_v49 = vld [vmem:[#allocation7 + $0x90] sm:$0xff] }
 0x11b   :  { %v1170_v51 = vcombine.high %v1166_v61, %v1166_v61  ;;  %v1186_v62 = vcombine.high %v1178_v56, %v1178_v56  ;;  %v1247_v13 = vrot.slane %v1168_v19, %v5024_v63  ;;  %v1414_v26 = vadd.f32 %v1412_v60, %v1408_v0  ;;  %v7446_v19 = vld [vmem:[#allocation61_spill] sm:$0xff] }
 0x11c   :  { %v1310_v16 = vmul.f32 %v1243_v20, %v5061_v42  ;;  %v1311_v34 = vmul.f32 %v1243_v20, %v5073_v52  ;;  %v1335_v38 = vadd.f32 %v1334_v46, %v1308_v15  ;;  %v1350_v1 = vadd.f32 %v1349_v54, %v1309_v29 }
 0x11d   :  { %v1051_v8 = vadd.f32 %v1050_v11, %v5446_v43  ;;  %v1187_v4 = vcombine.high %v1185_v6, %v1185_v6  ;;  %v1420_v7 = vadd.f32 %v1418_v36, %v1414_v26  ;;  %v1424_v61 = vmul.f32 %v5566_v49, %v7192_v48  ;;  %v5592_v26 = vld [vmem:[#allocation7 + $0x58] sm:$0xff] }
 0x11e   :  { %v1023_v21 = vmul.f32 %v5403_v45, %v7446_v19  ;;  %v1037_v60 = vadd.f32 %v1036_v47, %v5465_v23  ;;  %v1391_v0 = vadd.f32 %v1389_v27, %v1385_v58  ;;  %v7447_v20 = vstv %s5450_s12  ;;  %s5944_s12 = sld [smem:[#allocation9 + $0x6]] }
 0x11f   :  { %v1395_v54 = vmul.f32 %v5574_v18, %v7447_v20  ;;  %v1194_v43 = vrot.slane %v1178_v56, %v4976_v32  ;;  %v1201_v36 = vrot.slane %v1185_v6, %v4976_v32  ;;  %v1208_v15 = vrot.slane %v1186_v62, %v4976_v32 }
 0x120   :  { %v1251_v29 = vrot.slane %v1170_v51, %v5024_v63  ;;  %v1312_v46 = vmul.f32 %v1247_v13, %v5076_v35  ;;  %v1313_v45 = vmul.f32 %v1247_v13, %v5079_v31  ;;  %v1336_v23 = vadd.f32 %v1335_v38, %v1310_v16 }
 0x121   :  { %v1351_v11 = vadd.f32 %v1350_v1, %v1311_v34  ;;  %v1052_v56 = vadd.f32 %v1051_v8, %v5468_v50  ;;  %v1215_v6 = vrot.slane %v1187_v4, %v4976_v32  ;;  %v1216_v47 = vcombine.high %v1194_v43, %v1194_v43 }
 0x122   :  { %v1426_v58 = vadd.f32 %v1424_v61, %v1420_v7  ;;  %v1038_v27 = vadd.f32 %v1037_v60, %v5474_v40  ;;  %v1218_v51 = vcombine.high %v1208_v15, %v1208_v15  ;;  %v1397_v62 = vadd.f32 %v1395_v54, %v1391_v0 }
 0x123   :  { %v7448_v13 = vstv %s5480_s13  ;;  %v1217_v34 = vcombine.high %v1201_v36, %v1201_v36  ;;  %v1219_v38 = vcombine.high %v1215_v6, %v1215_v6  ;;  %v1255_v1 = vrot.slane %v1194_v43, %v5024_v63  ;;  %s5946_s13 = sld [smem:[#allocation9 + $0x86]] }
 0x124   :  { %v1401_v16 = vmul.f32 %v5592_v26, %v7448_v13  ;;  %v1314_v50 = vmul.f32 %v1251_v29, %v7415_v12  ;;  %v1315_v8 = vmul.f32 %v1251_v29, %v7416_v30  ;;  %v1337_v4 = vadd.f32 %v1336_v23, %v1312_v46  ;;  %v5608_v29 = vld [vmem:[#allocation7 + $0x68] sm:$0xff] }
 0x125   :  { %v1352_v7 = vadd.f32 %v1351_v11, %v1313_v45  ;;  %v1053_v40 = vadd.f32 %v1052_v56, %v1023_v21  ;;  %v1259_v61 = vrot.slane %v1208_v15, %v5024_v63  ;;  %v1263_v60 = vrot.slane %v1216_v47, %v5024_v63  ;;  %7449 = vst [vmem:[#allocation63_spill] sm:$0xff] %v5608_v29 }
 0x126   :  { %v1437_v0 = vrot.slane %v1426_v58, %v4976_v32  ;;  %v1054_v54 = vmul.f32 %v7412_v14, %v1038_v27  ;;  %v1267_v43 = vrot.slane %v1218_v51, %v5024_v63  ;;  %v1403_v13 = vadd.f32 %v1401_v16, %v1397_v62 }
 0x127   :  { %v7450_v46 = vstv %s5482_s3  ;;  %v1271_v21 = vrot.slane %v1201_v36, %v5024_v63  ;;  %v5615_v23 = vrot.slane %v1215_v6, %v5024_v63  ;;  %v1316_v15 = vmul.f32 %v1255_v1, %v7421_v39  ;;  %v7457_v39 = vld [vmem:[#allocation32_spill] sm:$0xff]  ;;  %s5968_s3 = sld [smem:[#allocation9 + $0x106]] }
 0x128   :  { %v1407_v45 = vmul.f32 %v5608_v29, %v7450_v46  ;;  %v1317_v11 = vmul.f32 %v1255_v1, %v7422_v28  ;;  %v1338_v56 = vadd.f32 %v1337_v4, %v1314_v50  ;;  %v1353_v47 = vadd.f32 %v1352_v7, %v1315_v8  ;;  %v5637_v8 = vld [vmem:[#allocation7 + $0x78] sm:$0xff] }
 0x129   :  { %v1679_v27 = vstv %s5585_s16  ;;  %v1683_v51 = vstv %s5587_s17  ;;  %v5624_v62 = vmul.f32 %v7413_v2, %v1053_v40  ;;  %v5627_v36 = vrot.slane %v1217_v34, %v5024_v63  ;;  %7453 = vst [vmem:[#allocation65_spill] sm:$0xff] %v5637_v8  ;;  %v7459_v29 = vld [vmem:[#allocation34_spill] sm:$0xff]  ;;  %s6041_s16 = sld [smem:[#allocation9 + $0x386]] }
 0x12a   :  { %v5630_v6 = vrot.slane %v1219_v38, %v5024_v63  ;;  %v1445_v16 = vcombine.high %v1437_v0, %v1437_v0  ;;  %v7451_v46 = vstv %s5360_s29  ;;  %v1318_v1 = vmul.f32 %v1259_v61, %v5176_v55  ;;  %v7455_v55 = vld [vmem:[#allocation30_spill] sm:$0xff]  ;;  %s6048_s17 = sld [smem:[#allocation9 + $0x406]] }
 0x12b   :  { %v5634_v20 = vadd.f32 %v7451_v46, %v1054_v54  ;;  %v1409_v50 = vadd.f32 %v1407_v45, %v1403_v13  ;;  %v7454_v4 = vstv %s5499_s0  ;;  %v1430_v40 = vcombine.high %v1426_v58, %v1426_v58  ;;  %v7456_v45 = vld [vmem:[#allocation31_spill] sm:$0xff]  ;;  %s6000_s0 = sld [smem:[#allocation9 + $0x186]] }
 0x12c   :  { %v1413_v7 = vmul.f32 %v5637_v8, %v7454_v4  ;;  %v1453_v34 = vrot.slane %v1437_v0, %v4976_v32  ;;  %v1680_v48 = vmul.f32 %v5457_v57, %v1679_v27  ;;  %v1684_v38 = vmul.f32 %v5460_v37, %v1683_v51  ;;  %v7458_v8 = vld [vmem:[#allocation33_spill] sm:$0xff] }
 0x12d   :  { %7452 = vst [vmem:[#allocation64_spill] sm:$0xff] %v5634_v20  ;;  %v1319_v2 = vmul.f32 %v1259_v61, %v5180_v9  ;;  %v1339_v54 = vadd.f32 %v1338_v56, %v1316_v15  ;;  %v1354_v46 = vadd.f32 %v1353_v47, %v1317_v11  ;;  %v1689_v14 = vstv %s5601_s18  ;;  %v5655_v20 = vld [vmem:[#allocation7 + $0x88] sm:$0xff]  ;;  %s6059_s18 = sld [smem:[#allocation9 + $0x486]] }
 0x12e   :  { %v1320_v13 = vmul.f32 %v1263_v60, %v7455_v55  ;;  %v1321_v28 = vmul.f32 %v1263_v60, %v7456_v45  ;;  %v1322_v4 = vmul.f32 %v1267_v43, %v7457_v39  ;;  %v1467_v58 = vrot.slane %v1445_v16, %v4976_v32  ;;  %7460 = vst [vmem:[#allocation66_spill] sm:$0xff] %v5655_v20  ;;  %v7462_v47 = vld [vmem:[#allocation47_spill] sm:$0xff] }
 0x12f   :  { %v1323_v0 = vmul.f32 %v1267_v43, %v7458_v8  ;;  %v5653_v57 = vmul.f32 %v1271_v21, %v7459_v29  ;;  %v1415_v37 = vadd.f32 %v1413_v7, %v1409_v50  ;;  %v7461_v61 = vstv %s5501_s5  ;;  %v7463_v8 = vld [vmem:[#allocation35_spill] sm:$0xff]  ;;  %v7464_v50 = vld [vmem:[#allocation36_spill] sm:$0xff]  ;;  %s6023_s5 = sld [smem:[#allocation9 + $0x206]] }
 0x130   :  { %v1419_v15 = vmul.f32 %v5655_v20, %v7461_v61  ;;  %v1444_v11 = vrot.slane %v1430_v40, %v4976_v32  ;;  %v1475_v56 = vcombine.high %v1453_v34, %v1453_v34  ;;  %v1686_v60 = vadd.f32 %v1684_v38, %v1680_v48  ;;  %v5674_v38 = vld [vmem:[#allocation7 + $0x98] sm:$0xff]  ;;  %v7472_v9 = vld [vmem:[#allocation51_spill] sm:$0xff] }
 0x131   :  { %v1690_v39 = vmul.f32 %v7462_v47, %v1689_v14  ;;  %v1340_v45 = vadd.f32 %v1339_v54, %v1318_v1  ;;  %v1355_v16 = vadd.f32 %v1354_v46, %v1319_v2  ;;  %v1477_v55 = vcombine.high %v1467_v58, %v1467_v58  ;;  %7465 = vst [vmem:[#allocation67_spill] sm:$0xff] %v5674_v38  ;;  %v5679_v54 = vld [vmem:[#allocation7 + $0x8] sm:$0xff] }
 0x132   :  { %v5664_v29 = vmul.f32 %v1271_v21, %v7463_v8  ;;  %v5668_v7 = vmul.f32 %v5615_v23, %v7464_v50  ;;  %v1531_v61 = vrot.slane %v1453_v34, %v5024_v63  ;;  %v1535_v40 = vrot.slane %v1467_v58, %v5024_v63  ;;  %7467 = vst [vmem:[#allocation68_spill] sm:$0xff] %v5679_v54 }
 0x133   :  { %v1421_v48 = vadd.f32 %v1419_v15, %v1415_v37  ;;  %v7466_v2 = vstv %s5519_s14  ;;  %v1681_v21 = vmul.f32 %v5679_v54, %v1679_v27  ;;  %v1685_v46 = vmul.f32 %v5489_v41, %v1683_v51  ;;  %v7469_v27 = vld [vmem:[#allocation48_spill] sm:$0xff]  ;;  %v7471_v54 = vld [vmem:[#allocation50_spill] sm:$0xff]  ;;  %s6025_s14 = sld [smem:[#allocation9 + $0x286]] }
 0x134   :  { %v1425_v1 = vmul.f32 %v5674_v38, %v7466_v2  ;;  %v1446_v34 = vcombine.high %v1444_v11, %v1444_v11  ;;  %v1539_v58 = vrot.slane %v1475_v56, %v5024_v63  ;;  %v1692_v43 = vadd.f32 %v1690_v39, %v1686_v60  ;;  %v7470_v38 = vld [vmem:[#allocation49_spill] sm:$0xff] }
 0x135   :  { %v7468_v37 = vstv %s5621_s19  ;;  %v1341_v50 = vadd.f32 %v1340_v45, %v1320_v13  ;;  %v1356_v8 = vadd.f32 %v1355_v16, %v1321_v28  ;;  %v1460_v2 = vrot.slane %v1444_v11, %v4976_v32  ;;  %v7473_v39 = vld [vmem:[#allocation37_spill] sm:$0xff] }
 0x136   :  { %v1696_v15 = vmul.f32 %v5508_v53, %v7468_v37  ;;  %v1543_v47 = vrot.slane %v1477_v55, %v5024_v63  ;;  %v1608_v51 = vmul.f32 %v1531_v61, %v7469_v27  ;;  %v1609_v41 = vmul.f32 %v1531_v61, %v7470_v38  ;;  %v7474_v37 = vld [vmem:[#allocation38_spill] sm:$0xff]  ;;  %v5708_v61 = vld [vmem:[#allocation7 + $0x28] sm:$0xff] }
 0x137   :  { %v1610_v20 = vmul.f32 %v1535_v40, %v7471_v54  ;;  %v1611_v56 = vmul.f32 %v1535_v40, %v7472_v9  ;;  %v1327_v60 = vmul.f32 %v5615_v23, %v7473_v39  ;;  %v5703_v28 = vmul.f32 %v5627_v36, %v7474_v37  ;;  %7475 = vst [vmem:[#allocation69_spill] sm:$0xff] %v5708_v61 }
 0x138   :  { %v1427_v13 = vadd.f32 %v1425_v1, %v1421_v48  ;;  %v1687_v45 = vadd.f32 %v1685_v46, %v1681_v21  ;;  %v1474_v55 = vrot.slane %v1446_v34, %v4976_v32  ;;  %v1612_v11 = vmul.f32 %v1539_v58, %v7439_v17 }
 0x139   :  { %v1613_v16 = vmul.f32 %v1539_v58, %v7440_v59  ;;  %v1691_v40 = vmul.f32 %v5708_v61, %v1689_v14  ;;  %v1342_v23 = vadd.f32 %v1341_v50, %v1322_v4  ;;  %v1357_v9 = vadd.f32 %v1356_v8, %v1323_v0 }
 0x13a   :  { %v1547_v54 = vrot.slane %v1460_v2, %v5024_v63  ;;  %v1614_v48 = vmul.f32 %v1543_v47, %v7407_v3  ;;  %v1615_v1 = vmul.f32 %v1543_v47, %v7408_v33  ;;  %v1640_v21 = vadd.f32 %v1610_v20, %v1608_v51 }
 0x13b   :  { %v1655_v46 = vadd.f32 %v1611_v56, %v1609_v41  ;;  %v1698_v34 = vadd.f32 %v1696_v15, %v1692_v43  ;;  %v1476_v58 = vcombine.high %v1460_v2, %v1460_v2  ;;  %v1701_v59 = vstv %s5672_s20  ;;  %v7476_v41 = vld [vmem:[#allocation43_spill] sm:$0xff]  ;;  %v7477_v56 = vld [vmem:[#allocation62_spill] sm:$0xff]  ;;  %s6127_s20 = sld [smem:[#allocation9 + $0x7]] }
 0x13c   :  { %v1707_v17 = vstv %s5683_s21  ;;  %v7220_v38 = vstv %s5685_s22  ;;  %v1551_v14 = vrot.slane %v1474_v55, %v5024_v63  ;;  %v1641_v8 = vadd.f32 %v1640_v21, %v1612_v11  ;;  %s6129_s21 = sld [smem:[#allocation9 + $0x87]] }
 0x13d   :  { %v1656_v4 = vadd.f32 %v1655_v46, %v1613_v16  ;;  %v1702_v0 = vmul.f32 %v5512_v5, %v1701_v59  ;;  %v1616_v47 = vmul.f32 %v1547_v54, %v7445_v10  ;;  %v1617_v20 = vmul.f32 %v1547_v54, %v7410_v44 }
 0x13e   :  { %v1708_v43 = vmul.f32 %v7476_v41, %v1707_v17  ;;  %v1642_v15 = vadd.f32 %v1641_v8, %v1614_v48  ;;  %v1714_v33 = vmul.f32 %v7477_v56, %v7220_v38  ;;  %v1343_v11 = vadd.f32 %v1342_v23, %v5653_v57 }
 0x13f   :  { %v1657_v2 = vadd.f32 %v1656_v4, %v1615_v1  ;;  %v1704_v51 = vadd.f32 %v1702_v0, %v1698_v34  ;;  %v1479_v16 = vcombine.high %v1427_v13, %v1427_v13  ;;  %v1486_v21 = vrot.slane %v1427_v13, %v4976_v32 }
 0x140   :  { %v7478_v46 = vstv %s5621_s19  ;;  %v1358_v50 = vadd.f32 %v1357_v9, %v5664_v29  ;;  %v1478_v48 = vcombine.high %v1474_v55, %v1474_v55  ;;  %v1693_v8 = vadd.f32 %v1691_v40, %v1687_v45  ;;  %s6097_s19 = sld [smem:[#allocation10 + $0x5]] }
 0x141   :  { %v1697_v54 = vmul.f32 %v5556_v25, %v7478_v46  ;;  %v1710_v1 = vadd.f32 %v1708_v43, %v1704_v51  ;;  %v1555_v34 = vrot.slane %v1476_v58, %v5024_v63  ;;  %v1618_v4 = vmul.f32 %v1551_v14, %v5061_v42  ;;  %v7480_v46 = vld [vmem:[#allocation39_spill] sm:$0xff]  ;;  %v7482_v51 = vld [vmem:[#allocation60_spill] sm:$0xff] }
 0x142   :  { %v1619_v0 = vmul.f32 %v1551_v14, %v5073_v52  ;;  %v7479_v38 = vstv %s5693_s23  ;;  %v1643_v23 = vadd.f32 %v1642_v15, %v1616_v47  ;;  %v1658_v13 = vadd.f32 %v1657_v2, %v1617_v20 }
 0x143   :  { %v1720_v57 = vmul.f32 %v5543_v24, %v7479_v38  ;;  %v1716_v44 = vadd.f32 %v1714_v33, %v1710_v1  ;;  %v7224_v10 = vstv %s5714_s1  ;;  %v1329_v9 = vmul.f32 %v5627_v36, %v7480_v46 }
 0x144   :  { %v1344_v29 = vadd.f32 %v1343_v11, %v5668_v7  ;;  %v1493_v45 = vrot.slane %v1479_v16, %v4976_v32  ;;  %v1494_v55 = vcombine.high %v1486_v21, %v1486_v21  ;;  %v1359_v40 = vadd.f32 %v1358_v50, %v1327_v60 }
 0x145   :  { %v1502_v58 = vrot.slane %v1486_v21, %v4976_v32  ;;  %v1699_v14 = vadd.f32 %v1697_v54, %v1693_v8  ;;  %v1703_v38 = vmul.f32 %v5574_v18, %v1701_v59  ;;  %v1559_v47 = vrot.slane %v1478_v48, %v5024_v63 }
 0x146   :  { %v1620_v33 = vmul.f32 %v1555_v34, %v5076_v35  ;;  %v1722_v20 = vadd.f32 %v1720_v57, %v1716_v44  ;;  %v1726_v36 = vmul.f32 %v5550_v22, %v7224_v10  ;;  %v1621_v43 = vmul.f32 %v1555_v34, %v5079_v31 }
 0x147   :  { %v1644_v7 = vadd.f32 %v1643_v23, %v1618_v4  ;;  %v1659_v15 = vadd.f32 %v1658_v13, %v1619_v0  ;;  %v7223_v2 = vstv %s5728_s2  ;;  %v7481_v60 = vstv %s5360_s29  ;;  %s5852_s29 = sld [smem:[#allocation9 + $0x305]] }
 0x148   :  { %v1059_v50 = vadd.f32 %v7481_v60, %v5624_v62  ;;  %v1330_v59 = vmul.f32 %v5630_v6, %v7482_v51  ;;  %v1331_v11 = vmul.f32 %v5630_v6, %v7446_v19  ;;  %v1345_v44 = vadd.f32 %v1344_v29, %v5703_v28  ;;  %v7489_v60 = vld [vmem:[#allocation27_spill] sm:$0xff] }
 0x149   :  { %v1360_v16 = vadd.f32 %v1359_v40, %v1329_v9  ;;  %v1495_v21 = vcombine.high %v1493_v45, %v1493_v45  ;;  %v1705_v54 = vadd.f32 %v1703_v38, %v1699_v14  ;;  %v1709_v48 = vmul.f32 %v5592_v26, %v1707_v17  ;;  %v7483_v17 = vld [vmem:[#allocation64_spill] sm:$0xff]  ;;  %v7487_v38 = vld [vmem:[#allocation63_spill] sm:$0xff] }
 0x14a   :  { %v1516_v8 = vrot.slane %v1494_v55, %v4976_v32  ;;  %v1563_v1 = vrot.slane %v1502_v58, %v5024_v63  ;;  %v1728_v62 = vadd.f32 %v1726_v36, %v1722_v20  ;;  %v1732_v34 = vmul.f32 %v5566_v49, %v7223_v2 }
 0x14b   :  { %v1622_v6 = vmul.f32 %v1559_v47, %v7415_v12  ;;  %v1623_v28 = vmul.f32 %v1559_v47, %v7416_v30  ;;  %v1645_v4 = vadd.f32 %v1644_v7, %v1620_v33  ;;  %v1660_v0 = vadd.f32 %v1659_v15, %v1621_v43  ;;  %v7488_v7 = vld [vmem:[#allocation26_spill] sm:$0xff] }
 0x14c   :  { %v5779_v57 = vmax.f32 %v7483_v17, 0.0  ;;  %v5781_v23 = vmax.f32 %v1059_v50, 0.0  ;;  %v1346_v13 = vadd.f32 %v1345_v44, %v1330_v59  ;;  %v1509_v9 = vrot.slane %v1493_v45, %v4976_v32  ;;  %v7495_v17 = vld [vmem:[#allocation29_spill] sm:$0xff] }
 0x14d   :  { %v1361_v29 = vadd.f32 %v1360_v16, %v1331_v11  ;;  %v1524_v55 = vcombine.high %v1502_v58, %v1502_v58  ;;  %v1711_v40 = vadd.f32 %v1709_v48, %v1705_v54  ;;  %v7486_v14 = vstv %s5685_s22  ;;  %v7490_v58 = vld [vmem:[#allocation44_spill] sm:$0xff]  ;;  %v7491_v54 = vld [vmem:[#allocation45_spill] sm:$0xff]  ;;  %s6147_s22 = sld [smem:[#allocation9 + $0x107]] }
 0x14e   :  { %7484 = vst [vmem:[#allocation43_spill] sm:$0xff] %v5779_v57  ;;  %7485 = vst [vmem:[#allocation62_spill] sm:$0xff] %v5781_v23  ;;  %v1715_v47 = vmul.f32 %v7487_v38, %v7486_v14  ;;  %v1523_v33 = vrot.slane %v1495_v21, %v4976_v32  ;;  %v1526_v20 = vcombine.high %v1516_v8, %v1516_v8  ;;  %v1991_v10 = vstv %s5776_s25  ;;  %v7510_v38 = vld [vmem:[#allocation67_spill] sm:$0xff]  ;;  %s6222_s25 = sld [smem:[#allocation9 + $0x407]] }
 0x14f   :  { %v1567_v36 = vrot.slane %v1516_v8, %v5024_v63  ;;  %v5789_v43 = vadd.f32 %v1732_v34, %v1728_v62  ;;  %v1624_v15 = vmul.f32 %v1563_v1, %v7488_v7  ;;  %v1625_v50 = vmul.f32 %v1563_v1, %v7489_v60  ;;  %v7493_v1 = vld [vmem:[#allocation65_spill] sm:$0xff] }
 0x150   :  { %v1646_v45 = vadd.f32 %v1645_v4, %v1622_v6  ;;  %v1661_v59 = vadd.f32 %v1660_v0, %v1623_v28  ;;  %v1362_v11 = vmul.f32 %v7490_v58, %v1346_v13  ;;  %v1525_v44 = vcombine.high %v1509_v9, %v1509_v9  ;;  %v7494_v4 = vld [vmem:[#allocation28_spill] sm:$0xff] }
 0x151   :  { %v1527_v16 = vcombine.high %v1523_v33, %v1523_v33  ;;  %v1363_v48 = vmul.f32 %v7491_v54, %v1361_v29  ;;  %v1571_v8 = vrot.slane %v1524_v55, %v5024_v63  ;;  %v1717_v62 = vadd.f32 %v1715_v47, %v1711_v40 }
 0x152   :  { %v7492_v34 = vstv %s5693_s23  ;;  %v1575_v28 = vrot.slane %v1526_v20, %v5024_v63  ;;  %v1626_v0 = vmul.f32 %v1567_v36, %v7494_v4  ;;  %v1627_v13 = vmul.f32 %v1567_v36, %v7495_v17  ;;  %v7500_v17 = vld [vmem:[#allocation30_spill] sm:$0xff]  ;;  %s6169_s23 = sld [smem:[#allocation9 + $0x187]] }
 0x153   :  { %v1721_v6 = vmul.f32 %v7493_v1, %v7492_v34  ;;  %v1745_v14 = vrot.slane %v5789_v43, %v4976_v32  ;;  %v1647_v21 = vadd.f32 %v1646_v45, %v1624_v15  ;;  %v1662_v2 = vadd.f32 %v1661_v59, %v1625_v50  ;;  %v7499_v45 = vld [vmem:[#allocation66_spill] sm:$0xff] }
 0x154   :  { %v1987_v29 = vstv %s5774_s24  ;;  %v7496_v55 = vstv %s5561_s15  ;;  %v1579_v40 = vrot.slane %v1509_v9, %v5024_v63  ;;  %v1583_v47 = vrot.slane %v1523_v33, %v5024_v63  ;;  %v7501_v9 = vld [vmem:[#allocation42_spill] sm:$0xff]  ;;  %s6032_s15 = sld [smem:[#allocation9 + $0x306]]  ;;  %s6220_s24 = sld [smem:[#allocation9 + $0x387]] }
 0x155   :  { %v1366_v23 = vadd.f32 %v7496_v55, %v1362_v11  ;;  %v1587_v20 = vrot.slane %v1525_v44, %v5024_v63  ;;  %v7497_v34 = vmov %v7496_v55  ;;  %v1591_v57 = vrot.slane %v1527_v16, %v5024_v63  ;;  %v7502_v33 = vld [vmem:[#allocation46_spill] sm:$0xff]  ;;  %v7503_v44 = vld [vmem:[#allocation31_spill] sm:$0xff]  ;;  %v7505_v16 = vld [vmem:[#allocation32_spill] sm:$0xff] }
 0x156   :  { %v5818_v36 = vadd.f32 %v7497_v34, %v1363_v48  ;;  %v1723_v15 = vadd.f32 %v1721_v6, %v1717_v62  ;;  %v7498_v50 = vstv %s5714_s1  ;;  %v1628_v11 = vmul.f32 %v1571_v8, %v7500_v17  ;;  %v7506_v6 = vld [vmem:[#allocation68_spill] sm:$0xff]  ;;  %v7508_v17 = vld [vmem:[#allocation33_spill] sm:$0xff]  ;;  %s6187_s1 = sld [smem:[#allocation9 + $0x207]] }
 0x157   :  { %v1727_v59 = vmul.f32 %v7499_v45, %v7498_v50  ;;  %v1753_v55 = vcombine.high %v1745_v14, %v1745_v14  ;;  %v1988_v4 = vmul.f32 %v7501_v9, %v1987_v29  ;;  %v1992_v60 = vmul.f32 %v7502_v33, %v1991_v10  ;;  %v7507_v50 = vld [vmem:[#allocation52_spill] sm:$0xff] }
 0x158   :  { %v1629_v7 = vmul.f32 %v1571_v8, %v7503_v44  ;;  %v1648_v30 = vadd.f32 %v1647_v21, %v1626_v0  ;;  %v1663_v1 = vadd.f32 %v1662_v2, %v1627_v13  ;;  %v1997_v48 = vstv %s5793_s26  ;;  %v7511_v21 = vld [vmem:[#allocation34_spill] sm:$0xff]  ;;  %s6234_s26 = sld [smem:[#allocation9 + $0x487]] }
 0x159   :  { %v5829_v34 = vmax.f32 %v1366_v23, 0.0  ;;  %v1630_v62 = vmul.f32 %v1575_v28, %v7505_v16  ;;  %v1989_v12 = vmul.f32 %v7506_v6, %v1987_v29  ;;  %v1993_v45 = vmul.f32 %v7507_v50, %v1991_v10  ;;  %v7513_v6 = vld [vmem:[#allocation35_spill] sm:$0xff] }
 0x15a   :  { %v1631_v9 = vmul.f32 %v1575_v28, %v7508_v17  ;;  %v1729_v31 = vadd.f32 %v1727_v59, %v1723_v15  ;;  %v7509_v33 = vstv %s5728_s2  ;;  %v1761_v2 = vrot.slane %v1745_v14, %v4976_v32  ;;  %v7514_v15 = vld [vmem:[#allocation36_spill] sm:$0xff]  ;;  %s6206_s2 = sld [smem:[#allocation9 + $0x287]] }
 0x15b   :  { %7504 = vst [vmem:[#allocation64_spill] sm:$0xff] %v5829_v34  ;;  %v1733_v8 = vmul.f32 %v7510_v38, %v7509_v33  ;;  %v1632_v23 = vmul.f32 %v1579_v40, %v7511_v21  ;;  %v1775_v0 = vrot.slane %v1753_v55, %v4976_v32  ;;  %v1994_v13 = vadd.f32 %v1992_v60, %v1988_v4  ;;  %v7512_v34 = vld [vmem:[#allocation47_spill] sm:$0xff] }
 0x15c   :  { %v1998_v29 = vmul.f32 %v7512_v34, %v1997_v48  ;;  %v1633_v10 = vmul.f32 %v1579_v40, %v7513_v6  ;;  %v1649_v50 = vadd.f32 %v1648_v30, %v1628_v11  ;;  %v1664_v16 = vadd.f32 %v1663_v1, %v1629_v7 }
 0x15d   :  { %v1738_v28 = vcombine.high %v5789_v43, %v5789_v43  ;;  %v1634_v59 = vmul.f32 %v1583_v47, %v7514_v15  ;;  %v1995_v17 = vadd.f32 %v1993_v45, %v1989_v12  ;;  %v1999_v33 = vmul.f32 %v5708_v61, %v1997_v48  ;;  %v7517_v61 = vld [vmem:[#allocation51_spill] sm:$0xff] }
 0x15e   :  { %v2003_v14 = vstv %s5814_s27  ;;  %v1635_v60 = vmul.f32 %v1583_v47, %v7473_v39  ;;  %v1636_v4 = vmul.f32 %v1587_v20, %v7474_v37  ;;  %v1735_v30 = vadd.f32 %v1733_v8, %v1729_v31  ;;  %s6278_s27 = sld [smem:[#allocation10 + $0x6]] }
 0x15f   :  { %v1783_v7 = vcombine.high %v1761_v2, %v1761_v2  ;;  %v1637_v1 = vmul.f32 %v1587_v20, %v7480_v46  ;;  %v1839_v43 = vrot.slane %v1761_v2, %v5024_v63  ;;  %v1843_v12 = vrot.slane %v1775_v0, %v5024_v63 }
 0x160   :  { %v2000_v40 = vadd.f32 %v1998_v29, %v1994_v13  ;;  %v1650_v45 = vadd.f32 %v1649_v50, %v1630_v62  ;;  %v1665_v11 = vadd.f32 %v1664_v16, %v1631_v9  ;;  %v1752_v55 = vrot.slane %v1738_v28, %v4976_v32  ;;  %v7515_v13 = vld [vmem:[#allocation49_spill] sm:$0xff]  ;;  %v7516_v28 = vld [vmem:[#allocation50_spill] sm:$0xff] }
 0x161   :  { %v2004_v48 = vmul.f32 %v5508_v53, %v2003_v14  ;;  %v5866_v31 = vmul.f32 %v1591_v57, %v7482_v51  ;;  %v5869_v47 = vmul.f32 %v1591_v57, %v7446_v19  ;;  %v2001_v20 = vadd.f32 %v1999_v33, %v1995_v17 }
 0x162   :  { %v2009_v8 = vstv %s5834_s6  ;;  %v1785_v2 = vcombine.high %v1775_v0, %v1775_v0  ;;  %v1787_v9 = vcombine.high %v1735_v30, %v1735_v30  ;;  %v5873_v16 = vrot.slane %v1735_v30, %v4976_v32  ;;  %s6314_s6 = sld [smem:[#allocation12]] }
 0x163   :  { %v1847_v62 = vrot.slane %v1783_v7, %v5024_v63  ;;  %v1916_v50 = vmul.f32 %v1839_v43, %v7469_v27  ;;  %v1917_v29 = vmul.f32 %v1839_v43, %v7515_v13  ;;  %v1918_v53 = vmul.f32 %v1843_v12, %v7516_v28  ;;  %v7518_v13 = vld [vmem:[#allocation53_spill] sm:$0xff] }
 0x164   :  { %v1919_v57 = vmul.f32 %v1843_v12, %v7517_v61  ;;  %v1651_v19 = vadd.f32 %v1650_v45, %v1632_v23  ;;  %v1666_v17 = vadd.f32 %v1665_v11, %v1633_v10  ;;  %v1754_v33 = vcombine.high %v1752_v55, %v1752_v55  ;;  %v7519_v23 = vld [vmem:[#allocation54_spill] sm:$0xff] }
 0x165   :  { %v2006_v0 = vadd.f32 %v2004_v48, %v2000_v40  ;;  %v1768_v30 = vrot.slane %v1752_v55, %v4976_v32  ;;  %v2010_v7 = vmul.f32 %v5512_v5, %v2009_v8  ;;  %v2015_v27 = vstv %s5850_s28  ;;  %s6329_s28 = sld [smem:[#allocation12 + $0x80]] }
 0x166   :  { %v2021_v51 = vstv %s5852_s29  ;;  %v1851_v43 = vrot.slane %v1785_v2, %v5024_v63  ;;  %v1920_v12 = vmul.f32 %v1847_v62, %v7518_v13  ;;  %v1921_v45 = vmul.f32 %v1847_v62, %v7519_v23  ;;  %s6364_s29 = sld [smem:[#allocation12 + $0x100]] }
 0x167   :  { %v2016_v10 = vmul.f32 %v7476_v41, %v2015_v27  ;;  %v1948_v40 = vadd.f32 %v1918_v53, %v1916_v50  ;;  %v1963_v11 = vadd.f32 %v1919_v57, %v1917_v29  ;;  %v2012_v48 = vadd.f32 %v2010_v7, %v2006_v0  ;;  %v7520_v29 = vld [vmem:[#allocation56_spill] sm:$0xff] }
 0x168   :  { %v2022_v61 = vmul.f32 %v7477_v56, %v2021_v51  ;;  %v1652_v55 = vadd.f32 %v1651_v19, %v1634_v59  ;;  %v1667_v5 = vadd.f32 %v1666_v17, %v1635_v60  ;;  %v2027_v28 = vstv %s5861_s30  ;;  %s6377_s30 = sld [smem:[#allocation12 + $0x180]] }
 0x169   :  { %v7240_v34 = vstv %s5863_s9  ;;  %v1782_v46 = vrot.slane %v1754_v33, %v4976_v32  ;;  %v1801_v2 = vrot.slane %v1787_v9, %v4976_v32  ;;  %v2018_v13 = vadd.f32 %v2016_v10, %v2012_v48 }
 0x16a   :  { %v2028_v62 = vmul.f32 %v5543_v24, %v2027_v28  ;;  %v1855_v53 = vrot.slane %v1768_v30, %v5024_v63  ;;  %v1922_v50 = vmul.f32 %v1851_v43, %v7407_v3  ;;  %v1923_v56 = vmul.f32 %v1851_v43, %v7520_v29 }
 0x16b   :  { %v2005_v19 = vmul.f32 %v5556_v25, %v2003_v14  ;;  %v1949_v59 = vadd.f32 %v1948_v40, %v1920_v12  ;;  %v1964_v60 = vadd.f32 %v1963_v11, %v1921_v45  ;;  %v2024_v57 = vadd.f32 %v2022_v61, %v2018_v13  ;;  %v7521_v12 = vld [vmem:[#allocation57_spill] sm:$0xff]  ;;  %v7522_v61 = vld [vmem:[#allocation59_spill] sm:$0xff] }
 0x16c   :  { %v2034_v17 = vmul.f32 %v5550_v22, %v7240_v34  ;;  %v1653_v33 = vadd.f32 %v1652_v55, %v1636_v4  ;;  %v1668_v9 = vadd.f32 %v1667_v5, %v1637_v1  ;;  %v1802_v0 = vcombine.high %v5873_v16, %v5873_v16 }
 0x16d   :  { %v7239_v7 = vstv %s5880_s10  ;;  %v1784_v10 = vcombine.high %v1768_v30, %v1768_v30  ;;  %v1803_v48 = vcombine.high %v1801_v2, %v1801_v2  ;;  %v1859_v43 = vrot.slane %v1782_v46, %v5024_v63 }
 0x16e   :  { %v2030_v14 = vadd.f32 %v2028_v62, %v2024_v57  ;;  %v1924_v45 = vmul.f32 %v1855_v53, %v7521_v12  ;;  %v1925_v13 = vmul.f32 %v1855_v53, %v7522_v61  ;;  %v2007_v40 = vadd.f32 %v2005_v19, %v2001_v20 }
 0x16f   :  { %v2011_v22 = vmul.f32 %v5574_v18, %v2009_v8  ;;  %v1950_v4 = vadd.f32 %v1949_v59, %v1922_v50  ;;  %v1965_v1 = vadd.f32 %v1964_v60, %v1923_v56  ;;  %v2040_v55 = vmul.f32 %v5566_v49, %v7239_v7  ;;  %v7534_v7 = vld [vmem:[#allocation27_spill] sm:$0xff] }
 0x170   :  { %v2036_v11 = vadd.f32 %v2034_v17, %v2030_v14  ;;  %v5920_v5 = vmax.f32 %v5818_v36, 0.0  ;;  %v1654_v30 = vadd.f32 %v1653_v33, %v5866_v31  ;;  %v1669_v62 = vadd.f32 %v1668_v9, %v5869_v47 }
 0x171   :  { %v1810_v57 = vrot.slane %v5873_v16, %v4976_v32  ;;  %v1786_v20 = vcombine.high %v1782_v46, %v1782_v46  ;;  %v1817_v8 = vrot.slane %v1801_v2, %v4976_v32  ;;  %v1824_v53 = vrot.slane %v1802_v0, %v4976_v32 }
 0x172   :  { %7523 = vst [vmem:[#allocation59_spill] sm:$0xff] %v5920_v5  ;;  %v1831_v50 = vrot.slane %v1803_v48, %v4976_v32  ;;  %v1863_v56 = vrot.slane %v1784_v10, %v5024_v63  ;;  %v1926_v36 = vmul.f32 %v1859_v43, %v5061_v42  ;;  %v2013_v19 = vadd.f32 %v2011_v22, %v2007_v40  ;;  %v7525_v40 = vld [vmem:[#allocation23_spill] sm:$0xff] }
 0x173   :  { %v2017_v31 = vmul.f32 %v5592_v26, %v2015_v27  ;;  %v1927_v47 = vmul.f32 %v1859_v43, %v5073_v52  ;;  %v1951_v59 = vadd.f32 %v1950_v4, %v1924_v45  ;;  %v1966_v16 = vadd.f32 %v1965_v1, %v1925_v13  ;;  %v7524_v45 = vld [vmem:[#allocation63_spill] sm:$0xff] }
 0x174   :  { %v5933_v60 = vadd.f32 %v2040_v55, %v2036_v11  ;;  %v1670_v46 = vmul.f32 %v7490_v58, %v1654_v30  ;;  %v1671_v2 = vmul.f32 %v7491_v54, %v1669_v62  ;;  %v1832_v17 = vcombine.high %v1810_v57, %v1810_v57  ;;  %v7537_v54 = vld [vmem:[#allocation30_spill] sm:$0xff] }
 0x175   :  { %v1833_v9 = vcombine.high %v1817_v8, %v1817_v8  ;;  %v1834_v0 = vcombine.high %v1824_v53, %v1824_v53  ;;  %v1835_v10 = vcombine.high %v1831_v50, %v1831_v50  ;;  %v1867_v27 = vrot.slane %v1786_v20, %v5024_v63 }
 0x176   :  { %v1871_v48 = vrot.slane %v1810_v57, %v5024_v63  ;;  %v1928_v43 = vmul.f32 %v1863_v56, %v5076_v35  ;;  %v2019_v14 = vadd.f32 %v2017_v31, %v2013_v19  ;;  %v2023_v13 = vmul.f32 %v7524_v45, %v2021_v51 }
 0x177   :  { %v1929_v22 = vmul.f32 %v1863_v56, %v7525_v40  ;;  %v1952_v4 = vadd.f32 %v1951_v59, %v1926_v36  ;;  %v1967_v1 = vadd.f32 %v1966_v16, %v1927_v47  ;;  %v2053_v11 = vrot.slane %v5933_v60, %v4976_v32  ;;  %v7528_v47 = vld [vmem:[#allocation24_spill] sm:$0xff] }
 0x178   :  { %v7526_v55 = vstv %s5764_s4  ;;  %v1875_v20 = vrot.slane %v1824_v53, %v5024_v63  ;;  %v1879_v51 = vrot.slane %v1832_v17, %v5024_v63  ;;  %v1883_v19 = vrot.slane %v1834_v0, %v5024_v63  ;;  %s6208_s4 = sld [smem:[#allocation9 + $0x307]] }
 0x179   :  { %v1674_v30 = vadd.f32 %v7526_v55, %v1670_v46  ;;  %v7527_v62 = vmov %v7526_v55  ;;  %v1887_v31 = vrot.slane %v1817_v8, %v5024_v63  ;;  %v1891_v33 = vrot.slane %v1831_v50, %v5024_v63  ;;  %v7529_v46 = vld [vmem:[#allocation65_spill] sm:$0xff]  ;;  %v7533_v55 = vld [vmem:[#allocation26_spill] sm:$0xff] }
 0x17a   :  { %v1675_v57 = vadd.f32 %v7527_v62, %v1671_v2  ;;  %v1895_v56 = vrot.slane %v1833_v9, %v5024_v63  ;;  %v5962_v36 = vrot.slane %v1835_v10, %v5024_v63  ;;  %v1930_v59 = vmul.f32 %v1867_v27, %v7528_v47  ;;  %v7530_v2 = vld [vmem:[#allocation25_spill] sm:$0xff]  ;;  %v7539_v47 = vld [vmem:[#allocation66_spill] sm:$0xff] }
 0x17b   :  { %v2025_v16 = vadd.f32 %v2023_v13, %v2019_v14  ;;  %v2029_v53 = vmul.f32 %v7529_v46, %v2027_v28  ;;  %v1931_v8 = vmul.f32 %v1867_v27, %v7530_v2  ;;  %v1953_v17 = vadd.f32 %v1952_v4, %v1928_v43  ;;  %v7535_v13 = vld [vmem:[#allocation28_spill] sm:$0xff]  ;;  %v7536_v28 = vld [vmem:[#allocation29_spill] sm:$0xff] }
 0x17c   :  { %v1968_v50 = vadd.f32 %v1967_v1, %v1929_v22  ;;  %v2061_v0 = vcombine.high %v2053_v11, %v2053_v11  ;;  %v5971_v9 = vmax.f32 %v1674_v30, 0.0  ;;  %v5973_v10 = vmax.f32 %v1675_v57, 0.0 }
 0x17d   :  { %v1932_v62 = vmul.f32 %v1871_v48, %v7533_v55  ;;  %v1933_v14 = vmul.f32 %v1871_v48, %v7534_v7  ;;  %v1934_v34 = vmul.f32 %v1875_v20, %v7535_v13  ;;  %v1935_v5 = vmul.f32 %v1875_v20, %v7536_v28 }
 0x17e   :  { %7531 = vst [vmem:[#allocation63_spill] sm:$0xff] %v5971_v9  ;;  %7532 = vst [vmem:[#allocation23_spill] sm:$0xff] %v5973_v10  ;;  %v1936_v58 = vmul.f32 %v1879_v51, %v7537_v54  ;;  %v7538_v46 = vstv %s5863_s9  ;;  %v2031_v43 = vadd.f32 %v2029_v53, %v2025_v16  ;;  %v2069_v22 = vrot.slane %v2053_v11, %v4976_v32  ;;  %v7540_v9 = vld [vmem:[#allocation32_spill] sm:$0xff]  ;;  %v7541_v54 = vld [vmem:[#allocation33_spill] sm:$0xff]  ;;  %s6399_s9 = sld [smem:[#allocation12 + $0x200]] }
 0x17f   :  { %v2035_v27 = vmul.f32 %v7539_v47, %v7538_v46  ;;  %v2295_v4 = vstv %s5944_s12  ;;  %v2299_v1 = vstv %s5946_s13  ;;  %v1937_v30 = vmul.f32 %v1879_v51, %v7503_v44  ;;  %v7542_v46 = vld [vmem:[#allocation42_spill] sm:$0xff]  ;;  %s6429_s12 = sld [smem:[#allocation12 + $0x300]]  ;;  %s6433_s13 = sld [smem:[#allocation12 + $0x1]] }
 0x180   :  { %v1954_v57 = vadd.f32 %v1953_v17, %v1930_v59  ;;  %v1969_v48 = vadd.f32 %v1968_v50, %v1931_v8  ;;  %v2083_v10 = vrot.slane %v2061_v0, %v4976_v32  ;;  %v5989_v20 = vmul.f32 %v1883_v19, %v7540_v9  ;;  %v7543_v8 = vld [vmem:[#allocation46_spill] sm:$0xff] }
 0x181   :  { %v5992_v28 = vmul.f32 %v1883_v19, %v7541_v54  ;;  %v5995_v16 = vmul.f32 %v1887_v31, %v7511_v21  ;;  %v5998_v11 = vmul.f32 %v1887_v31, %v7513_v6  ;;  %v6003_v51 = vmul.f32 %v1891_v33, %v7514_v15 }
 0x182   :  { %v2046_v59 = vcombine.high %v5933_v60, %v5933_v60  ;;  %v2296_v53 = vmul.f32 %v7542_v46, %v2295_v4  ;;  %v2300_v17 = vmul.f32 %v7543_v8, %v2299_v1  ;;  %v2037_v19 = vadd.f32 %v2035_v27, %v2031_v43  ;;  %v7545_v46 = vld [vmem:[#allocation68_spill] sm:$0xff] }
 0x183   :  { %v7544_v50 = vstv %s5880_s10  ;;  %v2091_v21 = vcombine.high %v2069_v22, %v2069_v22  ;;  %v2305_v54 = vstv %s5968_s3  ;;  %v1955_v31 = vadd.f32 %v1954_v57, %v1932_v62  ;;  %v7546_v27 = vld [vmem:[#allocation52_spill] sm:$0xff]  ;;  %v7547_v62 = vld [vmem:[#allocation39_spill] sm:$0xff]  ;;  %s6413_s10 = sld [smem:[#allocation12 + $0x280]]  ;;  %s6435_s3 = sld [smem:[#allocation12 + $0x81]] }
 0x184   :  { %v2041_v0 = vmul.f32 %v7510_v38, %v7544_v50  ;;  %v1970_v6 = vadd.f32 %v1969_v48, %v1933_v14  ;;  %v2147_v9 = vrot.slane %v2069_v22, %v5024_v63  ;;  %v2151_v15 = vrot.slane %v2083_v10, %v5024_v63  ;;  %v7549_v50 = vld [vmem:[#allocation60_spill] sm:$0xff]  ;;  %v7551_v38 = vld [vmem:[#allocation50_spill] sm:$0xff] }
 0x185   :  { %v6016_v44 = vmul.f32 %v1891_v33, %v7473_v39  ;;  %v6019_v60 = vmul.f32 %v1895_v56, %v7474_v37  ;;  %v2297_v8 = vmul.f32 %v7545_v46, %v2295_v4  ;;  %v2301_v43 = vmul.f32 %v7546_v27, %v2299_v1  ;;  %v7548_v33 = vld [vmem:[#allocation47_spill] sm:$0xff] }
 0x186   :  { %v6028_v14 = vmul.f32 %v1895_v56, %v7547_v62  ;;  %v2060_v22 = vrot.slane %v2046_v59, %v4976_v32  ;;  %v2302_v57 = vadd.f32 %v2300_v17, %v2296_v53  ;;  %v2306_v48 = vmul.f32 %v7548_v33, %v2305_v54  ;;  %v7550_v56 = vld [vmem:[#allocation48_spill] sm:$0xff]  ;;  %v7552_v53 = vld [vmem:[#allocation49_spill] sm:$0xff]  ;;  %v7553_v33 = vld [vmem:[#allocation51_spill] sm:$0xff] }
 0x187   :  { %v6036_v4 = vmul.f32 %v5962_v36, %v7549_v50  ;;  %v2043_v1 = vadd.f32 %v2041_v0, %v2037_v19  ;;  %v2093_v27 = vcombine.high %v2083_v10, %v2083_v10  ;;  %v2155_v37 = vrot.slane %v2091_v21, %v5024_v63  ;;  %v7554_v21 = vld [vmem:[#allocation69_spill] sm:$0xff] }
 0x188   :  { %v1956_v39 = vadd.f32 %v1955_v31, %v1934_v34  ;;  %v1971_v46 = vadd.f32 %v1970_v6, %v1935_v5  ;;  %v2224_v62 = vmul.f32 %v2147_v9, %v7550_v56  ;;  %v2226_v59 = vmul.f32 %v2151_v15, %v7551_v38 }
 0x189   :  { %v2225_v17 = vmul.f32 %v2147_v9, %v7552_v53  ;;  %v2227_v47 = vmul.f32 %v2151_v15, %v7553_v33  ;;  %v2303_v13 = vadd.f32 %v2301_v43, %v2297_v8  ;;  %v2311_v7 = vstv %s6000_s0  ;;  %v7555_v15 = vld [vmem:[#allocation53_spill] sm:$0xff]  ;;  %v7556_v33 = vld [vmem:[#allocation58_spill] sm:$0xff]  ;;  %s6449_s0 = sld [smem:[#allocation12 + $0x2]] }
 0x18a   :  { %v2062_v50 = vcombine.high %v2060_v22, %v2060_v22  ;;  %v2076_v10 = vrot.slane %v2060_v22, %v4976_v32  ;;  %v2307_v34 = vmul.f32 %v7554_v21, %v2305_v54  ;;  %v2308_v6 = vadd.f32 %v2306_v48, %v2302_v57 }
 0x18b   :  { %v2095_v5 = vcombine.high %v2043_v1, %v2043_v1  ;;  %v6051_v19 = vrot.slane %v2043_v1, %v4976_v32  ;;  %v2159_v9 = vrot.slane %v2093_v27, %v5024_v63  ;;  %v2228_v0 = vmul.f32 %v2155_v37, %v7555_v15 }
 0x18c   :  { %v1957_v31 = vadd.f32 %v1956_v39, %v1936_v58  ;;  %v1972_v8 = vadd.f32 %v1971_v46, %v1937_v30  ;;  %v2256_v43 = vadd.f32 %v2226_v59, %v2224_v62  ;;  %v2312_v38 = vmul.f32 %v7556_v33, %v2311_v7  ;;  %v6065_v30 = vld [vmem:[#allocation7 + $0x40] sm:$0xff] }
 0x18d   :  { %v2229_v22 = vmul.f32 %v2155_v37, %v7519_v23  ;;  %v2271_v54 = vadd.f32 %v2227_v47, %v2225_v17  ;;  %v2317_v57 = vstv %s6023_s5  ;;  %v2323_v48 = vstv %s6025_s14  ;;  %s6451_s5 = sld [smem:[#allocation12 + $0x82]]  ;;  %s6462_s14 = sld [smem:[#allocation12 + $0x101]] }
 0x18e   :  { %v2090_v1 = vrot.slane %v2062_v50, %v4976_v32  ;;  %v2163_v53 = vrot.slane %v2076_v10, %v5024_v63  ;;  %v2314_v27 = vadd.f32 %v2312_v38, %v2308_v6  ;;  %v2329_v15 = vstv %s6032_s15  ;;  %v6073_v6 = vld [vmem:[#allocation7 + $0x60] sm:$0xff]  ;;  %s6472_s15 = sld [smem:[#allocation12 + $0x102]] }
 0x18f   :  { %v2230_v39 = vmul.f32 %v2159_v9, %v7407_v3  ;;  %v2257_v58 = vadd.f32 %v2256_v43, %v2228_v0  ;;  %v2318_v37 = vmul.f32 %v6065_v30, %v2317_v57  ;;  %v2324_v47 = vmul.f32 %v7476_v41, %v2323_v48 }
 0x190   :  { %v1958_v46 = vadd.f32 %v1957_v31, %v5989_v20  ;;  %v1973_v62 = vadd.f32 %v1972_v8, %v5992_v28  ;;  %v2309_v50 = vadd.f32 %v2307_v34, %v2303_v13  ;;  %v2335_v59 = vstv %s6041_s16  ;;  %s6481_s16 = sld [smem:[#allocation12 + $0x380]] }
 0x191   :  { %v2231_v38 = vmul.f32 %v2159_v9, %v7520_v29  ;;  %v2272_v17 = vadd.f32 %v2271_v54, %v2229_v22  ;;  %v2320_v33 = vadd.f32 %v2318_v37, %v2314_v27  ;;  %v2330_v0 = vmul.f32 %v6073_v6, %v2329_v15 }
 0x192   :  { %v2092_v43 = vcombine.high %v2076_v10, %v2076_v10  ;;  %v2167_v41 = vrot.slane %v2090_v1, %v5024_v63  ;;  %v2313_v20 = vmul.f32 %v5556_v25, %v2311_v7  ;;  %v2341_v31 = vstv %s6048_s17  ;;  %v6089_v25 = vld [vmem:[#allocation7 + $0x80] sm:$0xff]  ;;  %s6486_s17 = sld [smem:[#allocation12 + $0x181]] }
 0x193   :  { %v2232_v13 = vmul.f32 %v2163_v53, %v7521_v12  ;;  %v2258_v28 = vadd.f32 %v2257_v58, %v2230_v39  ;;  %v2326_v34 = vadd.f32 %v2324_v47, %v2320_v33  ;;  %v2336_v9 = vmul.f32 %v5543_v24, %v2335_v59 }
 0x194   :  { %v1959_v8 = vadd.f32 %v1958_v46, %v5995_v16  ;;  %v1974_v22 = vadd.f32 %v1973_v62, %v5998_v11  ;;  %v2109_v54 = vrot.slane %v2095_v5, %v4976_v32  ;;  %v2233_v10 = vmul.f32 %v2163_v53, %v7522_v61  ;;  %v7557_v62 = vld [vmem:[#allocation61_spill] sm:$0xff] }
 0x195   :  { %v2273_v27 = vadd.f32 %v2272_v17, %v2231_v38  ;;  %v2332_v37 = vadd.f32 %v2330_v0, %v2326_v34  ;;  %v2342_v7 = vmul.f32 %v6089_v25, %v2341_v31  ;;  %v2347_v39 = vstv %s6059_s18  ;;  %s6493_s18 = sld [smem:[#allocation12 + $0x182]] }
 0x196   :  { %v2094_v58 = vcombine.high %v2090_v1, %v2090_v1  ;;  %v2110_v24 = vcombine.high %v6051_v19, %v6051_v19  ;;  %v2315_v16 = vadd.f32 %v2313_v20, %v2309_v50  ;;  %v2319_v11 = vmul.f32 %v5574_v18, %v2317_v57 }
 0x197   :  { %v2171_v53 = vrot.slane %v2092_v43, %v5024_v63  ;;  %v2234_v5 = vmul.f32 %v2167_v41, %v5061_v42  ;;  %v2259_v47 = vadd.f32 %v2258_v28, %v2232_v13  ;;  %v2338_v46 = vadd.f32 %v2336_v9, %v2332_v37 }
 0x198   :  { %v1947_v38 = vmul.f32 %v5962_v36, %v7557_v62  ;;  %v1960_v17 = vadd.f32 %v1959_v8, %v6003_v51  ;;  %v2111_v1 = vcombine.high %v2109_v54, %v2109_v54  ;;  %v2348_v33 = vmul.f32 %v5566_v49, %v2347_v39 }
 0x199   :  { %v1975_v0 = vadd.f32 %v1974_v22, %v6016_v44  ;;  %v2235_v50 = vmul.f32 %v2167_v41, %v5073_v52  ;;  %v2274_v18 = vadd.f32 %v2273_v27, %v2233_v10  ;;  %v2344_v57 = vadd.f32 %v2342_v7, %v2338_v46  ;;  %v7571_v10 = vld [vmem:[#allocation68_spill] sm:$0xff] }
 0x19a   :  { %v2118_v43 = vrot.slane %v6051_v19, %v4976_v32  ;;  %v2125_v20 = vrot.slane %v2109_v54, %v4976_v32  ;;  %v2321_v13 = vadd.f32 %v2319_v11, %v2315_v16  ;;  %v2325_v36 = vmul.f32 %v5592_v26, %v2323_v48 }
 0x19b   :  { %v2132_v51 = vrot.slane %v2110_v24, %v4976_v32  ;;  %v2175_v49 = vrot.slane %v2094_v58, %v5024_v63  ;;  %v2236_v44 = vmul.f32 %v2171_v53, %v5076_v35  ;;  %v2260_v28 = vadd.f32 %v2259_v47, %v2234_v5  ;;  %v7558_v58 = vld [vmem:[#allocation24_spill] sm:$0xff] }
 0x19c   :  { %v1961_v41 = vadd.f32 %v1960_v17, %v6019_v60  ;;  %v2139_v34 = vrot.slane %v2111_v1, %v4976_v32  ;;  %v2140_v9 = vcombine.high %v2118_v43, %v2118_v43  ;;  %v6119_v19 = vadd.f32 %v2348_v33, %v2344_v57  ;;  %v7559_v33 = vld [vmem:[#allocation65_spill] sm:$0xff] }
 0x19d   :  { %v1976_v8 = vadd.f32 %v1975_v0, %v6028_v14  ;;  %v2142_v22 = vcombine.high %v2132_v51, %v2132_v51  ;;  %v2237_v26 = vmul.f32 %v2171_v53, %v7525_v40  ;;  %v2275_v48 = vadd.f32 %v2274_v18, %v2235_v50 }
 0x19e   :  { %v2141_v54 = vcombine.high %v2125_v20, %v2125_v20  ;;  %v2327_v27 = vadd.f32 %v2325_v36, %v2321_v13  ;;  %v2331_v37 = vmul.f32 %v7524_v45, %v2329_v15  ;;  %v2143_v60 = vcombine.high %v2139_v34, %v2139_v34  ;;  %v7561_v13 = vld [vmem:[#allocation27_spill] sm:$0xff] }
 0x19f   :  { %v2179_v7 = vrot.slane %v2118_v43, %v5024_v63  ;;  %v2238_v14 = vmul.f32 %v2175_v49, %v7558_v58  ;;  %v2261_v24 = vadd.f32 %v2260_v28, %v2236_v44  ;;  %v1962_v16 = vadd.f32 %v1961_v41, %v6036_v4  ;;  %v7560_v43 = vld [vmem:[#allocation44_spill] sm:$0xff]  ;;  %v7563_v44 = vld [vmem:[#allocation29_spill] sm:$0xff]  ;;  %v7564_v41 = vld [vmem:[#allocation30_spill] sm:$0xff] }
 0x1a0   :  { %v2183_v11 = vrot.slane %v2132_v51, %v5024_v63  ;;  %v2187_v53 = vrot.slane %v2140_v9, %v5024_v63  ;;  %v2361_v45 = vrot.slane %v6119_v19, %v4976_v32  ;;  %v6138_v15 = vadd.f32 %v1976_v8, %v1947_v38  ;;  %v7562_v51 = vld [vmem:[#allocation28_spill] sm:$0xff]  ;;  %v7565_v8 = vld [vmem:[#allocation66_spill] sm:$0xff] }
 0x1a1   :  { %v2191_v5 = vrot.slane %v2142_v22, %v5024_v63  ;;  %v2239_v47 = vmul.f32 %v2175_v49, %v7530_v2  ;;  %v2276_v46 = vadd.f32 %v2275_v48, %v2237_v26  ;;  %v2195_v17 = vrot.slane %v2125_v20, %v5024_v63 }
 0x1a2   :  { %v2199_v1 = vrot.slane %v2139_v34, %v5024_v63  ;;  %v2333_v4 = vadd.f32 %v2331_v37, %v2327_v27  ;;  %v2337_v0 = vmul.f32 %v7559_v33, %v2335_v59  ;;  %v6150_v38 = vrot.slane %v2141_v54, %v5024_v63  ;;  %v7566_v37 = vld [vmem:[#allocation31_spill] sm:$0xff] }
 0x1a3   :  { %v6153_v50 = vrot.slane %v2143_v60, %v5024_v63  ;;  %v2240_v18 = vmul.f32 %v2179_v7, %v7533_v55  ;;  %v2262_v57 = vadd.f32 %v2261_v24, %v2238_v14  ;;  %v6157_v20 = vmul.f32 %v7560_v43, %v1962_v16 }
 0x1a4   :  { %v2241_v36 = vmul.f32 %v2179_v7, %v7561_v13  ;;  %v2242_v59 = vmul.f32 %v2183_v11, %v7562_v51  ;;  %v2369_v49 = vcombine.high %v2361_v45, %v2361_v45  ;;  %v2243_v28 = vmul.f32 %v2183_v11, %v7563_v44  ;;  %v7567_v7 = vld [vmem:[#allocation32_spill] sm:$0xff]  ;;  %v7568_v11 = vld [vmem:[#allocation33_spill] sm:$0xff] }
 0x1a5   :  { %v2244_v34 = vmul.f32 %v2187_v53, %v7564_v41  ;;  %v2277_v9 = vadd.f32 %v2276_v46, %v2239_v47  ;;  %v2343_v22 = vmul.f32 %v7565_v8, %v2341_v31  ;;  %v2339_v26 = vadd.f32 %v2337_v0, %v2333_v4  ;;  %v7569_v31 = vld [vmem:[#allocation34_spill] sm:$0xff] }
 0x1a6   :  { %v2377_v48 = vrot.slane %v2361_v45, %v4976_v32  ;;  %v2603_v54 = vstv %s6127_s20  ;;  %v2607_v27 = vstv %s6129_s21  ;;  %v2245_v60 = vmul.f32 %v2187_v53, %v7566_v37  ;;  %v7570_v45 = vld [vmem:[#allocation67_spill] sm:$0xff]  ;;  %v4434_v41 = vld [vmem:[#allocation7 + $0x18] sm:$0xff]  ;;  %s6516_s20 = sld [smem:[#allocation12 + $0x202]]  ;;  %s6524_s21 = sld [smem:[#allocation12 + $0x281]] }
 0x1a7   :  { %v2246_v14 = vmul.f32 %v2191_v5, %v7567_v7  ;;  %v2263_v24 = vadd.f32 %v2262_v57, %v2240_v18  ;;  %v2354_v16 = vcombine.high %v6119_v19, %v6119_v19  ;;  %v6176_v47 = vmul.f32 %v2191_v5, %v7568_v11  ;;  %v4432_v53 = vld [vmem:[#allocation7] sm:$0xff]  ;;  %v4433_v57 = vld [vmem:[#allocation7 + $0x10] sm:$0xff] }
 0x1a8   :  { %v6179_v46 = vmul.f32 %v2195_v17, %v7569_v31  ;;  %v2349_v4 = vmul.f32 %v7570_v45, %v2347_v39  ;;  %v2391_v33 = vrot.slane %v2369_v49, %v4976_v32  ;;  %v2278_v0 = vadd.f32 %v2277_v9, %v2241_v36  ;;  %v7572_v31 = vld [vmem:[#allocation35_spill] sm:$0xff]  ;;  %v7573_v9 = vld [vmem:[#allocation36_spill] sm:$0xff] }
 0x1a9   :  { %v2604_v8 = vmul.f32 %v4432_v53, %v2603_v54  ;;  %v2605_v18 = vmul.f32 %v7571_v10, %v2603_v54  ;;  %v2608_v7 = vmul.f32 %v4433_v57, %v2607_v27  ;;  %v2345_v37 = vadd.f32 %v2343_v22, %v2339_v26  ;;  %v7574_v10 = vld [vmem:[#allocation37_spill] sm:$0xff]  ;;  %v4435_v53 = vld [vmem:[#allocation7 + $0x20] sm:$0xff] }
 0x1aa   :  { %v2399_v19 = vcombine.high %v2377_v48, %v2377_v48  ;;  %v2609_v5 = vmul.f32 %v4434_v41, %v2607_v27  ;;  %v2613_v11 = vstv %s6147_s22  ;;  %v6190_v44 = vmul.f32 %v2195_v17, %v7572_v31  ;;  %s6532_s22 = sld [smem:[#allocation12 + $0x282]] }
 0x1ab   :  { %v2264_v39 = vadd.f32 %v2263_v24, %v2242_v59  ;;  %v2368_v36 = vrot.slane %v2354_v16, %v4976_v32  ;;  %v2401_v49 = vcombine.high %v2391_v33, %v2391_v33  ;;  %v6194_v45 = vmul.f32 %v2199_v1, %v7573_v9 }
 0x1ac   :  { %v6197_v54 = vmul.f32 %v2199_v1, %v7574_v10  ;;  %v2455_v22 = vrot.slane %v2377_v48, %v5024_v63  ;;  %v2459_v41 = vrot.slane %v2391_v33, %v5024_v63  ;;  %v2279_v26 = vadd.f32 %v2278_v0, %v2243_v28  ;;  %v7577_v0 = vld [vmem:[#allocation51_spill] sm:$0xff] }
 0x1ad   :  { %v2610_v27 = vadd.f32 %v2608_v7, %v2604_v8  ;;  %v2614_v17 = vmul.f32 %v4435_v53, %v2613_v11  ;;  %v2615_v57 = vmul.f32 %v7554_v21, %v2613_v11  ;;  %v6202_v59 = vadd.f32 %v2349_v4, %v2345_v37  ;;  %v7575_v21 = vld [vmem:[#allocation49_spill] sm:$0xff]  ;;  %v7576_v11 = vld [vmem:[#allocation50_spill] sm:$0xff] }
 0x1ae   :  { %v2463_v24 = vrot.slane %v2399_v19, %v5024_v63  ;;  %v2611_v16 = vadd.f32 %v2609_v5, %v2605_v18  ;;  %v2619_v9 = vstv %s6169_s23  ;;  %v2265_v1 = vadd.f32 %v2264_v39, %v2244_v34  ;;  %v7578_v18 = vld [vmem:[#allocation38_spill] sm:$0xff]  ;;  %v4436_v39 = vld [vmem:[#allocation7 + $0x30] sm:$0xff]  ;;  %s6541_s23 = sld [smem:[#allocation12 + $0x301]] }
 0x1af   :  { %v2370_v48 = vcombine.high %v2368_v36, %v2368_v36  ;;  %v2384_v33 = vrot.slane %v2368_v36, %v4976_v32  ;;  %v2467_v28 = vrot.slane %v2401_v49, %v5024_v63  ;;  %v2532_v7 = vmul.f32 %v2455_v22, %v7550_v56  ;;  %v7579_v36 = vld [vmem:[#allocation53_spill] sm:$0xff] }
 0x1b0   :  { %v2533_v37 = vmul.f32 %v2455_v22, %v7575_v21  ;;  %v2534_v4 = vmul.f32 %v2459_v41, %v7576_v11  ;;  %v2535_v8 = vmul.f32 %v2459_v41, %v7577_v0  ;;  %v6218_v19 = vmul.f32 %v6150_v38, %v7578_v18 }
 0x1b1   :  { %v2280_v5 = vadd.f32 %v2279_v26, %v2245_v60  ;;  %v2616_v34 = vadd.f32 %v2614_v17, %v2610_v27  ;;  %v2620_v53 = vmul.f32 %v4436_v39, %v2619_v9  ;;  %v2536_v49 = vmul.f32 %v2463_v24, %v7579_v36  ;;  %v4437_v26 = vld [vmem:[#allocation7 + $0x38] sm:$0xff] }
 0x1b2   :  { %v2537_v22 = vmul.f32 %v2463_v24, %v7519_v23  ;;  %v2617_v21 = vadd.f32 %v2615_v57, %v2611_v16  ;;  %v2625_v11 = vstv %s6187_s1  ;;  %v2266_v56 = vadd.f32 %v2265_v1, %v2246_v14  ;;  %s6546_s1 = sld [smem:[#allocation13]] }
 0x1b3   :  { %v2398_v41 = vrot.slane %v2370_v48, %v4976_v32  ;;  %v6230_v60 = vrot.slane %v6202_v59, %v4976_v32  ;;  %v2621_v27 = vmul.f32 %v4437_v26, %v2619_v9  ;;  %v2471_v17 = vrot.slane %v2384_v33, %v5024_v63 }
 0x1b4   :  { %v2538_v39 = vmul.f32 %v2467_v28, %v7407_v3  ;;  %v2564_v36 = vadd.f32 %v2534_v4, %v2532_v7  ;;  %v2579_v0 = vadd.f32 %v2535_v8, %v2533_v37  ;;  %v2281_v14 = vadd.f32 %v2280_v5, %v6176_v47  ;;  %v4438_v37 = vld [vmem:[#allocation7 + $0x50] sm:$0xff] }
 0x1b5   :  { %v2539_v57 = vmul.f32 %v2467_v28, %v7520_v29  ;;  %v2622_v24 = vadd.f32 %v2620_v53, %v2616_v34  ;;  %v2626_v16 = vmul.f32 %v6065_v30, %v2625_v11  ;;  %v2631_v9 = vstv %s6206_s2  ;;  %s6552_s2 = sld [smem:[#allocation12 + $0x302]] }
 0x1b6   :  { %v2565_v1 = vadd.f32 %v2564_v36, %v2536_v49  ;;  %v2580_v48 = vadd.f32 %v2579_v0, %v2537_v22  ;;  %v2637_v26 = vstv %s6208_s4  ;;  %v2267_v23 = vadd.f32 %v2266_v56, %v6179_v46  ;;  %v4439_v46 = vld [vmem:[#allocation7 + $0x48] sm:$0xff]  ;;  %v4440_v49 = vld [vmem:[#allocation7 + $0x70] sm:$0xff]  ;;  %s6559_s4 = sld [smem:[#allocation12 + $0x381]] }
 0x1b7   :  { %v2400_v3 = vcombine.high %v2384_v33, %v2384_v33  ;;  %v2628_v7 = vadd.f32 %v2626_v16, %v2622_v24  ;;  %v2632_v4 = vmul.f32 %v4438_v37, %v2631_v9  ;;  %v2475_v8 = vrot.slane %v2398_v41, %v5024_v63 }
 0x1b8   :  { %v2540_v47 = vmul.f32 %v2471_v17, %v7521_v12  ;;  %v2566_v28 = vadd.f32 %v2565_v1, %v2538_v39  ;;  %v2638_v30 = vmul.f32 %v6073_v6, %v2637_v26  ;;  %v2541_v5 = vmul.f32 %v2471_v17, %v7522_v61 }
 0x1b9   :  { %v2634_v34 = vadd.f32 %v2632_v4, %v2628_v7  ;;  %v2643_v0 = vstv %s6220_s24  ;;  %v2649_v53 = vstv %s6222_s25  ;;  %v2581_v36 = vadd.f32 %v2580_v48, %v2539_v57  ;;  %v7580_v57 = vld [vmem:[#allocation39_spill] sm:$0xff]  ;;  %s6561_s24 = sld [smem:[#allocation13 + $0x1]]  ;;  %s6567_s25 = sld [smem:[#allocation12 + $0x3]] }
 0x1ba   :  { %v2623_v56 = vadd.f32 %v2621_v27, %v2617_v21  ;;  %v2627_v33 = vmul.f32 %v4439_v46, %v2625_v11  ;;  %v2644_v22 = vmul.f32 %v4440_v49, %v2643_v0  ;;  %v2282_v24 = vadd.f32 %v2281_v14, %v6190_v44  ;;  %v4441_v14 = vld [vmem:[#allocation7 + $0x58] sm:$0xff] }
 0x1bb   :  { %v2402_v16 = vcombine.high %v2398_v41, %v2398_v41  ;;  %v2640_v37 = vadd.f32 %v2638_v30, %v2634_v34  ;;  %v2650_v39 = vmul.f32 %v6089_v25, %v2649_v53  ;;  %v2479_v6 = vrot.slane %v2400_v3, %v5024_v63 }
 0x1bc   :  { %v2542_v17 = vmul.f32 %v2475_v8, %v5061_v42  ;;  %v2567_v1 = vadd.f32 %v2566_v28, %v2540_v47  ;;  %v2655_v7 = vstv %s6234_s26  ;;  %v2253_v21 = vmul.f32 %v6150_v38, %v7580_v57  ;;  %v4442_v28 = vld [vmem:[#allocation7 + $0x90] sm:$0xff]  ;;  %s6573_s26 = sld [smem:[#allocation12 + $0x83]] }
 0x1bd   :  { %v2403_v11 = vcombine.high %v6202_v59, %v6202_v59  ;;  %v2418_v44 = vcombine.high %v6230_v60, %v6230_v60  ;;  %v2646_v41 = vadd.f32 %v2644_v22, %v2640_v37  ;;  %v2543_v25 = vmul.f32 %v2475_v8, %v5073_v52  ;;  %v4443_v22 = vld [vmem:[#allocation7 + $0x68] sm:$0xff] }
 0x1be   :  { %v2582_v27 = vadd.f32 %v2581_v36, %v2541_v5  ;;  %v2629_v3 = vadd.f32 %v2627_v33, %v2623_v56  ;;  %v2633_v48 = vmul.f32 %v4441_v14, %v2631_v9  ;;  %v2268_v4 = vadd.f32 %v2267_v23, %v6194_v45  ;;  %v7581_v5 = vld [vmem:[#allocation45_spill] sm:$0xff]  ;;  %v7583_v45 = vld [vmem:[#allocation60_spill] sm:$0xff] }
 0x1bf   :  { %v2426_v47 = vrot.slane %v6230_v60, %v4976_v32  ;;  %v2652_v38 = vadd.f32 %v2650_v39, %v2646_v41  ;;  %v2656_v59 = vmul.f32 %v4442_v28, %v2655_v7  ;;  %v2283_v30 = vadd.f32 %v2282_v24, %v6197_v54 }
 0x1c0   :  { %v2483_v34 = vrot.slane %v2402_v16, %v5024_v63  ;;  %v2544_v46 = vmul.f32 %v2479_v6, %v5076_v35  ;;  %v2568_v8 = vadd.f32 %v2567_v1, %v2542_v17  ;;  %v1979_v36 = vmul.f32 %v7581_v5, %v6138_v15 }
 0x1c1   :  { %v7582_v9 = vstv %s5909_s11  ;;  %v2254_v60 = vmul.f32 %v6153_v50, %v7583_v45  ;;  %v2417_v56 = vrot.slane %v2403_v11, %v4976_v32  ;;  %v2545_v54 = vmul.f32 %v2479_v6, %v7525_v40  ;;  %s6420_s11 = sld [smem:[#allocation10 + $0x7]] }
 0x1c2   :  { %v1982_v23 = vadd.f32 %v7582_v9, %v6157_v20  ;;  %v2583_v33 = vadd.f32 %v2582_v27, %v2543_v25  ;;  %v2635_v49 = vadd.f32 %v2633_v48, %v2629_v3  ;;  %v2639_v24 = vmul.f32 %v4443_v22, %v2637_v26  ;;  %v4444_v3 = vld [vmem:[#allocation7 + $0x78] sm:$0xff] }
 0x1c3   :  { %v2255_v15 = vmul.f32 %v6153_v50, %v7557_v62  ;;  %v2269_v16 = vadd.f32 %v2268_v4, %v6218_v19  ;;  %v2440_v20 = vrot.slane %v2418_v44, %v4976_v32  ;;  %v2658_v37 = vadd.f32 %v2656_v59, %v2652_v38 }
 0x1c4   :  { %v2284_v39 = vadd.f32 %v2283_v30, %v2253_v21  ;;  %v2487_v17 = vrot.slane %v2426_v47, %v5024_v63  ;;  %v2546_v1 = vmul.f32 %v2483_v34, %v7558_v58  ;;  %v2569_v11 = vadd.f32 %v2568_v8, %v2544_v46 }
 0x1c5   :  { %v7584_v41 = vmov %v7582_v9  ;;  %v6291_v25 = vmax.f32 %v1982_v23, 0.0  ;;  %v2419_v26 = vcombine.high %v2417_v56, %v2417_v56  ;;  %v2433_v27 = vrot.slane %v2417_v56, %v4976_v32  ;;  %v4445_v56 = vld [vmem:[#allocation7 + $0x88] sm:$0xff] }
 0x1c6   :  { %v6289_v6 = vadd.f32 %v7584_v41, %v1979_v36  ;;  %v2547_v50 = vmul.f32 %v2483_v34, %v7530_v2  ;;  %v2584_v19 = vadd.f32 %v2583_v33, %v2545_v54  ;;  %v2641_v44 = vadd.f32 %v2639_v24, %v2635_v49  ;;  %v7595_v9 = vld [vmem:[#allocation48_spill] sm:$0xff] }
 0x1c7   :  { %7586 = vst [vmem:[#allocation26_spill] sm:$0xff] %v6291_v25  ;;  %v2645_v21 = vmul.f32 %v4444_v3, %v2643_v0  ;;  %v2270_v14 = vadd.f32 %v2269_v16, %v2254_v60  ;;  %v2448_v48 = vcombine.high %v2426_v47, %v2426_v47  ;;  %v2450_v4 = vcombine.high %v2440_v20, %v2440_v20  ;;  %v7601_v25 = vld [vmem:[#allocation54_spill] sm:$0xff] }
 0x1c8   :  { %7585 = vst [vmem:[#allocation25_spill] sm:$0xff] %v6289_v6  ;;  %v2669_v38 = vrot.slane %v2658_v37, %v4976_v32  ;;  %v2285_v28 = vadd.f32 %v2284_v39, %v2255_v15  ;;  %v2491_v59 = vrot.slane %v2440_v20, %v5024_v63  ;;  %v2548_v30 = vmul.f32 %v2487_v17, %v7533_v55  ;;  %v7599_v6 = vld [vmem:[#allocation40_spill] sm:$0xff] }
 0x1c9   :  { %v2570_v46 = vadd.f32 %v2569_v11, %v2546_v1  ;;  %v2447_v8 = vrot.slane %v2419_v26, %v4976_v32  ;;  %v2449_v34 = vcombine.high %v2433_v27, %v2433_v27  ;;  %v2549_v36 = vmul.f32 %v2487_v17, %v7561_v13  ;;  %v4446_v26 = vld [vmem:[#allocation7 + $0x98] sm:$0xff] }
 0x1ca   :  { %v2585_v23 = vadd.f32 %v2584_v19, %v2547_v50  ;;  %v2647_v0 = vadd.f32 %v2645_v21, %v2641_v44  ;;  %v2651_v47 = vmul.f32 %v4445_v56, %v2649_v53  ;;  %v2662_v60 = vcombine.high %v2658_v37, %v2658_v37  ;;  %v7587_v37 = vld [vmem:[#allocation29_spill] sm:$0xff] }
 0x1cb   :  { %v2286_v54 = vmul.f32 %v7560_v43, %v2270_v14  ;;  %v2451_v33 = vcombine.high %v2447_v8, %v2447_v8  ;;  %v2495_v49 = vrot.slane %v2448_v48, %v5024_v63  ;;  %v2677_v22 = vcombine.high %v2669_v38, %v2669_v38  ;;  %v7589_v48 = vld [vmem:[#allocation30_spill] sm:$0xff] }
 0x1cc   :  { %v6306_v24 = vmul.f32 %v7581_v5, %v2285_v28  ;;  %v2499_v15 = vrot.slane %v2450_v4, %v5024_v63  ;;  %v2550_v16 = vmul.f32 %v2491_v59, %v7562_v51  ;;  %v2571_v20 = vadd.f32 %v2570_v46, %v2548_v30 }
 0x1cd   :  { %v2503_v39 = vrot.slane %v2433_v27, %v5024_v63  ;;  %v2507_v53 = vrot.slane %v2447_v8, %v5024_v63  ;;  %v2551_v17 = vmul.f32 %v2491_v59, %v7587_v37  ;;  %v2685_v1 = vrot.slane %v2669_v38, %v4976_v32  ;;  %v7590_v38 = vld [vmem:[#allocation31_spill] sm:$0xff]  ;;  %v7591_v59 = vld [vmem:[#allocation32_spill] sm:$0xff] }
 0x1ce   :  { %v2586_v11 = vadd.f32 %v2585_v23, %v2549_v36  ;;  %v2653_v41 = vadd.f32 %v2651_v47, %v2647_v0  ;;  %v2657_v50 = vmul.f32 %v4446_v26, %v2655_v7  ;;  %v2676_v19 = vrot.slane %v2662_v60, %v4976_v32  ;;  %v7592_v7 = vld [vmem:[#allocation33_spill] sm:$0xff]  ;;  %v7593_v36 = vld [vmem:[#allocation34_spill] sm:$0xff] }
 0x1cf   :  { %v7588_v44 = vstv %s6097_s19  ;;  %v2511_v27 = vrot.slane %v2449_v34, %v5024_v63  ;;  %v2515_v21 = vrot.slane %v2451_v33, %v5024_v63  ;;  %v2699_v14 = vrot.slane %v2677_v22, %v4976_v32  ;;  %v7594_v33 = vld [vmem:[#allocation36_spill] sm:$0xff] }
 0x1d0   :  { %v6321_v3 = vadd.f32 %v7588_v44, %v2286_v54  ;;  %v2552_v4 = vmul.f32 %v2495_v49, %v7589_v48  ;;  %v2553_v28 = vmul.f32 %v2495_v49, %v7590_v38  ;;  %v2554_v30 = vmul.f32 %v2499_v15, %v7591_v59 }
 0x1d1   :  { %v2572_v46 = vadd.f32 %v2571_v20, %v2550_v16  ;;  %v2555_v8 = vmul.f32 %v2499_v15, %v7592_v7  ;;  %v2556_v23 = vmul.f32 %v2503_v39, %v7593_v36  ;;  %v2557_v0 = vmul.f32 %v2503_v39, %v7572_v31 }
 0x1d2   :  { %v2707_v34 = vcombine.high %v2685_v1, %v2685_v1  ;;  %v2587_v56 = vadd.f32 %v2586_v11, %v2551_v17  ;;  %v2659_v47 = vadd.f32 %v2657_v50, %v2653_v41  ;;  %v2678_v60 = vcombine.high %v2676_v19, %v2676_v19 }
 0x1d3   :  { %v2709_v54 = vcombine.high %v2699_v14, %v2699_v14  ;;  %v2558_v22 = vmul.f32 %v2507_v53, %v7594_v33  ;;  %v2559_v49 = vmul.f32 %v2507_v53, %v7574_v10  ;;  %v2763_v16 = vrot.slane %v2685_v1, %v5024_v63  ;;  %v7603_v33 = vld [vmem:[#allocation43_spill] sm:$0xff] }
 0x1d4   :  { %v2767_v20 = vrot.slane %v2699_v14, %v5024_v63  ;;  %v6339_v15 = vmul.f32 %v2511_v27, %v7578_v18  ;;  %v6342_v26 = vmul.f32 %v2511_v27, %v7580_v57  ;;  %v6345_v39 = vmul.f32 %v2515_v21, %v7583_v45  ;;  %v7596_v45 = vld [vmem:[#allocation49_spill] sm:$0xff] }
 0x1d5   :  { %v2573_v17 = vadd.f32 %v2572_v46, %v2552_v4  ;;  %v6348_v11 = vmul.f32 %v2515_v21, %v7557_v62  ;;  %v2692_v53 = vrot.slane %v2676_v19, %v4976_v32  ;;  %v2771_v1 = vrot.slane %v2707_v34, %v5024_v63  ;;  %v7597_v46 = vld [vmem:[#allocation50_spill] sm:$0xff]  ;;  %v7598_v21 = vld [vmem:[#allocation51_spill] sm:$0xff] }
 0x1d6   :  { %v7263_v41 = vstv %s6314_s6  ;;  %v2588_v50 = vadd.f32 %v2587_v56, %v2553_v28  ;;  %v2706_v44 = vrot.slane %v2678_v60, %v4976_v32  ;;  %v2718_v27 = vrot.slane %v2659_v47, %v4976_v32 }
 0x1d7   :  { %v2775_v14 = vrot.slane %v2709_v54, %v5024_v63  ;;  %v2840_v57 = vmul.f32 %v2763_v16, %v7595_v9  ;;  %v2841_v4 = vmul.f32 %v2763_v16, %v7596_v45  ;;  %v2842_v10 = vmul.f32 %v2767_v20, %v7597_v46  ;;  %v7600_v54 = vld [vmem:[#allocation53_spill] sm:$0xff] }
 0x1d8   :  { %v2843_v62 = vmul.f32 %v2767_v20, %v7598_v21  ;;  %v2574_v18 = vadd.f32 %v2573_v17, %v2554_v30  ;;  %v2708_v19 = vcombine.high %v2692_v53, %v2692_v53  ;;  %v2912_v34 = vmul.f32 %v7263_v41, %v7599_v6  ;;  %v7602_v20 = vld [vmem:[#allocation55_spill] sm:$0xff] }
 0x1d9   :  { %v2711_v56 = vcombine.high %v2659_v47, %v2659_v47  ;;  %v2779_v60 = vrot.slane %v2692_v53, %v5024_v63  ;;  %v2844_v9 = vmul.f32 %v2771_v1, %v7600_v54  ;;  %v2845_v16 = vmul.f32 %v2771_v1, %v7601_v25 }
 0x1da   :  { %v2589_v45 = vadd.f32 %v2588_v50, %v2555_v8  ;;  %v2710_v46 = vcombine.high %v2706_v44, %v2706_v44  ;;  %v2726_v5 = vcombine.high %v2718_v27, %v2718_v27  ;;  %v2783_v30 = vrot.slane %v2706_v44, %v5024_v63 }
 0x1db   :  { %v2846_v17 = vmul.f32 %v2775_v14, %v7602_v20  ;;  %v2847_v41 = vmul.f32 %v2775_v14, %v7520_v29  ;;  %v2872_v28 = vadd.f32 %v2842_v10, %v2840_v57  ;;  %v2887_v21 = vadd.f32 %v2843_v62, %v2841_v4 }
 0x1dc   :  { %v2575_v6 = vadd.f32 %v2574_v18, %v2556_v23  ;;  %v2734_v47 = vrot.slane %v2718_v27, %v4976_v32  ;;  %v2787_v53 = vrot.slane %v2708_v19, %v5024_v63  ;;  %v7604_v54 = vstv %s6329_s28 }
 0x1dd   :  { %v2916_v31 = vmul.f32 %v7604_v54, %v7603_v33  ;;  %v2848_v8 = vmul.f32 %v2779_v60, %v7521_v12  ;;  %v2849_v1 = vmul.f32 %v2779_v60, %v7522_v61  ;;  %v2873_v50 = vadd.f32 %v2872_v28, %v2844_v9 }
 0x1de   :  { %v2888_v44 = vadd.f32 %v2887_v21, %v2845_v16  ;;  %v2590_v14 = vadd.f32 %v2589_v45, %v2557_v0  ;;  %v2725_v62 = vrot.slane %v2711_v56, %v4976_v32  ;;  %v2748_v10 = vrot.slane %v2726_v5, %v4976_v32 }
 0x1df   :  { %v2791_v18 = vrot.slane %v2710_v46, %v5024_v63  ;;  %v2850_v57 = vmul.f32 %v2783_v30, %v5061_v42  ;;  %v2851_v23 = vmul.f32 %v2783_v30, %v5073_v52  ;;  %v2874_v27 = vadd.f32 %v2873_v50, %v2846_v17 }
 0x1e0   :  { %v2889_v4 = vadd.f32 %v2888_v44, %v2847_v41  ;;  %v2576_v19 = vadd.f32 %v2575_v6, %v2558_v22  ;;  %v2756_v54 = vcombine.high %v2734_v47, %v2734_v47  ;;  %v2795_v12 = vrot.slane %v2734_v47, %v5024_v63 }
 0x1e1   :  { %v2921_v60 = vstv %s6364_s29  ;;  %v2852_v45 = vmul.f32 %v2787_v53, %v5076_v35  ;;  %v2853_v9 = vmul.f32 %v2787_v53, %v7525_v40  ;;  %v2875_v0 = vadd.f32 %v2874_v27, %v2848_v8  ;;  %s6605_s29 = sld [smem:[#allocation12 + $0x183]] }
 0x1e2   :  { %v2890_v5 = vadd.f32 %v2889_v4, %v2849_v1  ;;  %v2591_v21 = vadd.f32 %v2590_v14, %v2559_v49  ;;  %v2727_v46 = vcombine.high %v2725_v62, %v2725_v62  ;;  %v2758_v28 = vcombine.high %v2748_v10, %v2748_v10 }
 0x1e3   :  { %v2799_v56 = vrot.slane %v2748_v10, %v5024_v63  ;;  %v2854_v16 = vmul.f32 %v2791_v18, %v7558_v58  ;;  %v2855_v6 = vmul.f32 %v2791_v18, %v7530_v2  ;;  %v2876_v22 = vadd.f32 %v2875_v0, %v2850_v57 }
 0x1e4   :  { %v2891_v41 = vadd.f32 %v2890_v5, %v2851_v23  ;;  %v2577_v30 = vadd.f32 %v2576_v19, %v6339_v15  ;;  %v2741_v17 = vrot.slane %v2725_v62, %v4976_v32  ;;  %v2803_v47 = vrot.slane %v2756_v54, %v5024_v63  ;;  %v7605_v19 = vld [vmem:[#allocation64_spill] sm:$0xff] }
 0x1e5   :  { %v7266_v53 = vstv %s6377_s30  ;;  %v2856_v8 = vmul.f32 %v2795_v12, %v7533_v55  ;;  %v2857_v49 = vmul.f32 %v2795_v12, %v7561_v13  ;;  %v2877_v1 = vadd.f32 %v2876_v22, %v2852_v45 }
 0x1e6   :  { %v2892_v50 = vadd.f32 %v2891_v41, %v2853_v9  ;;  %v2592_v44 = vadd.f32 %v2591_v21, %v6342_v26  ;;  %v2755_v14 = vrot.slane %v2727_v46, %v4976_v32  ;;  %v2807_v15 = vrot.slane %v2758_v28, %v5024_v63 }
 0x1e7   :  { %v2918_v62 = vadd.f32 %v2916_v31, %v2912_v34  ;;  %v2858_v10 = vmul.f32 %v2799_v56, %v7562_v51  ;;  %v2859_v18 = vmul.f32 %v2799_v56, %v7587_v37  ;;  %v2878_v57 = vadd.f32 %v2877_v1, %v2854_v16 }
 0x1e8   :  { %v2893_v23 = vadd.f32 %v2892_v50, %v2855_v6  ;;  %v2578_v12 = vadd.f32 %v2577_v30, %v6345_v39  ;;  %v2757_v27 = vcombine.high %v2741_v17, %v2741_v17  ;;  %v2811_v4 = vrot.slane %v2741_v17, %v5024_v63  ;;  %v7609_v50 = vld [vmem:[#allocation41_spill] sm:$0xff] }
 0x1e9   :  { %v2922_v26 = vmul.f32 %v2921_v60, %v7605_v19  ;;  %v2860_v54 = vmul.f32 %v2803_v47, %v7589_v48  ;;  %v2861_v45 = vmul.f32 %v2803_v47, %v7590_v38  ;;  %v2879_v31 = vadd.f32 %v2878_v57, %v2856_v8 }
 0x1ea   :  { %v2894_v34 = vadd.f32 %v2893_v23, %v2857_v49  ;;  %v7606_v9 = vstv %s6097_s19  ;;  %v2593_v39 = vadd.f32 %v2592_v44, %v6348_v11  ;;  %v2759_v5 = vcombine.high %v2755_v14, %v2755_v14  ;;  %v7607_v11 = vld [vmem:[#allocation63_spill] sm:$0xff]  ;;  %v7614_v23 = vld [vmem:[#allocation36_spill] sm:$0xff]  ;;  %s6506_s19 = sld [smem:[#allocation12 + $0x201]] }
 0x1eb   :  { %v2291_v0 = vadd.f32 %v7606_v9, %v6306_v24  ;;  %v2815_v21 = vrot.slane %v2755_v14, %v5024_v63  ;;  %v2862_v46 = vmul.f32 %v2807_v15, %v7591_v59  ;;  %v2863_v28 = vmul.f32 %v2807_v15, %v7592_v7  ;;  %v7611_v15 = vld [vmem:[#allocation62_spill] sm:$0xff] }
 0x1ec   :  { %v2880_v56 = vadd.f32 %v2879_v31, %v2858_v10  ;;  %v2895_v16 = vadd.f32 %v2894_v34, %v2859_v18  ;;  %v2594_v6 = vmul.f32 %v7560_v43, %v2578_v12  ;;  %v2819_v24 = vrot.slane %v2757_v27, %v5024_v63  ;;  %v7613_v18 = vld [vmem:[#allocation35_spill] sm:$0xff]  ;;  %v7617_v9 = vld [vmem:[#allocation26_spill] sm:$0xff] }
 0x1ed   :  { %v2924_v22 = vadd.f32 %v2922_v26, %v2918_v62  ;;  %v2928_v41 = vmul.f32 %v7266_v53, %v7607_v11  ;;  %v2864_v30 = vmul.f32 %v2811_v4, %v7593_v36  ;;  %v2933_v8 = vstv %s6399_s9  ;;  %s6618_s9 = sld [smem:[#allocation12 + $0x283]] }
 0x1ee   :  { %v2881_v17 = vadd.f32 %v2880_v56, %v2860_v54  ;;  %v2896_v47 = vadd.f32 %v2895_v16, %v2861_v45  ;;  %v6438_v49 = vmax.f32 %v6321_v3, 0.0  ;;  %v2823_v1 = vrot.slane %v2759_v5, %v5024_v63  ;;  %v7615_v3 = vld [vmem:[#allocation45_spill] sm:$0xff]  ;;  %v7620_v16 = vld [vmem:[#allocation38_spill] sm:$0xff] }
 0x1ef   :  { %v7610_v44 = vstv %s6314_s6  ;;  %v7612_v62 = vstv %s6329_s28  ;;  %v2865_v57 = vmul.f32 %v2811_v4, %v7613_v18  ;;  %v2866_v12 = vmul.f32 %v2815_v21, %v7614_v23  ;;  %v7618_v56 = vld [vmem:[#allocation25_spill] sm:$0xff]  ;;  %s6580_s6 = sld [smem:[#allocation13 + $0x2]]  ;;  %s6584_s28 = sld [smem:[#allocation12 + $0x103]] }
 0x1f0   :  { %7608 = vst [vmem:[#allocation42_spill] sm:$0xff] %v6438_v49  ;;  %v2913_v14 = vmul.f32 %v7610_v44, %v7609_v50  ;;  %v2917_v10 = vmul.f32 %v7612_v62, %v7611_v15  ;;  %v2882_v27 = vadd.f32 %v2881_v17, %v2862_v46  ;;  %v2897_v26 = vadd.f32 %v2896_v47, %v2863_v28  ;;  %v7623_v47 = vld [vmem:[#allocation37_spill] sm:$0xff] }
 0x1f1   :  { %v2595_v54 = vmul.f32 %v7615_v3, %v2593_v39  ;;  %v7616_v45 = vstv %s6278_s27  ;;  %v2930_v34 = vadd.f32 %v2928_v41, %v2924_v22  ;;  %v2934_v5 = vmul.f32 %v2933_v8, %v7617_v9  ;;  %v7622_v22 = vld [vmem:[#allocation59_spill] sm:$0xff] }
 0x1f2   :  { %v2598_v31 = vadd.f32 %v7616_v45, %v2594_v6  ;;  %v6458_v4 = vmax.f32 %v7618_v56, 0.0  ;;  %v2868_v44 = vmul.f32 %v2819_v24, %v7620_v16  ;;  %v2883_v46 = vadd.f32 %v2882_v27, %v2864_v30  ;;  %v7624_v45 = vld [vmem:[#allocation60_spill] sm:$0xff] }
 0x1f3   :  { %v6464_v17 = vmax.f32 %v2291_v0, 0.0  ;;  %v2919_v6 = vadd.f32 %v2917_v10, %v2913_v14  ;;  %v2923_v41 = vmul.f32 %v2921_v60, %v7622_v22  ;;  %v2867_v62 = vmul.f32 %v2815_v21, %v7623_v47 }
 0x1f4   :  { %7619 = vst [vmem:[#allocation46_spill] sm:$0xff] %v6458_v4  ;;  %v2870_v56 = vmul.f32 %v2823_v1, %v7624_v45  ;;  %v2884_v53 = vadd.f32 %v2883_v46, %v2866_v12  ;;  %v2898_v30 = vadd.f32 %v2897_v26, %v2865_v57  ;;  %v7625_v27 = vstv %s6278_s27  ;;  %v7628_v57 = vld [vmem:[#allocation39_spill] sm:$0xff]  ;;  %s6578_s27 = sld [smem:[#allocation12 + $0x382]] }
 0x1f5   :  { %7621 = vst [vmem:[#allocation52_spill] sm:$0xff] %v6464_v17  ;;  %v2599_v28 = vadd.f32 %v7625_v27, %v2595_v54  ;;  %v6476_v0 = vmax.f32 %v2598_v31, 0.0  ;;  %v2936_v39 = vadd.f32 %v2934_v5, %v2930_v34  ;;  %v7627_v14 = vstv %s6413_s10  ;;  %v7629_v54 = vld [vmem:[#allocation61_spill] sm:$0xff]  ;;  %v7630_v34 = vld [vmem:[#allocation23_spill] sm:$0xff] }
 0x1f6   :  { %v2940_v10 = vmul.f32 %v7627_v14, %v6438_v49  ;;  %v2885_v60 = vadd.f32 %v2884_v53, %v2868_v44  ;;  %v7267_v21 = vstv %s6429_s12  ;;  %v3207_v12 = vstv %s6433_s13  ;;  %s7017_s13 = sld [smem:[#allocation15 + $0x1]] }
 0x1f7   :  { %7626 = vst [vmem:[#allocation47_spill] sm:$0xff] %v6476_v0  ;;  %v3211_v46 = vstv %s6435_s3  ;;  %v2869_v26 = vmul.f32 %v2819_v24, %v7628_v57  ;;  %v2871_v31 = vmul.f32 %v2823_v1, %v7629_v54  ;;  %v2925_v27 = vadd.f32 %v2923_v41, %v2919_v6  ;;  %v7632_v24 = vld [vmem:[#allocation40_spill] sm:$0xff]  ;;  %s7036_s3 = sld [smem:[#allocation15 + $0x2]] }
 0x1f8   :  { %v7631_v5 = vstv %s6377_s30  ;;  %v2886_v14 = vadd.f32 %v2885_v60, %v2870_v56  ;;  %v2899_v16 = vadd.f32 %v2898_v30, %v2867_v62  ;;  %v3503_v47 = vstv %s6449_s0  ;;  %s6607_s30 = sld [smem:[#allocation12 + $0x203]] }
 0x1f9   :  { %v2929_v45 = vmul.f32 %v7631_v5, %v7630_v34  ;;  %v3507_v53 = vstv %s6451_s5  ;;  %v2942_v44 = vadd.f32 %v2940_v10, %v2936_v39  ;;  %v2946_v23 = vmul.f32 %v7267_v21, %v6476_v0  ;;  %s7044_s0 = sld [smem:[#allocation13 + $0x3]] }
 0x1fa   :  { %v3208_v57 = vmul.f32 %v3207_v12, %v7632_v24  ;;  %v3212_v1 = vmul.f32 %v3211_v46, %v7603_v33  ;;  %v2902_v6 = vmul.f32 %v7560_v43, %v2886_v14  ;;  %v3209_v41 = vmul.f32 %v3207_v12, %v7609_v50  ;;  %s4275_s5 = sld [smem:[#allocation15 + $0x3]] }
 0x1fb   :  { %v3213_v56 = vmul.f32 %v3211_v46, %v7611_v15  ;;  %v3217_v62 = vstv %s6462_s14  ;;  %v2935_v39 = vmul.f32 %v2933_v8, %v6458_v4  ;;  %v3504_v30 = vmul.f32 %v3503_v47, %v7632_v24 }
 0x1fc   :  { %v3505_v10 = vmul.f32 %v3503_v47, %v7609_v50  ;;  %v3508_v60 = vmul.f32 %v3507_v53, %v7603_v33  ;;  %v2900_v5 = vadd.f32 %v2899_v16, %v2869_v26  ;;  %v7633_v21 = vstv %s6420_s11 }
 0x1fd   :  { %v2906_v54 = vadd.f32 %v7633_v21, %v2902_v6  ;;  %v3509_v12 = vmul.f32 %v3507_v53, %v7611_v15  ;;  %v3513_v14 = vstv %s6472_s15  ;;  %v2948_v46 = vadd.f32 %v2946_v23, %v2942_v44 }
 0x1fe   :  { %v2951_v43 = vstv %s6481_s16  ;;  %v3214_v8 = vadd.f32 %v3212_v1, %v3208_v57  ;;  %v3218_v18 = vmul.f32 %v3217_v62, %v7605_v19  ;;  %v3215_v47 = vadd.f32 %v3213_v56, %v3209_v41  ;;  %s4597_s16 = smov [#allocation16]  }
 0x1ff   :  { %v6520_v36 = vmax.f32 %v2906_v54, 0.0  ;;  %v3219_v7 = vmul.f32 %v3217_v62, %v7622_v22  ;;  %v3223_v16 = vstv %s6486_s17  ;;  %v2931_v21 = vadd.f32 %v2929_v45, %v2925_v27  ;;  %s4140_s17 = sshll.u32 %s4597_s16, 4  ;;  %s4141_s17 = int_to_ptr.vmem [resolvable:$true] %s4140_s17 }
 0x200   :  { %v3510_v26 = vadd.f32 %v3508_v60, %v3504_v30  ;;  %v3514_v53 = vmul.f32 %v3513_v14, %v7605_v19  ;;  %v3519_v6 = vstv %s6493_s18  ;;  %v2901_v23 = vadd.f32 %v2900_v5, %v2871_v31  ;;  %s4551_s18 = scalar_lea.vmem %s4141_s17, 16  ;;  %p4556_p0 = scmp.lt.s32.totalorder %s4141_s17, %s4141_s17 }
 0x201   :  { %7634 = vst [vmem:[#allocation69_spill] sm:$0xff] %v6520_v36  ;;  %v2952_v57 = vmul.f32 %v2951_v43, %v6520_v36  ;;  %v3511_v44 = vadd.f32 %v3509_v12, %v3505_v10  ;;  %v3515_v54 = vmul.f32 %v3513_v14, %v7622_v22  ;;  %v6534_v1 = vmax.f32 %v2599_v28, 0.0  ;;  %p4552_p13 = scmp.ne.s32.totalorder %s4141_s17, %s4551_s18 }
 0x202   :  { %v3220_v41 = vadd.f32 %v3218_v18, %v3214_v8  ;;  %v3224_v45 = vmul.f32 %v3223_v16, %v7607_v11  ;;  %v3221_v56 = vadd.f32 %v3219_v7, %v3215_v47  ;;  %v3225_v62 = vmul.f32 %v3223_v16, %v7630_v34 }
 0x203   :  { %7635 = vst [vmem:[#allocation58_spill] sm:$0xff] %v6534_v1  ;;  %v6537_v27 = vadd.f32 %v2952_v57, %v2948_v46  ;;  %v3229_v31 = vstv %s6506_s19  ;;  %v2937_v30 = vadd.f32 %v2935_v39, %v2931_v21  ;;  %v7636_v10 = vstv %s6413_s10  ;;  %s6621_s10 = sld [smem:[#allocation12 + $0x303]]  ;;  %s4555_s19 = scalar_lea.vmem %s4141_s17, 32 }
 0x204   :  { %v2941_v60 = vmul.f32 %v7636_v10, %v6464_v17  ;;  %v3516_v28 = vadd.f32 %v3514_v53, %v3510_v26  ;;  %v3520_v18 = vmul.f32 %v3519_v6, %v7607_v11  ;;  %v2903_v5 = vmul.f32 %v7615_v3, %v2901_v23  ;;  %p4557_p1 = scmp.lt.s32.totalorder %s4555_s19, %s4551_s18 }
 0x205   :  { %v3517_v12 = vadd.f32 %v3515_v54, %v3511_v44  ;;  %v3521_v7 = vmul.f32 %v3519_v6, %v7630_v34  ;;  %v3525_v14 = vstv %s6516_s20  ;;  %v2965_v39 = vrot.slane %v6537_v27, %v4976_v32 }
 0x206   :  { %v3226_v46 = vadd.f32 %v3224_v45, %v3220_v41  ;;  %v3230_v8 = vmul.f32 %v3229_v31, %v7617_v9  ;;  %v3227_v47 = vadd.f32 %v3225_v62, %v3221_v56  ;;  %v3231_v16 = vmul.f32 %v3229_v31, %v6458_v4  ;;  %p4558_p2 = por %p4557_p1, %p4556_p0 }
 0x207   :  { %v3235_v21 = vstv %s6524_s21  ;;  %v2943_v26 = vadd.f32 %v2941_v60, %v2937_v30  ;;  %v7637_v53 = vstv %s6429_s12  ;;  %v3522_v23 = vadd.f32 %v3520_v18, %v3516_v28  ;;  %s7015_s12 = sld [smem:[#allocation15]] }
 0x208   :  { %v2947_v6 = vmul.f32 %v7637_v53, %v6534_v1  ;;  %v3526_v57 = vmul.f32 %v3525_v14, %v7617_v9  ;;  %v7638_v44 = vstv %s6420_s11  ;;  %v3523_v41 = vadd.f32 %v3521_v7, %v3517_v12  ;;  %s6845_s11 = sld [smem:[#allocation12 + $0x383]]  ;;  %p4559_p3 = pnand %p4558_p2, %p4552_p13 }
 0x209   :  { %v2907_v54 = vadd.f32 %v7638_v44, %v2903_v5  ;;  %v3527_v45 = vmul.f32 %v3525_v14, %v6458_v4  ;;  %v3531_v56 = vstv %s6532_s22  ;;  %v2973_v62 = vcombine.high %v2965_v39, %v2965_v39  ;;  %v7644_v4 = vld [vmem:[#allocation53_spill] sm:$0xff] }
 0x20a   :  { %v3232_v31 = vadd.f32 %v3230_v8, %v3226_v46  ;;  %v3236_v30 = vmul.f32 %v3235_v21, %v6438_v49  ;;  %v3233_v10 = vadd.f32 %v3231_v16, %v3227_v47  ;;  %v3237_v60 = vmul.f32 %v3235_v21, %v6464_v17 }
 0x20b   :  { %v3241_v28 = vstv %s6541_s23  ;;  %v2949_v18 = vadd.f32 %v2947_v6, %v2943_v26  ;;  %v3528_v12 = vadd.f32 %v3526_v57, %v3522_v23  ;;  %v3532_v7 = vmul.f32 %v3531_v56, %v6438_v49 }
 0x20c   :  { %v6586_v14 = vmax.f32 %v2907_v54, 0.0  ;;  %v3529_v46 = vadd.f32 %v3527_v45, %v3523_v41  ;;  %v3533_v8 = vmul.f32 %v3531_v56, %v6464_v17  ;;  %v3537_v47 = vstv %s6552_s2 }
 0x20d   :  { %v2981_v16 = vrot.slane %v2965_v39, %v4976_v32  ;;  %v2995_v21 = vrot.slane %v2973_v62, %v4976_v32  ;;  %v3238_v26 = vadd.f32 %v3236_v30, %v3232_v31  ;;  %v3242_v53 = vmul.f32 %v3241_v28, %v6476_v0 }
 0x20e   :  { %7639 = vst [vmem:[#allocation24_spill] sm:$0xff] %v6586_v14  ;;  %v3239_v6 = vadd.f32 %v3237_v60, %v3233_v10  ;;  %v3243_v23 = vmul.f32 %v3241_v28, %v6534_v1  ;;  %v3247_v57 = vstv %s6559_s4  ;;  %v3534_v54 = vadd.f32 %v3532_v7, %v3528_v12 }
 0x20f   :  { %v3538_v41 = vmul.f32 %v3537_v47, %v6476_v0  ;;  %v3539_v45 = vmul.f32 %v3537_v47, %v6534_v1  ;;  %v3799_v56 = vstv %s6567_s25  ;;  %v2953_v39 = vmul.f32 %v2951_v43, %v6586_v14 }
 0x210   :  { %v2958_v62 = vcombine.high %v6537_v27, %v6537_v27  ;;  %v3535_v31 = vadd.f32 %v3533_v8, %v3529_v46  ;;  %v3803_v30 = vstv %s6573_s26  ;;  %v3003_v10 = vcombine.high %v2981_v16, %v2981_v16 }
 0x211   :  { %v3059_v60 = vrot.slane %v2981_v16, %v5024_v63  ;;  %v3063_v28 = vrot.slane %v2995_v21, %v5024_v63  ;;  %v3244_v12 = vadd.f32 %v3242_v53, %v3238_v26  ;;  %v3245_v7 = vadd.f32 %v3243_v23, %v3239_v6 }
 0x212   :  { %v3543_v47 = vstv %s6578_s27  ;;  %v3800_v43 = vmul.f32 %v3799_v56, %v7632_v24  ;;  %v3801_v27 = vmul.f32 %v3799_v56, %v7609_v50  ;;  %v3804_v46 = vmul.f32 %v3803_v30, %v7603_v33  ;;  %v7640_v50 = vld [vmem:[#allocation48_spill] sm:$0xff]  ;;  %v7641_v33 = vld [vmem:[#allocation50_spill] sm:$0xff]  ;;  %v7643_v56 = vld [vmem:[#allocation51_spill] sm:$0xff] }
 0x213   :  { %v3805_v8 = vmul.f32 %v3803_v30, %v7611_v15  ;;  %v3809_v5 = vstv %s6584_s28  ;;  %v2955_v1 = vadd.f32 %v2953_v39, %v2949_v18  ;;  %v2972_v16 = vrot.slane %v2958_v62, %v4976_v32  ;;  %v7642_v15 = vld [vmem:[#allocation49_spill] sm:$0xff] }
 0x214   :  { %v3540_v17 = vadd.f32 %v3538_v41, %v3534_v54  ;;  %v3541_v3 = vadd.f32 %v3539_v45, %v3535_v31  ;;  %v3005_v26 = vcombine.high %v2995_v21, %v2995_v21  ;;  %v3067_v24 = vrot.slane %v3003_v10, %v5024_v63 }
 0x215   :  { %v3136_v53 = vmul.f32 %v3059_v60, %v7640_v50  ;;  %v3138_v6 = vmul.f32 %v3063_v28, %v7641_v33  ;;  %v3137_v23 = vmul.f32 %v3059_v60, %v7642_v15  ;;  %v3139_v30 = vmul.f32 %v3063_v28, %v7643_v56 }
 0x216   :  { %v3810_v18 = vmul.f32 %v3809_v5, %v7605_v19  ;;  %v3811_v54 = vmul.f32 %v3809_v5, %v7622_v22  ;;  %v3007_v41 = vcombine.high %v2955_v1, %v2955_v1  ;;  %v3248_v45 = vmul.f32 %v3247_v57, %v6520_v36 }
 0x217   :  { %v3806_v39 = vadd.f32 %v3804_v46, %v3800_v43  ;;  %v3807_v62 = vadd.f32 %v3805_v8, %v3801_v27  ;;  %v2974_v21 = vcombine.high %v2972_v16, %v2972_v16  ;;  %v3249_v31 = vmul.f32 %v3247_v57, %v6586_v14 }
 0x218   :  { %v3815_v10 = vstv %s6605_s29  ;;  %v2988_v60 = vrot.slane %v2972_v16, %v4976_v32  ;;  %v3071_v28 = vrot.slane %v3005_v26, %v5024_v63  ;;  %v3140_v19 = vmul.f32 %v3067_v24, %v7644_v4 }
 0x219   :  { %v3168_v0 = vadd.f32 %v3138_v6, %v3136_v53  ;;  %v3014_v22 = vrot.slane %v2955_v1, %v4976_v32  ;;  %v3141_v5 = vmul.f32 %v3067_v24, %v7601_v25  ;;  %v3183_v43 = vadd.f32 %v3139_v30, %v3137_v23 }
 0x21a   :  { %v3544_v27 = vmul.f32 %v3543_v47, %v6520_v36  ;;  %v3021_v46 = vrot.slane %v3007_v41, %v4976_v32  ;;  %v3250_v57 = vadd.f32 %v3248_v45, %v3244_v12  ;;  %v3545_v8 = vmul.f32 %v3543_v47, %v6586_v14 }
 0x21b   :  { %v6643_v49 = vadd.f32 %v3249_v31, %v3245_v7  ;;  %v6645_v16 = vadd.f32 %v3810_v18, %v3806_v39  ;;  %v6647_v26 = vadd.f32 %v3811_v54, %v3807_v62  ;;  %v3002_v1 = vrot.slane %v2974_v21, %v4976_v32 }
 0x21c   :  { %v3075_v24 = vrot.slane %v2988_v60, %v5024_v63  ;;  %v3142_v6 = vmul.f32 %v3071_v28, %v7602_v20  ;;  %v3169_v23 = vadd.f32 %v3168_v0, %v3140_v19  ;;  %v3022_v30 = vcombine.high %v3014_v22, %v3014_v22 }
 0x21d   :  { %7645 = vst [vmem:[#allocation65_spill] sm:$0xff] %v6645_v16  ;;  %7646 = vst [vmem:[#allocation27_spill] sm:$0xff] %v6647_v26  ;;  %v3143_v12 = vmul.f32 %v3071_v28, %v7520_v29  ;;  %v3184_v41 = vadd.f32 %v3183_v43, %v3141_v5  ;;  %v6654_v47 = vadd.f32 %v3544_v27, %v3540_v17  ;;  %v7650_v28 = vld [vmem:[#allocation57_spill] sm:$0xff] }
 0x21e   :  { %v3023_v7 = vcombine.high %v3021_v46, %v3021_v46  ;;  %v3261_v18 = vrot.slane %v3250_v57, %v4976_v32  ;;  %v6657_v45 = vadd.f32 %v3545_v8, %v3541_v3  ;;  %v6660_v54 = vmul.f32 %v3815_v10, %v7607_v11 }
 0x21f   :  { %v3030_v39 = vrot.slane %v3014_v22, %v4976_v32  ;;  %v3037_v62 = vrot.slane %v3021_v46, %v4976_v32  ;;  %v3254_v21 = vcombine.high %v3250_v57, %v3250_v57  ;;  %v6665_v0 = vmul.f32 %v3815_v10, %v7630_v34 }
 0x220   :  { %7647 = vst [vmem:[#allocation66_spill] sm:$0xff] %v6657_v45  ;;  %7648 = vst [vmem:[#allocation67_spill] sm:$0xff] %v6660_v54  ;;  %v3004_v31 = vcombine.high %v2988_v60, %v2988_v60  ;;  %v3079_v17 = vrot.slane %v3002_v1, %v5024_v63  ;;  %v3144_v19 = vmul.f32 %v3075_v24, %v7650_v28  ;;  %v7652_v45 = vld [vmem:[#allocation34_spill] sm:$0xff] }
 0x221   :  { %7649 = vst [vmem:[#allocation68_spill] sm:$0xff] %v6665_v0  ;;  %v3170_v5 = vadd.f32 %v3169_v23, %v3142_v6  ;;  %v3006_v43 = vcombine.high %v3002_v1, %v3002_v1  ;;  %v3044_v3 = vrot.slane %v3022_v30, %v4976_v32  ;;  %v3145_v11 = vmul.f32 %v3075_v24, %v7522_v61 }
 0x222   :  { %v3185_v27 = vadd.f32 %v3184_v41, %v3143_v12  ;;  %v3051_v22 = vrot.slane %v3023_v7, %v4976_v32  ;;  %v3052_v8 = vcombine.high %v3030_v39, %v3030_v39  ;;  %v3269_v46 = vcombine.high %v3261_v18, %v3261_v18 }
 0x223   :  { %v3303_v34 = vcombine.high %v6643_v49, %v6643_v49  ;;  %v3053_v10 = vcombine.high %v3037_v62, %v3037_v62  ;;  %v3054_v60 = vcombine.high %v3044_v3, %v3044_v3  ;;  %v3268_v57 = vrot.slane %v3254_v21, %v4976_v32 }
 0x224   :  { %v6677_v6 = vrot.slane %v6643_v49, %v4976_v32  ;;  %v3055_v1 = vcombine.high %v3051_v22, %v3051_v22  ;;  %v3083_v23 = vrot.slane %v3004_v31, %v5024_v63  ;;  %v3146_v24 = vmul.f32 %v3079_v17, %v5061_v42 }
 0x225   :  { %v3171_v30 = vadd.f32 %v3170_v5, %v3144_v19  ;;  %v3087_v12 = vrot.slane %v3006_v43, %v5024_v63  ;;  %v3147_v41 = vmul.f32 %v3079_v17, %v5073_v52  ;;  %v3186_v7 = vadd.f32 %v3185_v27, %v3145_v11 }
 0x226   :  { %v3277_v53 = vrot.slane %v3261_v18, %v4976_v32  ;;  %v3091_v44 = vrot.slane %v3030_v39, %v5024_v63  ;;  %v3095_v21 = vrot.slane %v3044_v3, %v5024_v63  ;;  %v3099_v49 = vrot.slane %v3052_v8, %v5024_v63 }
 0x227   :  { %v3291_v14 = vrot.slane %v3269_v46, %v4976_v32  ;;  %v3103_v31 = vrot.slane %v3054_v60, %v5024_v63  ;;  %v3107_v0 = vrot.slane %v3037_v62, %v5024_v63  ;;  %v3111_v19 = vrot.slane %v3051_v22, %v5024_v63 }
 0x228   :  { %v3115_v5 = vrot.slane %v3053_v10, %v5024_v63  ;;  %v3119_v17 = vrot.slane %v3055_v1, %v5024_v63  ;;  %v3148_v18 = vmul.f32 %v3083_v23, %v5076_v35  ;;  %v3149_v39 = vmul.f32 %v3083_v23, %v7525_v40 }
 0x229   :  { %v3172_v43 = vadd.f32 %v3171_v30, %v3146_v24  ;;  %v3150_v3 = vmul.f32 %v3087_v12, %v7558_v58  ;;  %v3151_v11 = vmul.f32 %v3087_v12, %v7530_v2  ;;  %v3187_v27 = vadd.f32 %v3186_v7, %v3147_v41  ;;  %v7651_v12 = vld [vmem:[#allocation33_spill] sm:$0xff] }
 0x22a   :  { %v3299_v8 = vcombine.high %v3277_v53, %v3277_v53  ;;  %v3152_v46 = vmul.f32 %v3091_v44, %v7533_v55  ;;  %v3153_v62 = vmul.f32 %v3091_v44, %v7561_v13  ;;  %v3355_v22 = vrot.slane %v3277_v53, %v5024_v63 }
 0x22b   :  { %v3359_v10 = vrot.slane %v3291_v14, %v5024_v63  ;;  %v3154_v60 = vmul.f32 %v3095_v21, %v7562_v51  ;;  %v3155_v1 = vmul.f32 %v3095_v21, %v7587_v37  ;;  %v6704_v23 = vmul.f32 %v3099_v49, %v7589_v48 }
 0x22c   :  { %v6707_v24 = vmul.f32 %v3099_v49, %v7590_v38  ;;  %v6710_v30 = vmul.f32 %v3103_v31, %v7591_v59  ;;  %v6713_v41 = vmul.f32 %v3103_v31, %v7651_v12  ;;  %v3173_v44 = vadd.f32 %v3172_v43, %v3148_v18  ;;  %v7653_v31 = vld [vmem:[#allocation35_spill] sm:$0xff] }
 0x22d   :  { %v3270_v53 = vcombine.high %v3268_v57, %v3268_v57  ;;  %v3188_v7 = vadd.f32 %v3187_v27, %v3149_v39  ;;  %v3301_v26 = vcombine.high %v3291_v14, %v3291_v14  ;;  %v3317_v36 = vrot.slane %v3303_v34, %v4976_v32  ;;  %v7654_v39 = vld [vmem:[#allocation36_spill] sm:$0xff]  ;;  %v7656_v34 = vld [vmem:[#allocation37_spill] sm:$0xff]  ;;  %v7658_v27 = vld [vmem:[#allocation38_spill] sm:$0xff] }
 0x22e   :  { %v3363_v21 = vrot.slane %v3299_v8, %v5024_v63  ;;  %v3432_v9 = vmul.f32 %v3355_v22, %v7640_v50  ;;  %v3433_v54 = vmul.f32 %v3355_v22, %v7642_v15  ;;  %v3434_v49 = vmul.f32 %v3359_v10, %v7641_v33 }
 0x22f   :  { %v3435_v16 = vmul.f32 %v3359_v10, %v7643_v56  ;;  %v6722_v59 = vmul.f32 %v3107_v0, %v7652_v45  ;;  %v6725_v18 = vmul.f32 %v3107_v0, %v7653_v31  ;;  %v6728_v14 = vmul.f32 %v3111_v19, %v7654_v39 }
 0x230   :  { %v6731_v43 = vmul.f32 %v3111_v19, %v7656_v34  ;;  %v6734_v8 = vmul.f32 %v3115_v5, %v7658_v27  ;;  %v3174_v22 = vadd.f32 %v3173_v44, %v3150_v3  ;;  %v3284_v33 = vrot.slane %v3268_v57, %v4976_v32  ;;  %v7660_v27 = vld [vmem:[#allocation39_spill] sm:$0xff]  ;;  %v7661_v3 = vld [vmem:[#allocation60_spill] sm:$0xff]  ;;  %v7662_v44 = vld [vmem:[#allocation61_spill] sm:$0xff] }
 0x231   :  { %7655 = vst [vmem:[#allocation43_spill] sm:$0xff] %v6728_v14  ;;  %v3318_v10 = vcombine.high %v6677_v6, %v6677_v6  ;;  %v3189_v56 = vadd.f32 %v3188_v7, %v3151_v11  ;;  %v3298_v15 = vrot.slane %v3270_v53, %v4976_v32  ;;  %v3319_v0 = vcombine.high %v3317_v36, %v3317_v36 }
 0x232   :  { %7657 = vst [vmem:[#allocation64_spill] sm:$0xff] %v6731_v43  ;;  %7659 = vst [vmem:[#allocation63_spill] sm:$0xff] %v6734_v8  ;;  %v3367_v50 = vrot.slane %v3301_v26, %v5024_v63  ;;  %v3436_v14 = vmul.f32 %v3363_v21, %v7644_v4  ;;  %v3437_v19 = vmul.f32 %v3363_v21, %v7601_v25 }
 0x233   :  { %v3464_v43 = vadd.f32 %v3434_v49, %v3432_v9  ;;  %v3479_v34 = vadd.f32 %v3435_v16, %v3433_v54  ;;  %v6744_v8 = vmul.f32 %v3115_v5, %v7660_v27  ;;  %v6747_v57 = vmul.f32 %v3119_v17, %v7661_v3 }
 0x234   :  { %v6750_v39 = vmul.f32 %v3119_v17, %v7662_v44  ;;  %v3300_v11 = vcombine.high %v3284_v33, %v3284_v33  ;;  %v3175_v53 = vadd.f32 %v3174_v22, %v3152_v46  ;;  %v3302_v7 = vcombine.high %v3298_v15, %v3298_v15 }
 0x235   :  { %v3326_v26 = vrot.slane %v6677_v6, %v4976_v32  ;;  %v3333_v4 = vrot.slane %v3317_v36, %v4976_v32  ;;  %v3190_v21 = vadd.f32 %v3189_v56, %v3153_v62  ;;  %v3340_v9 = vrot.slane %v3318_v10, %v4976_v32 }
 0x236   :  { %v3347_v16 = vrot.slane %v3319_v0, %v4976_v32  ;;  %v3371_v54 = vrot.slane %v3284_v33, %v5024_v63  ;;  %v3438_v5 = vmul.f32 %v3367_v50, %v7602_v20  ;;  %v3439_v17 = vmul.f32 %v3367_v50, %v7520_v29 }
 0x237   :  { %v3465_v49 = vadd.f32 %v3464_v43, %v3436_v14  ;;  %v3480_v44 = vadd.f32 %v3479_v34, %v3437_v19  ;;  %v3348_v46 = vcombine.high %v3326_v26, %v3326_v26  ;;  %v3349_v22 = vcombine.high %v3333_v4, %v3333_v4 }
 0x238   :  { %v3350_v3 = vcombine.high %v3340_v9, %v3340_v9  ;;  %v3557_v6 = vrot.slane %v6654_v47, %v4976_v32  ;;  %v3176_v36 = vadd.f32 %v3175_v53, %v3154_v60  ;;  %v3351_v56 = vcombine.high %v3347_v16, %v3347_v16 }
 0x239   :  { %v3375_v62 = vrot.slane %v3298_v15, %v5024_v63  ;;  %v3379_v10 = vrot.slane %v3300_v11, %v5024_v63  ;;  %v3191_v0 = vadd.f32 %v3190_v21, %v3155_v1  ;;  %v3383_v33 = vrot.slane %v3302_v7, %v5024_v63 }
 0x23a   :  { %v3387_v27 = vrot.slane %v3326_v26, %v5024_v63  ;;  %v3391_v50 = vrot.slane %v3340_v9, %v5024_v63  ;;  %v3440_v14 = vmul.f32 %v3371_v54, %v7650_v28  ;;  %v3441_v34 = vmul.f32 %v3371_v54, %v7522_v61 }
 0x23b   :  { %v3466_v43 = vadd.f32 %v3465_v49, %v3438_v5  ;;  %v3481_v19 = vadd.f32 %v3480_v44, %v3439_v17  ;;  %v3395_v60 = vrot.slane %v3348_v46, %v5024_v63  ;;  %v3399_v53 = vrot.slane %v3350_v3, %v5024_v63 }
 0x23c   :  { %v3403_v15 = vrot.slane %v3333_v4, %v5024_v63  ;;  %v3565_v11 = vcombine.high %v3557_v6, %v3557_v6  ;;  %v3177_v1 = vadd.f32 %v3176_v36, %v6704_v23  ;;  %v3407_v7 = vrot.slane %v3347_v16, %v5024_v63 }
 0x23d   :  { %v6775_v26 = vrot.slane %v3349_v22, %v5024_v63  ;;  %v3550_v21 = vcombine.high %v6654_v47, %v6654_v47  ;;  %v3192_v9 = vadd.f32 %v3191_v0, %v6707_v24  ;;  %v6781_v44 = vrot.slane %v3351_v56, %v5024_v63 }
 0x23e   :  { %v3442_v3 = vmul.f32 %v3375_v62, %v5061_v42  ;;  %v3573_v4 = vrot.slane %v3557_v6, %v4976_v32  ;;  %v3443_v54 = vmul.f32 %v3375_v62, %v5073_v52  ;;  %v3444_v23 = vmul.f32 %v3379_v10, %v5076_v35 }
 0x23f   :  { %v3467_v16 = vadd.f32 %v3466_v43, %v3440_v14  ;;  %v3482_v5 = vadd.f32 %v3481_v19, %v3441_v34  ;;  %v3445_v17 = vmul.f32 %v3379_v10, %v7525_v40  ;;  %v3446_v49 = vmul.f32 %v3383_v33, %v7558_v58 }
 0x240   :  { %v3447_v47 = vmul.f32 %v3383_v33, %v7530_v2  ;;  %v3587_v24 = vrot.slane %v3565_v11, %v4976_v32  ;;  %v3178_v46 = vadd.f32 %v3177_v1, %v6710_v30  ;;  %v3448_v22 = vmul.f32 %v3387_v27, %v7533_v55 }
 0x241   :  { %v3449_v6 = vmul.f32 %v3387_v27, %v7561_v13  ;;  %v3564_v36 = vrot.slane %v3550_v21, %v4976_v32  ;;  %v3193_v56 = vadd.f32 %v3192_v9, %v6713_v41  ;;  %v6797_v62 = vmul.f32 %v3391_v50, %v7562_v51  ;;  %v7663_v27 = vld [vmem:[#allocation32_spill] sm:$0xff] }
 0x242   :  { %v6800_v10 = vmul.f32 %v3391_v50, %v7587_v37  ;;  %v3595_v0 = vcombine.high %v3573_v4, %v3573_v4  ;;  %v6803_v33 = vmul.f32 %v3395_v60, %v7589_v48  ;;  %v3468_v14 = vadd.f32 %v3467_v16, %v3442_v3  ;;  %v7664_v16 = vld [vmem:[#allocation36_spill] sm:$0xff]  ;;  %v7670_v48 = vld [vmem:[#allocation43_spill] sm:$0xff] }
 0x243   :  { %v3483_v30 = vadd.f32 %v3482_v5, %v3443_v54  ;;  %v3597_v34 = vcombine.high %v3587_v24, %v3587_v24  ;;  %v6806_v43 = vmul.f32 %v3395_v60, %v7590_v38  ;;  %v6809_v19 = vmul.f32 %v3399_v53, %v7663_v27 }
 0x244   :  { %v3651_v41 = vrot.slane %v3573_v4, %v5024_v63  ;;  %v3655_v11 = vrot.slane %v3587_v24, %v5024_v63  ;;  %v3179_v50 = vadd.f32 %v3178_v46, %v6722_v59  ;;  %v6815_v1 = vmul.f32 %v3399_v53, %v7651_v12  ;;  %v7666_v46 = vld [vmem:[#allocation48_spill] sm:$0xff] }
 0x245   :  { %v3566_v21 = vcombine.high %v3564_v36, %v3564_v36  ;;  %v3580_v9 = vrot.slane %v3564_v36, %v4976_v32  ;;  %v3194_v3 = vadd.f32 %v3193_v56, %v6725_v18  ;;  %v6820_v60 = vmul.f32 %v3403_v15, %v7652_v45  ;;  %v7667_v36 = vld [vmem:[#allocation49_spill] sm:$0xff]  ;;  %v7668_v18 = vld [vmem:[#allocation50_spill] sm:$0xff]  ;;  %v7669_v45 = vld [vmem:[#allocation51_spill] sm:$0xff] }
 0x246   :  { %v6823_v54 = vmul.f32 %v3403_v15, %v7653_v31  ;;  %v3659_v4 = vrot.slane %v3595_v0, %v5024_v63  ;;  %v6827_v5 = vmul.f32 %v3407_v7, %v7664_v16  ;;  %v3469_v59 = vadd.f32 %v3468_v14, %v3444_v23  ;;  %v7671_v31 = vld [vmem:[#allocation37_spill] sm:$0xff]  ;;  %v7680_v16 = vld [vmem:[#allocation42_spill] sm:$0xff] }
 0x247   :  { %v3484_v24 = vadd.f32 %v3483_v30, %v3445_v17  ;;  %v3663_v53 = vrot.slane %v3597_v34, %v5024_v63  ;;  %v3728_v12 = vmul.f32 %v3651_v41, %v7666_v46  ;;  %v3729_v27 = vmul.f32 %v3651_v41, %v7667_v36  ;;  %v7673_v17 = vld [vmem:[#allocation64_spill] sm:$0xff]  ;;  %v7674_v30 = vld [vmem:[#allocation66_spill] sm:$0xff]  ;;  %v7675_v41 = vld [vmem:[#allocation53_spill] sm:$0xff] }
 0x248   :  { %7665 = vst [vmem:[#allocation41_spill] sm:$0xff] %v6827_v5  ;;  %v3730_v56 = vmul.f32 %v3655_v11, %v7668_v18  ;;  %v3731_v38 = vmul.f32 %v3655_v11, %v7669_v45  ;;  %v3180_v15 = vadd.f32 %v3179_v50, %v7670_v48  ;;  %v6836_v37 = vmul.f32 %v3407_v7, %v7671_v31  ;;  %v7676_v45 = vld [vmem:[#allocation65_spill] sm:$0xff]  ;;  %v7677_v46 = vld [vmem:[#allocation67_spill] sm:$0xff] }
 0x249   :  { %v3594_v0 = vrot.slane %v3566_v21, %v4976_v32  ;;  %v3667_v23 = vrot.slane %v3580_v9, %v5024_v63  ;;  %v3195_v14 = vadd.f32 %v3194_v3, %v7673_v17  ;;  %v3599_v34 = vcombine.high %v7674_v30, %v7674_v30 }
 0x24a   :  { %7672 = vst [vmem:[#allocation62_spill] sm:$0xff] %v6836_v37  ;;  %v3732_v36 = vmul.f32 %v3659_v4, %v7675_v41  ;;  %v3733_v18 = vmul.f32 %v3659_v4, %v7601_v25  ;;  %v3470_v48 = vadd.f32 %v3469_v59, %v3446_v49  ;;  %v3485_v7 = vadd.f32 %v3484_v24, %v3447_v47  ;;  %v7678_v49 = vld [vmem:[#allocation26_spill] sm:$0xff] }
 0x24b   :  { %v3606_v11 = vrot.slane %v7674_v30, %v4976_v32  ;;  %v3734_v50 = vmul.f32 %v3663_v53, %v7602_v20  ;;  %v3735_v21 = vmul.f32 %v3663_v53, %v7520_v29  ;;  %v3760_v3 = vadd.f32 %v3730_v56, %v3728_v12 }
 0x24c   :  { %v3775_v17 = vadd.f32 %v3731_v38, %v3729_v27  ;;  %v3818_v31 = vadd.f32 %v7677_v46, %v7676_v45  ;;  %v3596_v41 = vcombine.high %v3580_v9, %v3580_v9  ;;  %v3671_v4 = vrot.slane %v3594_v0, %v5024_v63  ;;  %v7682_v38 = vld [vmem:[#allocation63_spill] sm:$0xff] }
 0x24d   :  { %v3736_v25 = vmul.f32 %v3667_v23, %v7650_v28  ;;  %v7679_v47 = vstv %s6607_s30  ;;  %v3737_v24 = vmul.f32 %v3667_v23, %v7522_v61  ;;  %v3761_v30 = vadd.f32 %v3760_v3, %v3732_v36  ;;  %v7683_v28 = vld [vmem:[#allocation47_spill] sm:$0xff] }
 0x24e   :  { %v3822_v59 = vmul.f32 %v7679_v47, %v7678_v49  ;;  %v3776_v20 = vadd.f32 %v3775_v17, %v3733_v18  ;;  %v7681_v53 = vstv %s6618_s9  ;;  %v3181_v27 = vadd.f32 %v3180_v15, %v7682_v38  ;;  %v7689_v49 = vld [vmem:[#allocation27_spill] sm:$0xff]  ;;  %v7690_v47 = vld [vmem:[#allocation68_spill] sm:$0xff] }
 0x24f   :  { %v3828_v12 = vmul.f32 %v7681_v53, %v7680_v16  ;;  %v3471_v45 = vadd.f32 %v3470_v48, %v3448_v22  ;;  %v3598_v46 = vcombine.high %v3594_v0, %v3594_v0  ;;  %v3486_v56 = vadd.f32 %v3485_v7, %v3449_v6  ;;  %v7685_v7 = vld [vmem:[#allocation69_spill] sm:$0xff] }
 0x250   :  { %v3824_v9 = vadd.f32 %v3822_v59, %v3818_v31  ;;  %v3762_v29 = vadd.f32 %v3761_v30, %v3734_v50  ;;  %v3777_v37 = vadd.f32 %v3776_v20, %v3735_v21  ;;  %v7684_v5 = vstv %s6621_s10  ;;  %v7688_v21 = vld [vmem:[#allocation44_spill] sm:$0xff] }
 0x251   :  { %v3834_v51 = vmul.f32 %v7684_v5, %v7683_v28  ;;  %v3675_v23 = vrot.slane %v3596_v41, %v5024_v63  ;;  %v3738_v36 = vmul.f32 %v3671_v4, %v5061_v42  ;;  %v3739_v18 = vmul.f32 %v3671_v4, %v5073_v52 }
 0x252   :  { %v3830_v16 = vadd.f32 %v3828_v12, %v3824_v9  ;;  %v3196_v3 = vadd.f32 %v3195_v14, %v6744_v8  ;;  %v3763_v15 = vadd.f32 %v3762_v29, %v3736_v25  ;;  %v3778_v22 = vadd.f32 %v3777_v37, %v3737_v24  ;;  %v7691_v24 = vld [vmem:[#allocation46_spill] sm:$0xff] }
 0x253   :  { %v3839_v0 = vstv %s6845_s11  ;;  %v3182_v31 = vadd.f32 %v3181_v27, %v6747_v57  ;;  %v3472_v20 = vadd.f32 %v3471_v45, %v6797_v62  ;;  %v3614_v6 = vcombine.high %v3606_v11, %v3606_v11  ;;  %v7686_v62 = vld [vmem:[#allocation38_spill] sm:$0xff] }
 0x254   :  { %v3622_v28 = vrot.slane %v3606_v11, %v4976_v32  ;;  %v3487_v5 = vadd.f32 %v3486_v56, %v6800_v10  ;;  %v3679_v41 = vrot.slane %v3598_v46, %v5024_v63  ;;  %v3836_v48 = vadd.f32 %v3834_v51, %v3830_v16  ;;  %v7687_v11 = vld [vmem:[#allocation39_spill] sm:$0xff]  ;;  %v7693_v46 = vld [vmem:[#allocation45_spill] sm:$0xff]  ;;  %v7694_v56 = vld [vmem:[#allocation60_spill] sm:$0xff] }
 0x255   :  { %v3840_v50 = vmul.f32 %v3839_v0, %v7685_v7  ;;  %v3740_v29 = vmul.f32 %v3675_v23, %v5076_v35  ;;  %v3741_v25 = vmul.f32 %v3675_v23, %v7525_v40  ;;  %v3764_v37 = vadd.f32 %v3763_v15, %v3738_v36  ;;  %v7695_v36 = vld [vmem:[#allocation61_spill] sm:$0xff] }
 0x256   :  { %v3779_v8 = vadd.f32 %v3778_v22, %v3739_v18  ;;  %v3197_v57 = vadd.f32 %v3196_v3, %v6750_v39  ;;  %v6884_v14 = vmul.f32 %v6775_v26, %v7686_v62  ;;  %v6888_v10 = vmul.f32 %v6775_v26, %v7687_v11 }
 0x257   :  { %v3613_v51 = vrot.slane %v3599_v34, %v4976_v32  ;;  %v3198_v17 = vmul.f32 %v7688_v21, %v3182_v31  ;;  %v3473_v4 = vadd.f32 %v3472_v20, %v6803_v33  ;;  %v3819_v59 = vadd.f32 %v7690_v47, %v7689_v49  ;;  %v7697_v31 = vld [vmem:[#allocation52_spill] sm:$0xff] }
 0x258   :  { %v7692_v39 = vstv %s6607_s30  ;;  %v3488_v53 = vadd.f32 %v3487_v5, %v6806_v43  ;;  %v3636_v12 = vrot.slane %v3614_v6, %v4976_v32  ;;  %v3683_v26 = vrot.slane %v3622_v28, %v5024_v63 }
 0x259   :  { %v3823_v30 = vmul.f32 %v7692_v39, %v7691_v24  ;;  %v3842_v38 = vadd.f32 %v3840_v50, %v3836_v48  ;;  %v3742_v34 = vmul.f32 %v3679_v41, %v7558_v58  ;;  %v3743_v27 = vmul.f32 %v3679_v41, %v7530_v2 }
 0x25a   :  { %v3765_v45 = vadd.f32 %v3764_v37, %v3740_v29  ;;  %v3780_v33 = vadd.f32 %v3779_v8, %v3741_v25  ;;  %v3199_v9 = vmul.f32 %v7693_v46, %v3197_v57  ;;  %v6906_v23 = vmul.f32 %v6781_v44, %v7694_v56 }
 0x25b   :  { %v6910_v43 = vmul.f32 %v6781_v44, %v7695_v36  ;;  %v3615_v18 = vcombine.high %v3613_v51, %v3613_v51  ;;  %v7696_v16 = vstv %s6546_s1  ;;  %v3474_v15 = vadd.f32 %v3473_v4, %v6809_v19  ;;  %v7701_v4 = vld [vmem:[#allocation58_spill] sm:$0xff] }
 0x25c   :  { %v6914_v3 = vadd.f32 %v7696_v16, %v3198_v17  ;;  %v3825_v22 = vadd.f32 %v3823_v30, %v3819_v59  ;;  %v7698_v20 = vstv %s6618_s9  ;;  %v3489_v5 = vadd.f32 %v3488_v53, %v6815_v1 }
 0x25d   :  { %v3829_v6 = vmul.f32 %v7698_v20, %v7697_v31  ;;  %v3644_v41 = vcombine.high %v3622_v28, %v3622_v28  ;;  %v3687_v48 = vrot.slane %v3636_v12, %v5024_v63  ;;  %v3853_v7 = vrot.slane %v3842_v38, %v4976_v32  ;;  %v7707_v20 = vld [vmem:[#allocation62_spill] sm:$0xff] }
 0x25e   :  { %v3744_v44 = vmul.f32 %v3683_v26, %v7533_v55  ;;  %v3745_v50 = vmul.f32 %v3683_v26, %v7561_v13  ;;  %v3766_v29 = vadd.f32 %v3765_v45, %v3742_v34  ;;  %v3781_v25 = vadd.f32 %v3780_v33, %v3743_v27  ;;  %v7703_v26 = vld [vmem:[#allocation28_spill] sm:$0xff] }
 0x25f   :  { %v7699_v37 = vmov %v7696_v16  ;;  %v3629_v8 = vrot.slane %v3613_v51, %v4976_v32  ;;  %v3643_v57 = vrot.slane %v3615_v18, %v4976_v32  ;;  %v3646_v17 = vcombine.high %v3636_v12, %v3636_v12  ;;  %v7704_v51 = vld [vmem:[#allocation29_spill] sm:$0xff] }
 0x260   :  { %v6927_v19 = vadd.f32 %v7699_v37, %v3199_v9  ;;  %v3475_v1 = vadd.f32 %v3474_v15, %v6820_v60  ;;  %v3831_v28 = vadd.f32 %v3829_v6, %v3825_v22  ;;  %v7702_v49 = vstv %s6621_s10  ;;  %v7706_v15 = vld [vmem:[#allocation24_spill] sm:$0xff] }
 0x261   :  { %v3835_v47 = vmul.f32 %v7702_v49, %v7701_v4  ;;  %v3846_v59 = vcombine.high %v3842_v38, %v3842_v38  ;;  %v3490_v24 = vadd.f32 %v3489_v5, %v6823_v54  ;;  %v3645_v39 = vcombine.high %v3629_v8, %v3629_v8  ;;  %v7705_v38 = vld [vmem:[#allocation41_spill] sm:$0xff] }
 0x262   :  { %7700 = vst [vmem:[#allocation25_spill] sm:$0xff] %v6927_v19  ;;  %v3691_v30 = vrot.slane %v3644_v41, %v5024_v63  ;;  %v3861_v53 = vcombine.high %v3853_v7, %v3853_v7  ;;  %v3746_v34 = vmul.f32 %v3687_v48, %v7703_v26  ;;  %v3747_v27 = vmul.f32 %v3687_v48, %v7704_v51 }
 0x263   :  { %v3767_v45 = vadd.f32 %v3766_v29, %v3744_v44  ;;  %v3782_v12 = vadd.f32 %v3781_v25, %v3745_v50  ;;  %v3647_v33 = vcombine.high %v3643_v57, %v3643_v57  ;;  %v3695_v60 = vrot.slane %v3646_v17, %v5024_v63  ;;  %v7708_v44 = vld [vmem:[#allocation30_spill] sm:$0xff]  ;;  %v7709_v29 = vld [vmem:[#allocation31_spill] sm:$0xff] }
 0x264   :  { %v3699_v9 = vrot.slane %v3629_v8, %v5024_v63  ;;  %v3869_v18 = vrot.slane %v3853_v7, %v4976_v32  ;;  %v3476_v16 = vadd.f32 %v3475_v1, %v7705_v38  ;;  %v3837_v54 = vadd.f32 %v3835_v47, %v3831_v28  ;;  %v7711_v1 = vld [vmem:[#allocation33_spill] sm:$0xff] }
 0x265   :  { %v3841_v22 = vmul.f32 %v3839_v0, %v7706_v15  ;;  %v3860_v31 = vrot.slane %v3846_v59, %v4976_v32  ;;  %v3491_v6 = vadd.f32 %v3490_v24, %v7707_v20  ;;  %v3703_v5 = vrot.slane %v3643_v57, %v5024_v63  ;;  %v7710_v0 = vld [vmem:[#allocation32_spill] sm:$0xff]  ;;  %v7715_v15 = vld [vmem:[#allocation37_spill] sm:$0xff] }
 0x266   :  { %v3707_v41 = vrot.slane %v3645_v39, %v5024_v63  ;;  %v3883_v48 = vrot.slane %v3861_v53, %v4976_v32  ;;  %v3748_v50 = vmul.f32 %v3691_v30, %v7708_v44  ;;  %v3749_v7 = vmul.f32 %v3691_v30, %v7709_v29  ;;  %v7712_v39 = vld [vmem:[#allocation34_spill] sm:$0xff] }
 0x267   :  { %v3768_v25 = vadd.f32 %v3767_v45, %v3746_v34  ;;  %v3783_v37 = vadd.f32 %v3782_v12, %v3747_v27  ;;  %v6954_v8 = vrot.slane %v3647_v33, %v5024_v63  ;;  %v3750_v17 = vmul.f32 %v3695_v60, %v7710_v0  ;;  %v7713_v27 = vld [vmem:[#allocation35_spill] sm:$0xff]  ;;  %v7714_v12 = vld [vmem:[#allocation36_spill] sm:$0xff] }
 0x268   :  { %v3751_v28 = vmul.f32 %v3695_v60, %v7711_v1  ;;  %v3891_v4 = vcombine.high %v3869_v18, %v3869_v18  ;;  %v3477_v57 = vadd.f32 %v3476_v16, %v6884_v14  ;;  %v3843_v49 = vadd.f32 %v3841_v22, %v3837_v54 }
 0x269   :  { %v3862_v47 = vcombine.high %v3860_v31, %v3860_v31  ;;  %v3893_v59 = vcombine.high %v3883_v48, %v3883_v48  ;;  %v3492_v24 = vadd.f32 %v3491_v6, %v6888_v10  ;;  %v3752_v53 = vmul.f32 %v3699_v9, %v7712_v39  ;;  %v7716_v6 = vld [vmem:[#allocation48_spill] sm:$0xff] }
 0x26a   :  { %v3947_v30 = vrot.slane %v3869_v18, %v5024_v63  ;;  %v3951_v34 = vrot.slane %v3883_v48, %v5024_v63  ;;  %v3753_v45 = vmul.f32 %v3699_v9, %v7713_v27  ;;  %v3754_v33 = vmul.f32 %v3703_v5, %v7714_v12 }
 0x26b   :  { %v3769_v38 = vadd.f32 %v3768_v25, %v3748_v50  ;;  %v3784_v60 = vadd.f32 %v3783_v37, %v3749_v7  ;;  %v3755_v20 = vmul.f32 %v3703_v5, %v7715_v15  ;;  %v3756_v14 = vmul.f32 %v3707_v41, %v7686_v62  ;;  %v7717_v50 = vld [vmem:[#allocation49_spill] sm:$0xff]  ;;  %v7718_v25 = vld [vmem:[#allocation50_spill] sm:$0xff]  ;;  %v7719_v37 = vld [vmem:[#allocation51_spill] sm:$0xff] }
 0x26c   :  { %v3876_v16 = vrot.slane %v3860_v31, %v4976_v32  ;;  %v3955_v10 = vrot.slane %v3891_v4, %v5024_v63  ;;  %v3757_v54 = vmul.f32 %v3707_v41, %v7687_v11  ;;  %v3890_v18 = vrot.slane %v3862_v47, %v4976_v32  ;;  %v7720_v11 = vld [vmem:[#allocation53_spill] sm:$0xff] }
 0x26d   :  { %v3902_v22 = vrot.slane %v3843_v49, %v4976_v32  ;;  %v3959_v9 = vrot.slane %v3893_v59, %v5024_v63  ;;  %v4024_v48 = vmul.f32 %v3947_v30, %v7716_v6  ;;  %v4025_v7 = vmul.f32 %v3947_v30, %v7717_v50  ;;  %v7721_v59 = vld [vmem:[#allocation54_spill] sm:$0xff] }
 0x26e   :  { %v4026_v5 = vmul.f32 %v3951_v34, %v7718_v25  ;;  %v4027_v62 = vmul.f32 %v3951_v34, %v7719_v37  ;;  %v3478_v31 = vadd.f32 %v3477_v57, %v6906_v23  ;;  %v3770_v15 = vadd.f32 %v3769_v38, %v3750_v17  ;;  %v7722_v25 = vld [vmem:[#allocation55_spill] sm:$0xff]  ;;  %v7723_v37 = vld [vmem:[#allocation56_spill] sm:$0xff] }
 0x26f   :  { %v3785_v4 = vadd.f32 %v3784_v60, %v3751_v28  ;;  %v3892_v12 = vcombine.high %v3876_v16, %v3876_v16  ;;  %v3493_v41 = vadd.f32 %v3492_v24, %v6910_v43  ;;  %v3963_v47 = vrot.slane %v3876_v16, %v5024_v63 }
 0x270   :  { %v4028_v19 = vmul.f32 %v3955_v10, %v7720_v11  ;;  %v4029_v27 = vmul.f32 %v3955_v10, %v7721_v59  ;;  %v3894_v6 = vcombine.high %v3890_v18, %v3890_v18  ;;  %v3895_v39 = vcombine.high %v3843_v49, %v3843_v49  ;;  %v7724_v11 = vld [vmem:[#allocation57_spill] sm:$0xff] }
 0x271   :  { %v3910_v30 = vcombine.high %v3902_v22, %v3902_v22  ;;  %v3967_v50 = vrot.slane %v3890_v18, %v5024_v63  ;;  %v4030_v34 = vmul.f32 %v3959_v9, %v7722_v25  ;;  %v4031_v23 = vmul.f32 %v3959_v9, %v7723_v37 }
 0x272   :  { %v4056_v17 = vadd.f32 %v4026_v5, %v4024_v48  ;;  %v4071_v28 = vadd.f32 %v4027_v62, %v4025_v7  ;;  %v3771_v57 = vadd.f32 %v3770_v15, %v3752_v53  ;;  %v3786_v38 = vadd.f32 %v3785_v4, %v3753_v45 }
 0x273   :  { %v3918_v43 = vrot.slane %v3902_v22, %v4976_v32  ;;  %v3971_v24 = vrot.slane %v3892_v12, %v5024_v63  ;;  %v4032_v60 = vmul.f32 %v3963_v47, %v7724_v11  ;;  %v4033_v16 = vmul.f32 %v3963_v47, %v7522_v61 }
 0x274   :  { %v4057_v49 = vadd.f32 %v4056_v17, %v4028_v19  ;;  %v4072_v10 = vadd.f32 %v4071_v28, %v4029_v27  ;;  %v3758_v18 = vmul.f32 %v6954_v8, %v7694_v56  ;;  %v3909_v59 = vrot.slane %v3895_v39, %v4976_v32 }
 0x275   :  { %v3932_v9 = vrot.slane %v3910_v30, %v4976_v32  ;;  %v3975_v62 = vrot.slane %v3894_v6, %v5024_v63  ;;  %v4034_v53 = vmul.f32 %v3967_v50, %v5061_v42  ;;  %v4035_v45 = vmul.f32 %v3967_v50, %v5073_v52 }
 0x276   :  { %v4058_v12 = vadd.f32 %v4057_v49, %v4030_v34  ;;  %v4073_v15 = vadd.f32 %v4072_v10, %v4031_v23  ;;  %v3772_v22 = vadd.f32 %v3771_v57, %v3754_v33  ;;  %v3787_v48 = vadd.f32 %v3786_v38, %v3755_v20 }
 0x277   :  { %v3940_v61 = vcombine.high %v3918_v43, %v3918_v43  ;;  %v3979_v19 = vrot.slane %v3918_v43, %v5024_v63  ;;  %v4036_v27 = vmul.f32 %v3971_v24, %v5076_v35  ;;  %v4037_v7 = vmul.f32 %v3971_v24, %v7525_v40 }
 0x278   :  { %v4059_v39 = vadd.f32 %v4058_v12, %v4032_v60  ;;  %v4074_v5 = vadd.f32 %v4073_v15, %v4033_v16  ;;  %v3759_v4 = vmul.f32 %v6954_v8, %v7695_v36  ;;  %v3911_v47 = vcombine.high %v3909_v59, %v3909_v59  ;;  %v7727_v12 = vld [vmem:[#allocation34_spill] sm:$0xff] }
 0x279   :  { %v3942_v42 = vcombine.high %v3932_v9, %v3932_v9  ;;  %v3983_v52 = vrot.slane %v3932_v9, %v5024_v63  ;;  %v4038_v6 = vmul.f32 %v3975_v62, %v7558_v58  ;;  %v4039_v33 = vmul.f32 %v3975_v62, %v7530_v2 }
 0x27a   :  { %v4060_v20 = vadd.f32 %v4059_v39, %v4034_v53  ;;  %v4075_v30 = vadd.f32 %v4074_v5, %v4035_v45  ;;  %v3773_v50 = vadd.f32 %v3772_v22, %v3756_v14  ;;  %v3788_v25 = vadd.f32 %v3787_v48, %v3757_v54  ;;  %v7728_v22 = vld [vmem:[#allocation35_spill] sm:$0xff]  ;;  %v7730_v39 = vld [vmem:[#allocation36_spill] sm:$0xff] }
 0x27b   :  { %v3925_v35 = vrot.slane %v3909_v59, %v4976_v32  ;;  %v3987_v40 = vrot.slane %v3940_v61, %v5024_v63  ;;  %v4040_v34 = vmul.f32 %v3979_v19, %v7533_v55  ;;  %v4041_v8 = vmul.f32 %v3979_v19, %v7561_v13  ;;  %v7729_v61 = vld [vmem:[#allocation25_spill] sm:$0xff] }
 0x27c   :  { %v4061_v37 = vadd.f32 %v4060_v20, %v4036_v27  ;;  %v4076_v23 = vadd.f32 %v4075_v30, %v4037_v7  ;;  %v3494_v17 = vmul.f32 %v7688_v21, %v3478_v31  ;;  %v3495_v58 = vmul.f32 %v7693_v46, %v3493_v41 }
 0x27d   :  { %v3939_v2 = vrot.slane %v3911_v47, %v4976_v32  ;;  %v3991_v14 = vrot.slane %v3942_v42, %v5024_v63  ;;  %v4042_v54 = vmul.f32 %v3983_v52, %v7703_v26  ;;  %v4043_v28 = vmul.f32 %v3983_v52, %v7704_v51 }
 0x27e   :  { %v4062_v57 = vadd.f32 %v4061_v37, %v4038_v6  ;;  %v4077_v55 = vadd.f32 %v4076_v23, %v4039_v33  ;;  %v3774_v38 = vadd.f32 %v3773_v50, %v3758_v18  ;;  %v3789_v13 = vadd.f32 %v3788_v25, %v3759_v4  ;;  %v7731_v4 = vld [vmem:[#allocation37_spill] sm:$0xff] }
 0x27f   :  { %v3941_v43 = vcombine.high %v3925_v35, %v3925_v35  ;;  %v3995_v24 = vrot.slane %v3925_v35, %v5024_v63  ;;  %v4044_v32 = vmul.f32 %v3987_v40, %v7708_v44  ;;  %v4045_v31 = vmul.f32 %v3987_v40, %v7709_v29  ;;  %v7734_v35 = vld [vmem:[#allocation38_spill] sm:$0xff] }
 0x280   :  { %v4063_v41 = vadd.f32 %v4062_v57, %v4040_v34  ;;  %v4078_v11 = vadd.f32 %v4077_v55, %v4041_v8  ;;  %v7725_v26 = vstv %s6561_s24  ;;  %v3943_v49 = vcombine.high %v3939_v2, %v3939_v2  ;;  %v7735_v34 = vld [vmem:[#allocation39_spill] sm:$0xff] }
 0x281   :  { %v3498_v60 = vadd.f32 %v7725_v26, %v3494_v17  ;;  %v7726_v51 = vmov %v7725_v26  ;;  %v3999_v10 = vrot.slane %v3939_v2, %v5024_v63  ;;  %v4046_v18 = vmul.f32 %v3991_v14, %v7710_v0 }
 0x282   :  { %v3499_v16 = vadd.f32 %v7726_v51, %v3495_v58  ;;  %v4047_v59 = vmul.f32 %v3991_v14, %v7711_v1  ;;  %v4064_v9 = vadd.f32 %v4063_v41, %v4042_v54  ;;  %v4079_v62 = vadd.f32 %v4078_v11, %v4043_v28 }
 0x283   :  { %v3204_v53 = vmax.f32 %v6914_v3, 0.0  ;;  %v3790_v44 = vmul.f32 %v7688_v21, %v3774_v38  ;;  %v3791_v29 = vmul.f32 %v7693_v46, %v3789_v13  ;;  %v4003_v45 = vrot.slane %v3941_v43, %v5024_v63 }
 0x284   :  { %v4048_v15 = vmul.f32 %v3995_v24, %v7727_v12  ;;  %v4049_v48 = vmul.f32 %v3995_v24, %v7728_v22  ;;  %v4065_v0 = vadd.f32 %v4064_v9, %v4044_v32  ;;  %v4080_v1 = vadd.f32 %v4079_v62, %v4045_v31 }
 0x285   :  { %v3205_v19 = vmax.f32 %v7729_v61, 0.0  ;;  %v3500_v27 = vmax.f32 %v3498_v60, 0.0  ;;  %v3501_v3 = vmax.f32 %v3499_v16, 0.0  ;;  %v4007_v7 = vrot.slane %v3943_v49, %v5024_v63 }
 0x286   :  { %v4050_v5 = vmul.f32 %v3999_v10, %v7730_v39  ;;  %v4051_v47 = vmul.f32 %v3999_v10, %v7731_v4  ;;  %v4066_v42 = vadd.f32 %v4065_v0, %v4046_v18  ;;  %v4081_v52 = vadd.f32 %v4080_v1, %v4047_v59 }
 0x287   :  { %v7732_v6 = vstv %s6580_s6  ;;  %v4095_v50 = vstv %s7015_s12  ;;  %v4099_v25 = vstv %s7017_s13  ;;  %v4052_v40 = vmul.f32 %v4003_v45, %v7734_v35 }
 0x288   :  { %v3794_v33 = vadd.f32 %v7732_v6, %v3790_v44  ;;  %v7733_v20 = vmov %v7732_v6  ;;  %v4053_v63 = vmul.f32 %v4003_v45, %v7735_v34  ;;  %v4067_v8 = vadd.f32 %v4066_v42, %v4048_v15 }
 0x289   :  { %v3795_v30 = vadd.f32 %v7733_v20, %v3791_v29  ;;  %v4082_v37 = vadd.f32 %v4081_v52, %v4049_v48  ;;  %v4054_v23 = vmul.f32 %v4007_v7, %v7694_v56  ;;  %v4055_v17 = vmul.f32 %v4007_v7, %v7695_v36 }
 0x28a   :  { %v4068_v58 = vadd.f32 %v4067_v8, %v4050_v5  ;;  %v4096_v14 = vmul.f32 %v4095_v50, %v3204_v53  ;;  %v4097_v54 = vmul.f32 %v4095_v50, %v3205_v19  ;;  %v4100_v28 = vmul.f32 %v4099_v25, %v3500_v27 }
 0x28b   :  { %v4083_v2 = vadd.f32 %v4082_v37, %v4051_v47  ;;  %v4101_v57 = vmul.f32 %v4099_v25, %v3501_v3  ;;  %v3796_v55 = vmax.f32 %v3794_v33, 0.0  ;;  %v3797_v38 = vmax.f32 %v3795_v30, 0.0 }
 0x28c   :  { %v4069_v13 = vadd.f32 %v4068_v58, %v4052_v40  ;;  %v4105_v24 = vstv %s7036_s3  ;;  %v4089_v41 = vstv %s7044_s0  ;;  %v4102_v11 = vadd.f32 %v4100_v28, %v4096_v14 }
 0x28d   :  { %v4084_v43 = vadd.f32 %v4083_v2, %v4053_v63  ;;  %v4103_v56 = vadd.f32 %v4101_v57, %v4097_v54  ;;  %v4106_v60 = vmul.f32 %v4105_v24, %v3796_v55  ;;  %v4107_v51 = vmul.f32 %v4105_v24, %v3797_v38 }
 0x28e   :  { %v4070_v32 = vadd.f32 %v4069_v13, %v4054_v23  ;;  %v4111_v10 = vstv %s4275_s5  ;;  %v4125_v1 = vstv %s7078_s7 }
 0x28f   :  { %v4085_v31 = vadd.f32 %v4084_v43, %v4055_v17  ;;  %v4108_v9 = vadd.f32 %v4106_v60, %v4102_v11  ;;  %v4109_v62 = vadd.f32 %v4107_v51, %v4103_v56 }
 0x290   :  { %v4086_v26 = vmul.f32 %v7688_v21, %v4070_v32 }
 0x291   :  { %v4087_v36 = vmul.f32 %v7693_v46, %v4085_v31 }
 0x292   :  { %v4090_v16 = vadd.f32 %v4089_v41, %v4086_v26 }
 0x293   :  { %v4091_v49 = vadd.f32 %v4089_v41, %v4087_v36 }
 0x294   :  { %v4092_v18 = vmax.f32 %v4090_v16, 0.0 }
 0x295   :  { %v4093_v59 = vmax.f32 %v4091_v49, 0.0 }
 0x296   :  { %v4112_v53 = vmul.f32 %v4111_v10, %v4092_v18 }
 0x297   :  { %v4113_v44 = vmul.f32 %v4111_v10, %v4093_v59 }
 0x298   :  { %v4114_v29 = vadd.f32 %v4112_v53, %v4108_v9 }
 0x299   :  { %v4115_v45 = vadd.f32 %v4113_v44, %v4109_v62 }
 0x29b   :  { %v4116_v12 = vadd.f32 %v4115_v45, %v4114_v29 }
 0x29d   :  { %v4117_v15 = vrot.slane %v4116_v12, 4 }
 0x29f   :  { %v4118_v22 = vadd.f32 %v4117_v15, %v4116_v12 }
 0x2a1   :  { %v4119_v48 = vrot.slane %v4118_v22, 2 }
 0x2a3   :  { %v4120_v21 = vadd.f32 %v4119_v48, %v4118_v22 }
 0x2a5   :  { %v4121_v0 = vrot.slane %v4120_v21, 1 }
 0x2a7   :  { %v4122_v46 = vadd.f32 %v4121_v0, %v4120_v21 }
 0x2a9   :  { %v4123_v61 = vmul.f32 0.0625, %v4122_v46 }
 0x2ab   :  { %v4126_v19 = vadd.f32 %v4125_v1, %v4123_v61 }
 0x2ad   :  { %v4276_v27 = vmul.f32 -1.442695, %v4126_v19 }
 0x2af   :  { %4405 = vpow2.f32 %v4276_v27 }
 0x2b9   :  { %v4406_v3 = vpop.eup %4405 }
 0x2ba   :  { %v4130_v7 = vadd.f32 1.0, %v4406_v3 }
 0x2bc   :  { %4407 = vrcp.f32 %v4130_v7 }
 0x2c6   :  { %v4408_v39 = vpop.eup %4407 }
 0x2c7   :  { %4133 = vst [vmem:[#allocation16] sm:$0x1] %v4408_v39 }
 0x2c8   :  { %4562 = shalt.err (!%p4559_p3)
}
 0x2c9   :  { %s4563_s21 = scalar_lea.hbm %s7079_s8, 16 }
 0x2ca   :  { %p4564_p4 = scmp.ne.s32.totalorder %s7079_s8, %s4563_s21  ;;  %p4567_p5 = scmp.lt.u32.totalorder %s4563_s21, %s7079_s8 }
 0x2cc   :  { %p4569_p6 = pnand %p4567_p5, %p4564_p4 }
 0x2ce   :  { %4572 = shalt.err (!%p4569_p6)
}
 0x2cf   :  { %4143 = dma.vmem_to_hbm [thread:$0]  %s4141_s17, 16, %s7079_s8, [#allocation5]  }
 0x2d0   :  { %4583 = dma.done.wait [#allocation5], 16  }
 0x2d1   :  { %4584 = vsyncadd [#allocation5], 4294967280 }
 0x2d2   :  { %4147 = vsyncpa [#allocation4], 1 }
 0x2d3   :  { %4148 = vsyncpa [#allocation8], 1 }
 0x2d4   :  { %4149 = vsyncpa [#allocation5], 1 }
 0x2d5   :  { %4150 = vsyncpa [#allocation6], 1 }
 0x2d6   :  { %4151 = vsyncpa [#allocation11], 1 }
 0x2d7   :  { %4152 = vsyncpa [#allocation14], 1 }

</bundles_post_ra>
